<compile_context>
chip_gen: v6e
topology: v6e:2x2x1
jax: 0.10.0
libtpu: 0.0.40
codegen_flags: <defaults>
</compile_context>

<pallas_src>
import jax
import jax.numpy as jnp
import numpy as np
from jax.experimental import pallas as pl
from jax.experimental.pallas import tpu as pltpu


# --------------------------- hardware-aware knobs ----------------------------

def _tpu_setup():
    try:
        kind = jax.devices()[0].device_kind.lower()
    except Exception:
        kind = ""
    try:
        vmem_cap = int(pltpu.get_tpu_info().vmem_capacity_bytes)
    except Exception:
        vmem_cap = 128 * 1024 * 1024
    return kind, vmem_cap


_DEVICE_KIND, _VMEM_CAP = _tpu_setup()
_IS_V5 = "v5" in _DEVICE_KIND

# v5e/v6e (128 MiB VMEM): raise the cap toward 96 MiB; v7x (64 MiB): ~48 MiB.
_COMPILER_PARAMS = pltpu.CompilerParams(
    dimension_semantics=("parallel", "parallel", "arbitrary"),
    vmem_limit_bytes=int(min(96 * 1024 * 1024, (_VMEM_CAP * 3) // 4)),
)


def _lane_tile(c):
    # 256-wide MXU tiles on v6e/v7x (2x256^2 MXU) when channels allow; v5e's
    # MXU is 4x128^2, so stay at 128 and keep the VMEM for pipelining instead.
    if (not _IS_V5) and c % 256 == 0:
        return 256
    return 128


def _pad_ch(c):
    return ((c + 127) // 128) * 128          # lane-dense channel padding


def _batch_block(n, hw, target_m=4096):
    """Images folded into one grid step so the dot's M dim is ~1-4k rows."""
    nb = 1
    for cand in range(1, n + 1):
        if n % cand == 0 and cand * hw <= target_m:
            nb = cand
    return nb


# ------------------------------ Pallas kernels ------------------------------

def _conv1_shortcut_kernel(xcol_ref, w1_ref, b1_ref, wsc_ref, bsc_ref,
                           h_ref, sc_ref, acc_h_ref, acc_sc_ref):
    """Tap-packed conv1 (+bias+ReLU) and the fused 1x1 shortcut conv.

    Grid = (batch block, hid/out tile, K tile), K = 9*cin (tap packed, padded).
    The K axis must stay the LAST ("arbitrary") grid dim for the accumulator
    init/finalize below to be correct.
    """
    k = pl.program_id(2)

    @pl.when(k == 0)
    def _init():
        acc_h_ref[...] = jnp.zeros_like(acc_h_ref)
        acc_sc_ref[...] = jnp.zeros_like(acc_sc_ref)

    nb, h, w, tk = xcol_ref.shape
    m = nb * h * w
    lhs = xcol_ref[...].reshape(m, tk)          # bf16 straight to the MXU
    acc_h_ref[...] += jnp.dot(lhs, w1_ref[...], preferred_element_type=jnp.float32)
    # 1x1 shortcut: wsc is embedded at the center-tap rows of the packed K, so
    # it shares the streamed LHS (no extra HBM read, no epilogue matmul).
    acc_sc_ref[...] += jnp.dot(lhs, wsc_ref[...], preferred_element_type=jnp.float32)

    @pl.when(k == pl.num_programs(2) - 1)
    def _finalize():
        tn = acc_h_ref.shape[-1]
        hv = jnp.maximum(acc_h_ref[...] + b1_ref[...], 0.0)       # bias+ReLU fused
        h_ref[...] = hv.reshape(nb, h, w, tn).astype(h_ref.dtype)
        sc_ref[...] = (acc_sc_ref[...] + bsc_ref[...]).reshape(nb, h, w, tn)


def _conv2_residual_kernel(h_ref, w2_ref, b2_ref, sc_ref, o_ref, acc_ref):
    """3x3 conv2 over h + bias + fused residual (shortcut) add, bf16 output.

    Grid = (batch block, cout tile, hid K tile); K must stay last.
    """
    k = pl.program_id(2)

    nb, h, w, tk = h_ref.shape
    m = nb * h * w

    @pl.when(k == 0)
    def _init():
        # Seed the accumulator with the shortcut produced by kernel 1 ->
        # the residual add costs nothing extra in the epilogue.
        acc_ref[...] = sc_ref[...].reshape(m, -1)

    # Build the 3x3 im2col for this channel tile in VMEM and issue ONE MXU dot
    # per K step (no per-tap dots / per-tap f32 accumulator adds).  The halo
    # (zero border) is built here, so no jnp.pad / HBM round trip of h exists
    # between the two kernels.  Slicing is done on 32-bit layouts (unaligned
    # packed-type slices are not reliably supported); the single post-concat
    # downcast replaces the 9 per-tap casts of the previous version.
    ht = h_ref[...].astype(jnp.float32)                       # (nb, h, w, tk)
    zw = jnp.zeros((nb, h, 8, tk), jnp.float32)               # sublane-aligned strips
    ht = jnp.concatenate([zw, ht, zw], axis=2)                # cols 8..w+7 hold h
    zh = jnp.zeros((nb, 1, w + 16, tk), jnp.float32)
    ht = jnp.concatenate([zh, ht, zh], axis=1)                # rows 1..h hold h
    taps = [ht[:, dy:dy + h, dx + 7:dx + 7 + w, :]
            for dy in range(3) for dx in range(3)]
    lhs = jnp.concatenate(taps, axis=-1).reshape(m, 9 * tk).astype(jnp.bfloat16)
    rhs = w2_ref[...].reshape(9 * tk, -1)                     # (dy,dx,c) -> rows
    acc_ref[...] += jnp.dot(lhs, rhs, preferred_element_type=jnp.float32)

    @pl.when(k == pl.num_programs(2) - 1)
    def _finalize():
        res = acc_ref[...] + b2_ref[...]                      # bias once, f32 epilogue
        o_ref[...] = res.reshape(nb, h, w, -1).astype(o_ref.dtype)


# ------------------------------ Pallas wrappers ------------------------------

def conv1_shortcut(xcol, w1p, b1, wscp, bsc, nb):
    """xcol: (N,H,W,K1p) bf16 tap-packed im2col of x; returns (h bf16, sc f32)."""
    n, h, w, k1p = xcol.shape
    hid_p = w1p.shape[-1]
    cout_p = wscp.shape[-1]
    assert hid_p == cout_p          # wide=True: shortcut shares the j tiling
    tn = _lane_tile(hid_p)
    tk = _lane_tile(k1p)
    grid = (n // nb, hid_p // tn, k1p // tk)

    return pl.pallas_call(
        _conv1_shortcut_kernel,
        grid=grid,
        in_specs=[
            pl.BlockSpec((nb, h, w, tk), lambda i, j, k: (i, 0, 0, k)),
            pl.BlockSpec((tk, tn), lambda i, j, k: (k, j)),
            pl.BlockSpec((1, tn), lambda i, j, k: (0, j)),
            pl.BlockSpec((tk, tn), lambda i, j, k: (k, j)),
            pl.BlockSpec((1, tn), lambda i, j, k: (0, j)),
        ],
        out_specs=[
            pl.BlockSpec((nb, h, w, tn), lambda i, j, k: (i, 0, 0, j)),
            pl.BlockSpec((nb, h, w, tn), lambda i, j, k: (i, 0, 0, j)),
        ],
        out_shape=[
            jax.ShapeDtypeStruct((n, h, w, hid_p), jnp.bfloat16),
            jax.ShapeDtypeStruct((n, h, w, cout_p), jnp.float32),
        ],
        scratch_shapes=[pltpu.VMEM((nb * h * w, tn), jnp.float32),
                        pltpu.VMEM((nb * h * w, tn), jnp.float32)],
        compiler_params=_COMPILER_PARAMS,
    )(xcol, w1p, b1, wscp, bsc)


def conv2_residual(h_act, w2, b2, sc, nb):
    """out = conv3x3(h; w2) + b2 + sc     (bf16 output, (N,H,W,coutP))."""
    n, h, w, hid_p = h_act.shape
    cout_p = w2.shape[-1]
    tn = _lane_tile(cout_p)
    tk = _lane_tile(hid_p)
    grid = (n // nb, cout_p // tn, hid_p // tk)

    return pl.pallas_call(
        _conv2_residual_kernel,
        grid=grid,
        in_specs=[
            pl.BlockSpec((nb, h, w, tk), lambda i, j, k: (i, 0, 0, k)),
            pl.BlockSpec((3, 3, tk, tn), lambda i, j, k: (0, 0, k, j)),
            pl.BlockSpec((1, tn), lambda i, j, k: (0, j)),
            pl.BlockSpec((nb, h, w, tn), lambda i, j, k: (i, 0, 0, j)),
        ],
        out_specs=pl.BlockSpec((nb, h, w, tn), lambda i, j, k: (i, 0, 0, j)),
        out_shape=jax.ShapeDtypeStruct((n, h, w, cout_p), jnp.bfloat16),
        scratch_shapes=[pltpu.VMEM((nb * h * w, tn), jnp.float32)],
        compiler_params=_COMPILER_PARAMS,
    )(h_act, w2, b2, sc)


# ------------------------------- glue (JAX) ---------------------------------

def spectral_norm_weight(w_oihw, u, eps=1e-12):
    """SNConv2d.W_(): one power iteration (num_svs=1, num_itrs=1), w / sv."""
    out_c = w_oihw.shape[0]
    wm = w_oihw.reshape(out_c, -1)
    v = u @ wm
    v = v / jnp.maximum(jnp.linalg.norm(v), eps)
    u2 = v @ wm.T
    u2 = u2 / jnp.maximum(jnp.linalg.norm(u2), eps)
    sv = jnp.sum((v @ wm.T) * u2)
    return w_oihw / sv


def init_params(key, cin, cout):
    hid = cout  # wide=True
    ks = jax.random.split(key, 9)
    w1 = 0.05 * jax.random.normal(ks[0], (hid, cin, 3, 3), jnp.float32)   # OIHW
    u1 = jax.random.normal(ks[1], (1, hid), jnp.float32)
    w2 = 0.05 * jax.random.normal(ks[2], (cout, hid, 3, 3), jnp.float32)
    u2 = jax.random.normal(ks[3], (1, cout), jnp.float32)
    wsc = 0.05 * jax.random.normal(ks[4], (cout, cin, 1, 1), jnp.float32)
    usc = jax.random.normal(ks[5], (1, cout), jnp.float32)
    b1 = 0.05 * jax.random.normal(ks[6], (1, hid), jnp.float32)
    b2 = 0.05 * jax.random.normal(ks[7], (1, cout), jnp.float32)
    bsc = 0.05 * jax.random.normal(ks[8], (1, cout), jnp.float32)
    return {
        "w1": jnp.transpose(spectral_norm_weight(w1, u1), (2, 3, 1, 0)),   # HWIO
        "w2": jnp.transpose(spectral_norm_weight(w2, u2), (2, 3, 1, 0)),   # HWIO
        "wsc": spectral_norm_weight(wsc, usc)[:, :, 0, 0].T,               # (cin, cout)
        "b1": b1, "b2": b2, "bsc": bsc,
    }


def dblock_forward(x_nchw, p):
    """DBlock.forward(x): conv2(relu(conv1(x))) + conv_sc(x)  (preactivation=False)."""
    x = jnp.transpose(x_nchw, (0, 2, 3, 1)).astype(jnp.float32)     # NCHW -> NHWC
    n, h, w, cin = x.shape
    hid = p["w1"].shape[-1]
    cout = p["w2"].shape[-1]
    hid_p, cout_p = _pad_ch(hid), _pad_ch(cout)
    k1 = 9 * cin
    k1_p = _pad_ch(k1)
    nb = _batch_block(n, h * w)

    # conv1 input as a tap-packed im2col: K = 9*cin padded once to a lane-dense
    # width (instead of padding cin to 128 per tap -> ~9x less zero waste).
    # TODO(synk): for large cin this inflates x by 9x in HBM; a halo-tile
    # kernel-1 variant (like kernel 2's) should be used there instead.
    xsp = jnp.pad(x, ((0, 0), (1, 1), (1, 1), (0, 0)))
    taps = [xsp[:, dy:dy + h, dx:dx + w, :] for dy in range(3) for dx in range(3)]
    xcol = jnp.concatenate(taps, axis=-1)                             # (n,h,w,9*cin)
    xcol = jnp.pad(xcol, ((0, 0), (0, 0), (0, 0), (0, k1_p - k1))).astype(jnp.bfloat16)

    # weights / biases in packed, channel-padded, bf16 layouts
    w1p = p["w1"].reshape(k1, hid)                                    # (dy,dx,c) rows
    w1p = jnp.pad(w1p, ((0, k1_p - k1), (0, hid_p - hid))).astype(jnp.bfloat16)
    b1 = jnp.pad(p["b1"], ((0, 0), (0, hid_p - hid)))
    # 1x1 shortcut weight embedded at the center-tap rows of the packed K
    wscp = jnp.zeros((k1_p, cout_p), jnp.float32)
    wscp = wscp.at[4 * cin:5 * cin, :cout].set(p["wsc"]).astype(jnp.bfloat16)
    bsc = jnp.pad(p["bsc"], ((0, 0), (0, cout_p - cout)))
    w2 = jnp.pad(p["w2"], ((0, 0), (0, 0), (0, hid_p - hid),
                           (0, cout_p - cout))).astype(jnp.bfloat16)
    b2 = jnp.pad(p["b2"], ((0, 0), (0, cout_p - cout)))

    # h = relu(conv1(x)); sc = conv_sc(x)        (one fused kernel)
    h_act, sc = conv1_shortcut(xcol, w1p, b1, wscp, bsc, nb)
    # out = conv2(h) + sc                         (residual fused, bf16 out)
    out = conv2_residual(h_act, w2, b2, sc, nb)
    return jnp.transpose(out[..., :cout], (0, 3, 1, 2)).astype(jnp.float32)


# ---------------------------- pure-JAX reference -----------------------------

def ref_forward(x_nchw, p):
    """Same numerical recipe (bf16 MXU inputs, f32 accum, bf16 h / bf16 output)."""
    x = jnp.transpose(x_nchw, (0, 2, 3, 1)).astype(jnp.float32)
    xb = x.astype(jnp.bfloat16)

    def conv3(a_bf16, w, b):
        y = jax.lax.conv_general_dilated(
            a_bf16, w.astype(jnp.bfloat16), (1, 1), "SAME",
            dimension_numbers=("NHWC", "HWIO", "NHWC"),
            preferred_element_type=jnp.float32)
        return y + b.reshape(1, 1, 1, -1)

    h = jnp.maximum(conv3(xb, p["w1"], p["b1"]), 0.0).astype(jnp.bfloat16)
    h2 = conv3(h, p["w2"], p["b2"])
    sc = jax.lax.dot_general(xb.reshape(-1, xb.shape[-1]),
                             p["wsc"].astype(jnp.bfloat16),
                             (((1,), (0,)), ((), ())),
                             preferred_element_type=jnp.float32)
    sc = sc.reshape(x.shape[0], x.shape[1], x.shape[2], -1) + p["bsc"].reshape(1, 1, 1, -1)
    out = (h2 + sc).astype(jnp.bfloat16).astype(jnp.float32)   # parity with bf16 store
    return jnp.transpose(out, (0, 3, 1, 2))


# ---------------------------------- main -------------------------------------

if __name__ == "__main__":
    key = jax.random.PRNGKey(0)
    kx, kp = jax.random.split(key)

    N, Cin, Cout, H, W = 2, 4, 8, 16, 16
    x = jax.random.normal(kx, (N, Cin, H, W), jnp.float32)   # NCHW like PyTorch
    params = init_params(kp, Cin, Cout)

    out = jax.block_until_ready(jax.jit(dblock_forward)(x, params))
    ref = jax.block_until_ready(ref_forward(x, params))

    assert out.shape == (N, Cout, H, W)
    # bf16 MXU recipe on both sides: tolerance covers bf16 rounding of the
    # intermediates plus accumulation-order differences.
    np.testing.assert_allclose(np.asarray(out), np.asarray(ref), atol=5e-3, rtol=2e-2)

    print("KERNEL_OK")
</pallas_src>

<mosaic_0001>
module attributes {stable_mosaic.version = 11 : i64} {
  func.func @_conv1_shortcut_kernel(%arg0: i32, %arg1: i32, %arg2: i32, %arg3: memref<2x16x16x128xbf16, #tpu.memory_space<vmem>>, %arg4: memref<128x128xbf16, #tpu.memory_space<vmem>>, %arg5: memref<1x128xf32, #tpu.memory_space<vmem>>, %arg6: memref<128x128xbf16, #tpu.memory_space<vmem>>, %arg7: memref<1x128xf32, #tpu.memory_space<vmem>>, %arg8: memref<2x16x16x128xbf16, #tpu.memory_space<vmem>>, %arg9: memref<2x16x16x128xf32, #tpu.memory_space<vmem>>, %arg10: memref<512x128xf32, #tpu.memory_space<vmem>>, %arg11: memref<512x128xf32, #tpu.memory_space<vmem>>) attributes {dimension_semantics = [#tpu.dimension_semantics<parallel>, #tpu.dimension_semantics<parallel>, #tpu.dimension_semantics<arbitrary>], iteration_bounds = array<i64: 1, 1, 1>, scalar_prefetch = 0 : i64, scratch_operands = 2 : i64, tpu.core_type = #tpu.core_type<tc>, window_params = [{transform_indices = @transform_0, window_bounds = array<i64: 2, 16, 16, 128>}, {transform_indices = @transform_1, window_bounds = array<i64: 128, 128>}, {transform_indices = @transform_2, window_bounds = array<i64: 1, 128>}, {transform_indices = @transform_3, window_bounds = array<i64: 128, 128>}, {transform_indices = @transform_4, window_bounds = array<i64: 1, 128>}, {transform_indices = @transform_5, window_bounds = array<i64: 2, 16, 16, 128>}, {transform_indices = @transform_6, window_bounds = array<i64: 2, 16, 16, 128>}]} {
    %c0_i32 = arith.constant 0 : i32
    %0 = arith.cmpi eq, %arg2, %c0_i32 : i32
    %1 = arith.extui %0 : i1 to i32
    %c0_i32_0 = arith.constant 0 : i32
    %2 = arith.cmpi ne, %1, %c0_i32_0 : i32
    scf.if %2 {
      %cst_19 = arith.constant 0.000000e+00 : f32
      %18 = vector.broadcast %cst_19 : f32 to vector<512x128xf32>
      %c0_20 = arith.constant 0 : index
      %c0_21 = arith.constant 0 : index
      %19 = vector.load %arg10[%c0_20, %c0_21] : memref<512x128xf32, #tpu.memory_space<vmem>>, vector<512x128xf32>
      tpu.vector_store %arg10[%c0_20, %c0_21], %18 {strides = array<i32>} : memref<512x128xf32, #tpu.memory_space<vmem>>, vector<512x128xf32>,
      %cst_22 = arith.constant 0.000000e+00 : f32
      %20 = vector.broadcast %cst_22 : f32 to vector<512x128xf32>
      %c0_23 = arith.constant 0 : index
      %c0_24 = arith.constant 0 : index
      %21 = vector.load %arg11[%c0_23, %c0_24] : memref<512x128xf32, #tpu.memory_space<vmem>>, vector<512x128xf32>
      tpu.vector_store %arg11[%c0_23, %c0_24], %20 {strides = array<i32>} : memref<512x128xf32, #tpu.memory_space<vmem>>, vector<512x128xf32>,
    } else {
    }
    %c0 = arith.constant 0 : index
    %c0_1 = arith.constant 0 : index
    %c0_2 = arith.constant 0 : index
    %c0_3 = arith.constant 0 : index
    %3 = vector.load %arg3[%c0, %c0_1, %c0_2, %c0_3] : memref<2x16x16x128xbf16, #tpu.memory_space<vmem>>, vector<2x16x16x128xbf16>
    %4 = vector.shape_cast %3 : vector<2x16x16x128xbf16> to vector<512x128xbf16>
    %c0_4 = arith.constant 0 : index
    %c0_5 = arith.constant 0 : index
    %5 = vector.load %arg10[%c0_4, %c0_5] : memref<512x128xf32, #tpu.memory_space<vmem>>, vector<512x128xf32>
    %c0_6 = arith.constant 0 : index
    %c0_7 = arith.constant 0 : index
    %6 = vector.load %arg4[%c0_6, %c0_7] : memref<128x128xbf16, #tpu.memory_space<vmem>>, vector<128x128xbf16>
    %cst = arith.constant dense<0.000000e+00> : vector<512x128xf32>
    %7 = tpu.matmul %4, %6, %cst {dimension_numbers = #tpu.dot_dimension_numbers<[1], [0], [0], [1], [0, 0, 1, 1], [], []>} : vector<512x128xbf16>, vector<128x128xbf16>, vector<512x128xf32> -> vector<512x128xf32>
    %8 = arith.addf %5, %7 : vector<512x128xf32>
    %c0_8 = arith.constant 0 : index
    %c0_9 = arith.constant 0 : index
    %9 = vector.load %arg10[%c0_8, %c0_9] : memref<512x128xf32, #tpu.memory_space<vmem>>, vector<512x128xf32>
    tpu.vector_store %arg10[%c0_8, %c0_9], %8 {strides = array<i32>} : memref<512x128xf32, #tpu.memory_space<vmem>>, vector<512x128xf32>,
    %c0_10 = arith.constant 0 : index
    %c0_11 = arith.constant 0 : index
    %10 = vector.load %arg11[%c0_10, %c0_11] : memref<512x128xf32, #tpu.memory_space<vmem>>, vector<512x128xf32>
    %c0_12 = arith.constant 0 : index
    %c0_13 = arith.constant 0 : index
    %11 = vector.load %arg6[%c0_12, %c0_13] : memref<128x128xbf16, #tpu.memory_space<vmem>>, vector<128x128xbf16>
    %cst_14 = arith.constant dense<0.000000e+00> : vector<512x128xf32>
    %12 = tpu.matmul %4, %11, %cst_14 {dimension_numbers = #tpu.dot_dimension_numbers<[1], [0], [0], [1], [0, 0, 1, 1], [], []>} : vector<512x128xbf16>, vector<128x128xbf16>, vector<512x128xf32> -> vector<512x128xf32>
    %13 = arith.addf %10, %12 : vector<512x128xf32>
    %c0_15 = arith.constant 0 : index
    %c0_16 = arith.constant 0 : index
    %14 = vector.load %arg11[%c0_15, %c0_16] : memref<512x128xf32, #tpu.memory_space<vmem>>, vector<512x128xf32>
    tpu.vector_store %arg11[%c0_15, %c0_16], %13 {strides = array<i32>} : memref<512x128xf32, #tpu.memory_space<vmem>>, vector<512x128xf32>,
    %c0_i32_17 = arith.constant 0 : i32
    %15 = arith.cmpi eq, %arg2, %c0_i32_17 : i32
    %16 = arith.extui %15 : i1 to i32
    %c0_i32_18 = arith.constant 0 : i32
    %17 = arith.cmpi ne, %16, %c0_i32_18 : i32
    scf.if %17 {
      %c0_19 = arith.constant 0 : index
      %c0_20 = arith.constant 0 : index
      %18 = vector.load %arg10[%c0_19, %c0_20] : memref<512x128xf32, #tpu.memory_space<vmem>>, vector<512x128xf32>
      %c0_21 = arith.constant 0 : index
      %c0_22 = arith.constant 0 : index
      %19 = vector.load %arg5[%c0_21, %c0_22] : memref<1x128xf32, #tpu.memory_space<vmem>>, vector<1x128xf32>
      %20 = vector.broadcast %19 : vector<1x128xf32> to vector<512x128xf32>
      %21 = arith.addf %18, %20 : vector<512x128xf32>
      %cst_23 = arith.constant 0.000000e+00 : f32
      %22 = vector.broadcast %cst_23 : f32 to vector<512x128xf32>
      %23 = arith.maximumf %21, %22 : vector<512x128xf32>
      %24 = vector.shape_cast %23 : vector<512x128xf32> to vector<2x16x16x128xf32>
      %25 = arith.truncf %24 : vector<2x16x16x128xf32> to vector<2x16x16x128xbf16>
      %c0_24 = arith.constant 0 : index
      %c0_25 = arith.constant 0 : index
      %c0_26 = arith.constant 0 : index
      %c0_27 = arith.constant 0 : index
      %26 = vector.load %arg8[%c0_24, %c0_25, %c0_26, %c0_27] : memref<2x16x16x128xbf16, #tpu.memory_space<vmem>>, vector<2x16x16x128xbf16>
      tpu.vector_store %arg8[%c0_24, %c0_25, %c0_26, %c0_27], %25 {strides = array<i32>} : memref<2x16x16x128xbf16, #tpu.memory_space<vmem>>, vector<2x16x16x128xbf16>,
      %c0_28 = arith.constant 0 : index
      %c0_29 = arith.constant 0 : index
      %27 = vector.load %arg11[%c0_28, %c0_29] : memref<512x128xf32, #tpu.memory_space<vmem>>, vector<512x128xf32>
      %c0_30 = arith.constant 0 : index
      %c0_31 = arith.constant 0 : index
      %28 = vector.load %arg7[%c0_30, %c0_31] : memref<1x128xf32, #tpu.memory_space<vmem>>, vector<1x128xf32>
      %29 = vector.broadcast %28 : vector<1x128xf32> to vector<512x128xf32>
      %30 = arith.addf %27, %29 : vector<512x128xf32>
      %31 = vector.shape_cast %30 : vector<512x128xf32> to vector<2x16x16x128xf32>
      %c0_32 = arith.constant 0 : index
      %c0_33 = arith.constant 0 : index
      %c0_34 = arith.constant 0 : index
      %c0_35 = arith.constant 0 : index
      %32 = vector.load %arg9[%c0_32, %c0_33, %c0_34, %c0_35] : memref<2x16x16x128xf32, #tpu.memory_space<vmem>>, vector<2x16x16x128xf32>
      tpu.vector_store %arg9[%c0_32, %c0_33, %c0_34, %c0_35], %31 {strides = array<i32>} : memref<2x16x16x128xf32, #tpu.memory_space<vmem>>, vector<2x16x16x128xf32>,
    } else {
    }
    return
  }
  func.func @transform_0(%arg0: i32, %arg1: i32, %arg2: i32) -> (i32, i32, i32, i32) {
    %c0_i32 = arith.constant 0 : i32
    %c0_i32_0 = arith.constant 0 : i32
    %c0_i32_1 = arith.constant 0 : i32
    return %arg0, %c0_i32, %c0_i32_0, %arg2 : i32, i32, i32, i32
  }
  func.func @transform_1(%arg0: i32, %arg1: i32, %arg2: i32) -> (i32, i32) {
    %c0_i32 = arith.constant 0 : i32
    return %arg2, %arg1 : i32, i32
  }
  func.func @transform_2(%arg0: i32, %arg1: i32, %arg2: i32) -> (i32, i32) {
    %c0_i32 = arith.constant 0 : i32
    %c0_i32_0 = arith.constant 0 : i32
    return %c0_i32, %arg1 : i32, i32
  }
  func.func @transform_3(%arg0: i32, %arg1: i32, %arg2: i32) -> (i32, i32) {
    %c0_i32 = arith.constant 0 : i32
    return %arg2, %arg1 : i32, i32
  }
  func.func @transform_4(%arg0: i32, %arg1: i32, %arg2: i32) -> (i32, i32) {
    %c0_i32 = arith.constant 0 : i32
    %c0_i32_0 = arith.constant 0 : i32
    return %c0_i32, %arg1 : i32, i32
  }
  func.func @transform_5(%arg0: i32, %arg1: i32, %arg2: i32) -> (i32, i32, i32, i32) {
    %c0_i32 = arith.constant 0 : i32
    %c0_i32_0 = arith.constant 0 : i32
    %c0_i32_1 = arith.constant 0 : i32
    return %arg0, %c0_i32, %c0_i32_0, %arg1 : i32, i32, i32, i32
  }
  func.func @transform_6(%arg0: i32, %arg1: i32, %arg2: i32) -> (i32, i32, i32, i32) {
    %c0_i32 = arith.constant 0 : i32
    %c0_i32_0 = arith.constant 0 : i32
    %c0_i32_1 = arith.constant 0 : i32
    return %arg0, %c0_i32, %c0_i32_0, %arg1 : i32, i32, i32, i32
  }
}

module attributes {stable_mosaic.version = 11 : i64} {
  func.func @_conv2_residual_kernel(%arg0: i32, %arg1: i32, %arg2: i32, %arg3: memref<2x16x16x128xbf16, #tpu.memory_space<vmem>>, %arg4: memref<3x3x128x128xbf16, #tpu.memory_space<vmem>>, %arg5: memref<1x128xf32, #tpu.memory_space<vmem>>, %arg6: memref<2x16x16x128xf32, #tpu.memory_space<vmem>>, %arg7: memref<2x16x16x128xbf16, #tpu.memory_space<vmem>>, %arg8: memref<512x128xf32, #tpu.memory_space<vmem>>) attributes {dimension_semantics = [#tpu.dimension_semantics<parallel>, #tpu.dimension_semantics<parallel>, #tpu.dimension_semantics<arbitrary>], iteration_bounds = array<i64: 1, 1, 1>, scalar_prefetch = 0 : i64, scratch_operands = 1 : i64, tpu.core_type = #tpu.core_type<tc>, window_params = [{transform_indices = @transform_0, window_bounds = array<i64: 2, 16, 16, 128>}, {transform_indices = @transform_1, window_bounds = array<i64: 3, 3, 128, 128>}, {transform_indices = @transform_2, window_bounds = array<i64: 1, 128>}, {transform_indices = @transform_3, window_bounds = array<i64: 2, 16, 16, 128>}, {transform_indices = @transform_4, window_bounds = array<i64: 2, 16, 16, 128>}]} {
    %c0_i32 = arith.constant 0 : i32
    %0 = arith.cmpi eq, %arg2, %c0_i32 : i32
    %1 = arith.extui %0 : i1 to i32
    %c0_i32_0 = arith.constant 0 : i32
    %2 = arith.cmpi ne, %1, %c0_i32_0 : i32
    scf.if %2 {
      %c0_16 = arith.constant 0 : index
      %c0_17 = arith.constant 0 : index
      %c0_18 = arith.constant 0 : index
      %c0_19 = arith.constant 0 : index
      %30 = vector.load %arg6[%c0_16, %c0_17, %c0_18, %c0_19] : memref<2x16x16x128xf32, #tpu.memory_space<vmem>>, vector<2x16x16x128xf32>
      %31 = vector.shape_cast %30 : vector<2x16x16x128xf32> to vector<512x128xf32>
      %c0_20 = arith.constant 0 : index
      %c0_21 = arith.constant 0 : index
      %32 = vector.load %arg8[%c0_20, %c0_21] : memref<512x128xf32, #tpu.memory_space<vmem>>, vector<512x128xf32>
      tpu.vector_store %arg8[%c0_20, %c0_21], %31 {strides = array<i32>} : memref<512x128xf32, #tpu.memory_space<vmem>>, vector<512x128xf32>,
    } else {
    }
    %c0 = arith.constant 0 : index
    %c0_1 = arith.constant 0 : index
    %c0_2 = arith.constant 0 : index
    %c0_3 = arith.constant 0 : index
    %3 = vector.load %arg3[%c0, %c0_1, %c0_2, %c0_3] : memref<2x16x16x128xbf16, #tpu.memory_space<vmem>>, vector<2x16x16x128xbf16>
    %4 = arith.extf %3 : vector<2x16x16x128xbf16> to vector<2x16x16x128xf32>
    %cst = arith.constant 0.000000e+00 : f32
    %5 = vector.broadcast %cst : f32 to vector<2x16x8x128xf32>
    %6 = tpu.concatenate %5, %4, %5 in 2 : vector<2x16x8x128xf32>, vector<2x16x16x128xf32>, vector<2x16x8x128xf32> -> vector<2x16x32x128xf32>
    %cst_4 = arith.constant 0.000000e+00 : f32
    %7 = vector.broadcast %cst_4 : f32 to vector<2x1x32x128xf32>
    %8 = tpu.concatenate %7, %6, %7 in 1 : vector<2x1x32x128xf32>, vector<2x16x32x128xf32>, vector<2x1x32x128xf32> -> vector<2x18x32x128xf32>
    %9 = vector.extract_strided_slice %8 {offsets = [0, 0, 7, 0], sizes = [2, 16, 16, 128], strides = [1, 1, 1, 1]} : vector<2x18x32x128xf32> to vector<2x16x16x128xf32>
    %10 = vector.extract_strided_slice %8 {offsets = [0, 0, 8, 0], sizes = [2, 16, 16, 128], strides = [1, 1, 1, 1]} : vector<2x18x32x128xf32> to vector<2x16x16x128xf32>
    %11 = vector.extract_strided_slice %8 {offsets = [0, 0, 9, 0], sizes = [2, 16, 16, 128], strides = [1, 1, 1, 1]} : vector<2x18x32x128xf32> to vector<2x16x16x128xf32>
    %12 = vector.extract_strided_slice %8 {offsets = [0, 1, 7, 0], sizes = [2, 16, 16, 128], strides = [1, 1, 1, 1]} : vector<2x18x32x128xf32> to vector<2x16x16x128xf32>
    %13 = vector.extract_strided_slice %8 {offsets = [0, 1, 8, 0], sizes = [2, 16, 16, 128], strides = [1, 1, 1, 1]} : vector<2x18x32x128xf32> to vector<2x16x16x128xf32>
    %14 = vector.extract_strided_slice %8 {offsets = [0, 1, 9, 0], sizes = [2, 16, 16, 128], strides = [1, 1, 1, 1]} : vector<2x18x32x128xf32> to vector<2x16x16x128xf32>
    %15 = vector.extract_strided_slice %8 {offsets = [0, 2, 7, 0], sizes = [2, 16, 16, 128], strides = [1, 1, 1, 1]} : vector<2x18x32x128xf32> to vector<2x16x16x128xf32>
    %16 = vector.extract_strided_slice %8 {offsets = [0, 2, 8, 0], sizes = [2, 16, 16, 128], strides = [1, 1, 1, 1]} : vector<2x18x32x128xf32> to vector<2x16x16x128xf32>
    %17 = vector.extract_strided_slice %8 {offsets = [0, 2, 9, 0], sizes = [2, 16, 16, 128], strides = [1, 1, 1, 1]} : vector<2x18x32x128xf32> to vector<2x16x16x128xf32>
    %18 = tpu.concatenate %9, %10, %11, %12, %13, %14, %15, %16, %17 in 3 : vector<2x16x16x128xf32>, vector<2x16x16x128xf32>, vector<2x16x16x128xf32>, vector<2x16x16x128xf32>, vector<2x16x16x128xf32>, vector<2x16x16x128xf32>, vector<2x16x16x128xf32>, vector<2x16x16x128xf32>, vector<2x16x16x128xf32> -> vector<2x16x16x1152xf32>
    %19 = vector.shape_cast %18 : vector<2x16x16x1152xf32> to vector<512x1152xf32>
    %20 = arith.truncf %19 : vector<512x1152xf32> to vector<512x1152xbf16>
    %c0_5 = arith.constant 0 : index
    %c0_6 = arith.constant 0 : index
    %c0_7 = arith.constant 0 : index
    %c0_8 = arith.constant 0 : index
    %21 = vector.load %arg4[%c0_5, %c0_6, %c0_7, %c0_8] : memref<3x3x128x128xbf16, #tpu.memory_space<vmem>>, vector<3x3x128x128xbf16>
    %22 = vector.shape_cast %21 : vector<3x3x128x128xbf16> to vector<1152x128xbf16>
    %c0_9 = arith.constant 0 : index
    %c0_10 = arith.constant 0 : index
    %23 = vector.load %arg8[%c0_9, %c0_10] : memref<512x128xf32, #tpu.memory_space<vmem>>, vector<512x128xf32>
    %cst_11 = arith.constant dense<0.000000e+00> : vector<512x128xf32>
    %24 = tpu.matmul %20, %22, %cst_11 {dimension_numbers = #tpu.dot_dimension_numbers<[1], [0], [0], [1], [0, 0, 1, 1], [], []>} : vector<512x1152xbf16>, vector<1152x128xbf16>, vector<512x128xf32> -> vector<512x128xf32>
    %25 = arith.addf %23, %24 : vector<512x128xf32>
    %c0_12 = arith.constant 0 : index
    %c0_13 = arith.constant 0 : index
    %26 = vector.load %arg8[%c0_12, %c0_13] : memref<512x128xf32, #tpu.memory_space<vmem>>, vector<512x128xf32>
    tpu.vector_store %arg8[%c0_12, %c0_13], %25 {strides = array<i32>} : memref<512x128xf32, #tpu.memory_space<vmem>>, vector<512x128xf32>,
    %c0_i32_14 = arith.constant 0 : i32
    %27 = arith.cmpi eq, %arg2, %c0_i32_14 : i32
    %28 = arith.extui %27 : i1 to i32
    %c0_i32_15 = arith.constant 0 : i32
    %29 = arith.cmpi ne, %28, %c0_i32_15 : i32
    scf.if %29 {
      %c0_16 = arith.constant 0 : index
      %c0_17 = arith.constant 0 : index
      %30 = vector.load %arg8[%c0_16, %c0_17] : memref<512x128xf32, #tpu.memory_space<vmem>>, vector<512x128xf32>
      %c0_18 = arith.constant 0 : index
      %c0_19 = arith.constant 0 : index
      %31 = vector.load %arg5[%c0_18, %c0_19] : memref<1x128xf32, #tpu.memory_space<vmem>>, vector<1x128xf32>
      %32 = vector.broadcast %31 : vector<1x128xf32> to vector<512x128xf32>
      %33 = arith.addf %30, %32 : vector<512x128xf32>
      %34 = vector.shape_cast %33 : vector<512x128xf32> to vector<2x16x16x128xf32>
      %35 = arith.truncf %34 : vector<2x16x16x128xf32> to vector<2x16x16x128xbf16>
      %c0_20 = arith.constant 0 : index
      %c0_21 = arith.constant 0 : index
      %c0_22 = arith.constant 0 : index
      %c0_23 = arith.constant 0 : index
      %36 = vector.load %arg7[%c0_20, %c0_21, %c0_22, %c0_23] : memref<2x16x16x128xbf16, #tpu.memory_space<vmem>>, vector<2x16x16x128xbf16>
      tpu.vector_store %arg7[%c0_20, %c0_21, %c0_22, %c0_23], %35 {strides = array<i32>} : memref<2x16x16x128xbf16, #tpu.memory_space<vmem>>, vector<2x16x16x128xbf16>,
    } else {
    }
    return
  }
  func.func @transform_0(%arg0: i32, %arg1: i32, %arg2: i32) -> (i32, i32, i32, i32) {
    %c0_i32 = arith.constant 0 : i32
    %c0_i32_0 = arith.constant 0 : i32
    %c0_i32_1 = arith.constant 0 : i32
    return %arg0, %c0_i32, %c0_i32_0, %arg2 : i32, i32, i32, i32
  }
  func.func @transform_1(%arg0: i32, %arg1: i32, %arg2: i32) -> (i32, i32, i32, i32) {
    %c0_i32 = arith.constant 0 : i32
    %c0_i32_0 = arith.constant 0 : i32
    %c0_i32_1 = arith.constant 0 : i32
    return %c0_i32, %c0_i32_0, %arg2, %arg1 : i32, i32, i32, i32
  }
  func.func @transform_2(%arg0: i32, %arg1: i32, %arg2: i32) -> (i32, i32) {
    %c0_i32 = arith.constant 0 : i32
    %c0_i32_0 = arith.constant 0 : i32
    return %c0_i32, %arg1 : i32, i32
  }
  func.func @transform_3(%arg0: i32, %arg1: i32, %arg2: i32) -> (i32, i32, i32, i32) {
    %c0_i32 = arith.constant 0 : i32
    %c0_i32_0 = arith.constant 0 : i32
    %c0_i32_1 = arith.constant 0 : i32
    return %arg0, %c0_i32, %c0_i32_0, %arg1 : i32, i32, i32, i32
  }
  func.func @transform_4(%arg0: i32, %arg1: i32, %arg2: i32) -> (i32, i32, i32, i32) {
    %c0_i32 = arith.constant 0 : i32
    %c0_i32_0 = arith.constant 0 : i32
    %c0_i32_1 = arith.constant 0 : i32
    return %arg0, %c0_i32, %c0_i32_0, %arg1 : i32, i32, i32, i32
  }
}

</mosaic_0001>

<bundles_post_ra>
// kernel: dblock_forward.2
= control target key start
LH: loop header
LB: loop body
LE: loop exit
PB: predicated region body
PF: predicated region fallthrough
CT: control target
= control target key end

     0   :  { %s3492_s1 = inlined_call_operand.vmem [shape: bf16[128,128], index: 1, kind: input, shape index: {}]   ;;  %s3493_s3 = inlined_call_operand.vmem [shape: bf16[128,128], index: 3, kind: input, shape index: {}]   ;;  %s3494_s0 = inlined_call_operand.vmem [shape: bf16[2,16,16,128], index: 0, kind: input, shape index: {}]   ;;  %s3495_s4 = inlined_call_operand.vmem [shape: f32[1,128], index: 4, kind: input, shape index: {}]   ;;  %s3496_s2 = inlined_call_operand.vmem [shape: f32[1,128], index: 2, kind: input, shape index: {}]   ;;  %s3497_s6 = inlined_call_operand.vmem [shape: f32[2,16,16,128], index: 6, kind: output, shape index: {1}]   ;;  %s3498_s5 = inlined_call_operand.vmem [shape: bf16[2,16,16,128], index: 5, kind: output, shape index: {0}]  }
   0x1   :  { %v2839_v0 = vld [vmem:[%s3492_s1 + $0x38] sm:$0xff]   ;;  %v2841_v2 = vld [vmem:[%s3492_s1 + $0x30] sm:$0xff]   ;;  %v2843_v4 = vld [vmem:[%s3492_s1 + $0x28] sm:$0xff]  }
   0x2   :  { %v2840_v1 = vld [vmem:[%s3493_s3 + $0x38] sm:$0xff]   ;;  %2679 = vmatprep.subr.bf16.mxu0 %v2839_v0  ;;  %v2842_v3 = vld [vmem:[%s3493_s3 + $0x30] sm:$0xff]   ;;  %v2844_v5 = vld [vmem:[%s3493_s3 + $0x28] sm:$0xff]  }
   0x3   :  { %2759 = vmatprep.subr.bf16.mxu1 %v2840_v1  ;;  %2680 = vmatpush3.bf16.msra.mxu0 %v2839_v0  ;;  %v2845_v6 = vld [vmem:[%s3492_s1 + $0x20] sm:$0xff]   ;;  %v2847_v8 = vld [vmem:[%s3492_s1 + $0x18] sm:$0xff]   ;;  %v2849_v10 = vld [vmem:[%s3492_s1 + $0x10] sm:$0xff]  }
   0x4   :  { %2760 = vmatpush3.bf16.msra.mxu1 %v2840_v1  ;;  %2681 = vmatprep.subr.bf16.mxu0 %v2841_v2  ;;  %v2846_v7 = vld [vmem:[%s3493_s3 + $0x20] sm:$0xff]   ;;  %v2848_v9 = vld [vmem:[%s3493_s3 + $0x18] sm:$0xff]   ;;  %v2850_v12 = vld [vmem:[%s3493_s3 + $0x10] sm:$0xff]  }
   0x5   :  { %2761 = vmatprep.subr.bf16.mxu1 %v2842_v3  ;;  %v2855_v11 = vld [vmem:[%s3494_s0] sm:$0xff]   ;;  %v2851_v13 = vld [vmem:[%s3492_s1 + $0x8] sm:$0xff]   ;;  %v2857_v18 = vld [vmem:[%s3494_s0 + $0x10] sm:$0xff]  }
   0x6   :  { %2695 = vmatprep.mubr.bf16.mxu0 %v2855_v11  ;;  %2775 = vmatprep.mubr.bf16.mxu1 %v2855_v11  ;;  %v2852_v14 = vld [vmem:[%s3493_s3 + $0x8] sm:$0xff]   ;;  %v2853_v15 = vld [vmem:[%s3492_s1] sm:$0xff]   ;;  %v2858_v19 = vld [vmem:[%s3494_s0 + $0x18] sm:$0xff]  }
   0x7   :  { %2682 = vmatpush3.bf16.msra.mxu0 %v2841_v2  ;;  %v2854_v16 = vld [vmem:[%s3493_s3] sm:$0xff]   ;;  %v2856_v17 = vld [vmem:[%s3494_s0 + $0x8] sm:$0xff]   ;;  %v2861_v22 = vld [vmem:[%s3494_s0 + $0x30] sm:$0xff]  }
   0x8   :  { %2762 = vmatpush3.bf16.msra.mxu1 %v2842_v3  ;;  %2683 = vmatprep.subr.bf16.mxu0 %v2843_v4  ;;  %v2859_v20 = vld [vmem:[%s3494_s0 + $0x20] sm:$0xff]   ;;  %v2860_v21 = vld [vmem:[%s3494_s0 + $0x28] sm:$0xff]   ;;  %v2862_v23 = vld [vmem:[%s3494_s0 + $0x38] sm:$0xff]  }
   0x9   :  { %2763 = vmatprep.subr.bf16.mxu1 %v2844_v5  ;;  %v2863_v24 = vld [vmem:[%s3494_s0 + $0x40] sm:$0xff]   ;;  %v2864_v25 = vld [vmem:[%s3494_s0 + $0x48] sm:$0xff]   ;;  %v2865_v26 = vld [vmem:[%s3494_s0 + $0x50] sm:$0xff]  }
   0xa   :  { %v2866_v27 = vld [vmem:[%s3494_s0 + $0x58] sm:$0xff]   ;;  %v2867_v28 = vld [vmem:[%s3494_s0 + $0x60] sm:$0xff]   ;;  %v2868_v29 = vld [vmem:[%s3494_s0 + $0x68] sm:$0xff]  }
   0xb   :  { %2684 = vmatpush3.bf16.msra.mxu0 %v2843_v4  ;;  %v2869_v30 = vld [vmem:[%s3494_s0 + $0x70] sm:$0xff]   ;;  %v2870_v31 = vld [vmem:[%s3494_s0 + $0x78] sm:$0xff]   ;;  %v2871_v32 = vld [vmem:[%s3494_s0 + $0x80] sm:$0xff]  }
   0xc   :  { %2764 = vmatpush3.bf16.msra.mxu1 %v2844_v5  ;;  %2685 = vmatprep.subr.bf16.mxu0 %v2845_v6  ;;  %v2872_v33 = vld [vmem:[%s3494_s0 + $0x88] sm:$0xff]   ;;  %v2873_v34 = vld [vmem:[%s3494_s0 + $0x90] sm:$0xff]   ;;  %v2874_v35 = vld [vmem:[%s3494_s0 + $0x98] sm:$0xff]  }
   0xd   :  { %2765 = vmatprep.subr.bf16.mxu1 %v2846_v7  ;;  %v2875_v36 = vld [vmem:[%s3494_s0 + $0xa0] sm:$0xff]   ;;  %v2876_v37 = vld [vmem:[%s3494_s0 + $0xa8] sm:$0xff]   ;;  %v2877_v38 = vld [vmem:[%s3494_s0 + $0xb0] sm:$0xff]  }
   0xe   :  { %v2878_v39 = vld [vmem:[%s3494_s0 + $0xb8] sm:$0xff]   ;;  %v2879_v40 = vld [vmem:[%s3494_s0 + $0xc0] sm:$0xff]   ;;  %v2880_v41 = vld [vmem:[%s3494_s0 + $0xc8] sm:$0xff]  }
   0xf   :  { %2686 = vmatpush3.bf16.msra.mxu0 %v2845_v6  ;;  %v2881_v42 = vld [vmem:[%s3494_s0 + $0xd0] sm:$0xff]   ;;  %v2882_v43 = vld [vmem:[%s3494_s0 + $0xd8] sm:$0xff]   ;;  %v2883_v44 = vld [vmem:[%s3494_s0 + $0xe0] sm:$0xff]  }
  0x10   :  { %2766 = vmatpush3.bf16.msra.mxu1 %v2846_v7  ;;  %2687 = vmatprep.subr.bf16.mxu0 %v2847_v8  ;;  %v2884_v45 = vld [vmem:[%s3494_s0 + $0xe8] sm:$0xff]   ;;  %v2885_v46 = vld [vmem:[%s3494_s0 + $0xf0] sm:$0xff]   ;;  %v2886_v47 = vld [vmem:[%s3494_s0 + $0xf8] sm:$0xff]  }
  0x11   :  { %2767 = vmatprep.subr.bf16.mxu1 %v2848_v9  ;;  %v3069_v48 = vld [vmem:[%s3495_s4] ss:$0 sm:$0xff] }
  0x12   :  { %v3074_v50 = vld [vmem:[%s3496_s2] ss:$0 sm:$0xff] }
  0x13   :  { %2688 = vmatpush3.bf16.msra.mxu0 %v2847_v8 }
  0x14   :  { %2768 = vmatpush3.bf16.msra.mxu1 %v2848_v9  ;;  %2689 = vmatprep.subr.bf16.mxu0 %v2849_v10 }
  0x15   :  { %2769 = vmatprep.subr.bf16.mxu1 %v2850_v12 }
  0x17   :  { %2690 = vmatpush3.bf16.msra.mxu0 %v2849_v10 }
  0x18   :  { %2770 = vmatpush3.bf16.msra.mxu1 %v2850_v12  ;;  %2691 = vmatprep.subr.bf16.mxu0 %v2851_v13 }
  0x19   :  { %2771 = vmatprep.subr.bf16.mxu1 %v2852_v14 }
  0x1b   :  { %2692 = vmatpush3.bf16.msra.mxu0 %v2851_v13 }
  0x1c   :  { %2772 = vmatpush3.bf16.msra.mxu1 %v2852_v14  ;;  %2693 = vmatprep.subr.bf16.mxu0 %v2853_v15 }
  0x1d   :  { %2773 = vmatprep.subr.bf16.mxu1 %v2854_v16 }
  0x1f   :  { %2694 = vmatpush3.bf16.msra.mxu0 %v2853_v15 }
  0x20   :  { %2774 = vmatpush3.bf16.msra.mxu1 %v2854_v16 }
  0x22   :  { %2696 = vmatmul.mubr.bf16.vlgmr.msra.gmra.mxu0 %v2856_v17 }
  0x23   :  { %2776 = vmatmul.mubr.bf16.vlgmr.msra.gmra.mxu1 %v2856_v17  ;;  %2699 = vmatprep.mubr.bf16.mxu0 %v2857_v18 }
  0x24   :  { %2779 = vmatprep.mubr.bf16.mxu1 %v2857_v18 }
  0x2a   :  { %2700 = vmatmul.mubr.bf16.gmra.mxu0 %v2858_v19 }
  0x2b   :  { %2780 = vmatmul.mubr.bf16.gmra.mxu1 %v2858_v19  ;;  %2703 = vmatprep.mubr.bf16.mxu0 %v2859_v20 }
  0x2c   :  { %2783 = vmatprep.mubr.bf16.mxu1 %v2859_v20 }
  0x32   :  { %2704 = vmatmul.mubr.bf16.gmra.mxu0 %v2860_v21 }
  0x33   :  { %2784 = vmatmul.mubr.bf16.gmra.mxu1 %v2860_v21  ;;  %2707 = vmatprep.mubr.bf16.mxu0 %v2861_v22 }
  0x34   :  { %2787 = vmatprep.mubr.bf16.mxu1 %v2861_v22 }
  0x3a   :  { %2708 = vmatmul.mubr.bf16.gmra.mxu0 %v2862_v23 }
  0x3b   :  { %2788 = vmatmul.mubr.bf16.gmra.mxu1 %v2862_v23  ;;  %2711 = vmatprep.mubr.bf16.mxu0 %v2863_v24 }
  0x3c   :  { %2791 = vmatprep.mubr.bf16.mxu1 %v2863_v24 }
  0x42   :  { %2712 = vmatmul.mubr.bf16.gmra.mxu0 %v2864_v25 }
  0x43   :  { %2792 = vmatmul.mubr.bf16.gmra.mxu1 %v2864_v25  ;;  %2715 = vmatprep.mubr.bf16.mxu0 %v2865_v26 }
  0x44   :  { %2795 = vmatprep.mubr.bf16.mxu1 %v2865_v26 }
  0x4a   :  { %2716 = vmatmul.mubr.bf16.gmra.mxu0 %v2866_v27 }
  0x4b   :  { %2796 = vmatmul.mubr.bf16.gmra.mxu1 %v2866_v27  ;;  %2719 = vmatprep.mubr.bf16.mxu0 %v2867_v28 }
  0x4c   :  { %2799 = vmatprep.mubr.bf16.mxu1 %v2867_v28 }
  0x52   :  { %2720 = vmatmul.mubr.bf16.gmra.mxu0 %v2868_v29 }
  0x53   :  { %2800 = vmatmul.mubr.bf16.gmra.mxu1 %v2868_v29  ;;  %2723 = vmatprep.mubr.bf16.mxu0 %v2869_v30 }
  0x54   :  { %2803 = vmatprep.mubr.bf16.mxu1 %v2869_v30 }
  0x5a   :  { %2724 = vmatmul.mubr.bf16.gmra.mxu0 %v2870_v31 }
  0x5b   :  { %2804 = vmatmul.mubr.bf16.gmra.mxu1 %v2870_v31  ;;  %2727 = vmatprep.mubr.bf16.mxu0 %v2871_v32 }
  0x5c   :  { %2807 = vmatprep.mubr.bf16.mxu1 %v2871_v32 }
  0x62   :  { %2728 = vmatmul.mubr.bf16.gmra.mxu0 %v2872_v33 }
  0x63   :  { %2808 = vmatmul.mubr.bf16.gmra.mxu1 %v2872_v33  ;;  %2731 = vmatprep.mubr.bf16.mxu0 %v2873_v34 }
  0x64   :  { %2811 = vmatprep.mubr.bf16.mxu1 %v2873_v34 }
  0x6a   :  { %2732 = vmatmul.mubr.bf16.gmra.mxu0 %v2874_v35 }
  0x6b   :  { %2812 = vmatmul.mubr.bf16.gmra.mxu1 %v2874_v35  ;;  %2735 = vmatprep.mubr.bf16.mxu0 %v2875_v36 }
  0x6c   :  { %2815 = vmatprep.mubr.bf16.mxu1 %v2875_v36 }
  0x72   :  { %2736 = vmatmul.mubr.bf16.gmra.mxu0 %v2876_v37 }
  0x73   :  { %2816 = vmatmul.mubr.bf16.gmra.mxu1 %v2876_v37  ;;  %2739 = vmatprep.mubr.bf16.mxu0 %v2877_v38 }
  0x74   :  { %2819 = vmatprep.mubr.bf16.mxu1 %v2877_v38 }
  0x7a   :  { %2740 = vmatmul.mubr.bf16.gmra.mxu0 %v2878_v39 }
  0x7b   :  { %2820 = vmatmul.mubr.bf16.gmra.mxu1 %v2878_v39  ;;  %2743 = vmatprep.mubr.bf16.mxu0 %v2879_v40 }
  0x7c   :  { %2823 = vmatprep.mubr.bf16.mxu1 %v2879_v40 }
  0x82   :  { %2744 = vmatmul.mubr.bf16.gmra.mxu0 %v2880_v41 }
  0x83   :  { %2824 = vmatmul.mubr.bf16.gmra.mxu1 %v2880_v41  ;;  %2747 = vmatprep.mubr.bf16.mxu0 %v2881_v42 }
  0x84   :  { %2827 = vmatprep.mubr.bf16.mxu1 %v2881_v42 }
  0x8a   :  { %2748 = vmatmul.mubr.bf16.gmra.mxu0 %v2882_v43 }
  0x8b   :  { %2828 = vmatmul.mubr.bf16.gmra.mxu1 %v2882_v43  ;;  %2751 = vmatprep.mubr.bf16.mxu0 %v2883_v44 }
  0x8c   :  { %2831 = vmatprep.mubr.bf16.mxu1 %v2883_v44 }
  0x92   :  { %2752 = vmatmul.mubr.bf16.gmra.mxu0 %v2884_v45 }
  0x93   :  { %2832 = vmatmul.mubr.bf16.gmra.mxu1 %v2884_v45  ;;  %2755 = vmatprep.mubr.bf16.mxu0 %v2885_v46 }
  0x94   :  { %2835 = vmatprep.mubr.bf16.mxu1 %v2885_v46 }
  0x9a   :  { %2756 = vmatmul.mubr.bf16.gmra.mxu0 %v2886_v47 }
  0x9b   :  { %2836 = vmatmul.mubr.bf16.gmra.mxu1 %v2886_v47 }
  0xe2   :  { %v2697_v49 = vpop.f32.mrf.mxu0 }
  0xe3   :  { %v2777_v51 = vpop.f32.mrf.mxu1  ;;  %v1577_v54 = vadd.f32 %v2697_v49, %v3074_v50 }
  0xe4   :  { %v2096_v52 = vadd.f32 %v2777_v51, %v3069_v48  ;;  %v573_v53 = vpop.f32.mrf.mxu0 }
  0xe5   :  { %v1118_v55 = vpop.f32.mrf.mxu1  ;;  %v1575_v58 = vadd.f32 %v3074_v50, %v573_v53  ;;  %v1641_v63 = vmax.f32 %v1577_v54, 0.0 }
  0xe6   :  { %2160 = vst [vmem:[%s3497_s6 + $0x10] sm:$0xff] %v2096_v52  ;;  %v2094_v56 = vadd.f32 %v3069_v48, %v1118_v55  ;;  %v2698_v57 = vpop.f32.mrf.mxu0 }
  0xe7   :  { %v1578_v59 = vadd.f32 %v2698_v57, %v3074_v50  ;;  %v2778_v60 = vpop.f32.mrf.mxu1  ;;  %v1639_v5 = vmax.f32 %v1575_v58, 0.0 }
  0xe8   :  { %2158 = vst [vmem:[%s3497_s6] sm:$0xff] %v2094_v56  ;;  %v2097_v61 = vadd.f32 %v2778_v60, %v3069_v48  ;;  %v576_v62 = vpop.f32.mrf.mxu0 }
  0xe9   :  { %v1642_v0 = vmax.f32 %v1578_v59, 0.0  ;;  %v1576_v1 = vadd.f32 %v3074_v50, %v576_v62  ;;  %v1121_v2 = vpop.f32.mrf.mxu1 }
  0xea   :  { %2161 = vst [vmem:[%s3497_s6 + $0x18] sm:$0xff] %v2097_v61  ;;  %v2095_v3 = vadd.f32 %v3069_v48, %v1121_v2  ;;  %v2701_v4 = vpop.f32.mrf.mxu0 }
  0xeb   :  { %v2416_v6 = vpack.c.bf16 %v1642_v0, %v1641_v63  ;;  %v1640_v7 = vmax.f32 %v1576_v1, 0.0  ;;  %v2781_v8 = vpop.f32.mrf.mxu1  ;;  %v1581_v12 = vadd.f32 %v2701_v4, %v3074_v50 }
  0xec   :  { %2159 = vst [vmem:[%s3497_s6 + $0x8] sm:$0xff] %v2095_v3  ;;  %v2100_v9 = vadd.f32 %v2781_v8, %v3069_v48  ;;  %v589_v10 = vpop.f32.mrf.mxu0 }
  0xed   :  { %2568 = vst [vmem:[%s3498_s5 + $0x8] sm:$0xff] %v2416_v6   ;;  %v2411_v11 = vpack.c.bf16 %v1640_v7, %v1639_v5  ;;  %v1134_v13 = vpop.f32.mrf.mxu1  ;;  %v1579_v16 = vadd.f32 %v3074_v50, %v589_v10  ;;  %v1645_v21 = vmax.f32 %v1581_v12, 0.0 }
  0xee   :  { %2164 = vst [vmem:[%s3497_s6 + $0x30] sm:$0xff] %v2100_v9  ;;  %v2098_v14 = vadd.f32 %v3069_v48, %v1134_v13  ;;  %v2702_v15 = vpop.f32.mrf.mxu0 }
  0xef   :  { %2412 = vst [vmem:[%s3498_s5] sm:$0xff] %v2411_v11   ;;  %v1582_v17 = vadd.f32 %v2702_v15, %v3074_v50  ;;  %v2782_v18 = vpop.f32.mrf.mxu1  ;;  %v1643_v27 = vmax.f32 %v1579_v16, 0.0 }
  0xf0   :  { %2162 = vst [vmem:[%s3497_s6 + $0x20] sm:$0xff] %v2098_v14  ;;  %v2101_v19 = vadd.f32 %v2782_v18, %v3069_v48  ;;  %v592_v20 = vpop.f32.mrf.mxu0 }
  0xf1   :  { %v1646_v22 = vmax.f32 %v1582_v17, 0.0  ;;  %v1580_v23 = vadd.f32 %v3074_v50, %v592_v20  ;;  %v1137_v24 = vpop.f32.mrf.mxu1 }
  0xf2   :  { %2165 = vst [vmem:[%s3497_s6 + $0x38] sm:$0xff] %v2101_v19  ;;  %v2099_v25 = vadd.f32 %v3069_v48, %v1137_v24  ;;  %v2705_v26 = vpop.f32.mrf.mxu0 }
  0xf3   :  { %v2426_v28 = vpack.c.bf16 %v1646_v22, %v1645_v21  ;;  %v1644_v29 = vmax.f32 %v1580_v23, 0.0  ;;  %v2785_v30 = vpop.f32.mrf.mxu1  ;;  %v1585_v34 = vadd.f32 %v2705_v26, %v3074_v50 }
  0xf4   :  { %2163 = vst [vmem:[%s3497_s6 + $0x28] sm:$0xff] %v2099_v25  ;;  %v2104_v31 = vadd.f32 %v2785_v30, %v3069_v48  ;;  %v605_v32 = vpop.f32.mrf.mxu0 }
  0xf5   :  { %2570 = vst [vmem:[%s3498_s5 + $0x18] sm:$0xff] %v2426_v28   ;;  %v2421_v33 = vpack.c.bf16 %v1644_v29, %v1643_v27  ;;  %v1150_v35 = vpop.f32.mrf.mxu1  ;;  %v1583_v38 = vadd.f32 %v3074_v50, %v605_v32  ;;  %v1649_v43 = vmax.f32 %v1585_v34, 0.0 }
  0xf6   :  { %2168 = vst [vmem:[%s3497_s6 + $0x50] sm:$0xff] %v2104_v31  ;;  %v2102_v36 = vadd.f32 %v3069_v48, %v1150_v35  ;;  %v2706_v37 = vpop.f32.mrf.mxu0 }
  0xf7   :  { %2569 = vst [vmem:[%s3498_s5 + $0x10] sm:$0xff] %v2421_v33   ;;  %v1586_v39 = vadd.f32 %v2706_v37, %v3074_v50  ;;  %v2786_v40 = vpop.f32.mrf.mxu1  ;;  %v1647_v51 = vmax.f32 %v1583_v38, 0.0 }
  0xf8   :  { %2166 = vst [vmem:[%s3497_s6 + $0x40] sm:$0xff] %v2102_v36  ;;  %v2105_v41 = vadd.f32 %v2786_v40, %v3069_v48  ;;  %v608_v42 = vpop.f32.mrf.mxu0 }
  0xf9   :  { %v1650_v44 = vmax.f32 %v1586_v39, 0.0  ;;  %v1584_v45 = vadd.f32 %v3074_v50, %v608_v42  ;;  %v1153_v46 = vpop.f32.mrf.mxu1 }
  0xfa   :  { %2169 = vst [vmem:[%s3497_s6 + $0x58] sm:$0xff] %v2105_v41  ;;  %v2103_v47 = vadd.f32 %v3069_v48, %v1153_v46  ;;  %v2709_v49 = vpop.f32.mrf.mxu0 }
  0xfb   :  { %v2436_v52 = vpack.c.bf16 %v1650_v44, %v1649_v43  ;;  %v1648_v53 = vmax.f32 %v1584_v45, 0.0  ;;  %v2789_v54 = vpop.f32.mrf.mxu1  ;;  %v1589_v58 = vadd.f32 %v2709_v49, %v3074_v50 }
  0xfc   :  { %2167 = vst [vmem:[%s3497_s6 + $0x48] sm:$0xff] %v2103_v47  ;;  %v2108_v55 = vadd.f32 %v2789_v54, %v3069_v48  ;;  %v621_v56 = vpop.f32.mrf.mxu0 }
  0xfd   :  { %2572 = vst [vmem:[%s3498_s5 + $0x28] sm:$0xff] %v2436_v52   ;;  %v2431_v57 = vpack.c.bf16 %v1648_v53, %v1647_v51  ;;  %v1166_v59 = vpop.f32.mrf.mxu1  ;;  %v1587_v62 = vadd.f32 %v3074_v50, %v621_v56  ;;  %v1653_v3 = vmax.f32 %v1589_v58, 0.0 }
  0xfe   :  { %2172 = vst [vmem:[%s3497_s6 + $0x70] sm:$0xff] %v2108_v55  ;;  %v2106_v60 = vadd.f32 %v3069_v48, %v1166_v59  ;;  %v2710_v61 = vpop.f32.mrf.mxu0 }
  0xff   :  { %2571 = vst [vmem:[%s3498_s5 + $0x20] sm:$0xff] %v2431_v57   ;;  %v1590_v63 = vadd.f32 %v2710_v61, %v3074_v50  ;;  %v2790_v0 = vpop.f32.mrf.mxu1  ;;  %v1651_v9 = vmax.f32 %v1587_v62, 0.0 }
 0x100   :  { %2170 = vst [vmem:[%s3497_s6 + $0x60] sm:$0xff] %v2106_v60  ;;  %v2109_v1 = vadd.f32 %v2790_v0, %v3069_v48  ;;  %v624_v2 = vpop.f32.mrf.mxu0 }
 0x101   :  { %v1654_v4 = vmax.f32 %v1590_v63, 0.0  ;;  %v1588_v5 = vadd.f32 %v3074_v50, %v624_v2  ;;  %v1169_v6 = vpop.f32.mrf.mxu1 }
 0x102   :  { %2173 = vst [vmem:[%s3497_s6 + $0x78] sm:$0xff] %v2109_v1  ;;  %v2107_v7 = vadd.f32 %v3069_v48, %v1169_v6  ;;  %v2713_v8 = vpop.f32.mrf.mxu0 }
 0x103   :  { %v2446_v10 = vpack.c.bf16 %v1654_v4, %v1653_v3  ;;  %v1652_v11 = vmax.f32 %v1588_v5, 0.0  ;;  %v2793_v12 = vpop.f32.mrf.mxu1  ;;  %v1593_v16 = vadd.f32 %v2713_v8, %v3074_v50 }
 0x104   :  { %2171 = vst [vmem:[%s3497_s6 + $0x68] sm:$0xff] %v2107_v7  ;;  %v2112_v13 = vadd.f32 %v2793_v12, %v3069_v48  ;;  %v637_v14 = vpop.f32.mrf.mxu0 }
 0x105   :  { %2574 = vst [vmem:[%s3498_s5 + $0x38] sm:$0xff] %v2446_v10   ;;  %v2441_v15 = vpack.c.bf16 %v1652_v11, %v1651_v9  ;;  %v1182_v17 = vpop.f32.mrf.mxu1  ;;  %v1591_v20 = vadd.f32 %v3074_v50, %v637_v14  ;;  %v1657_v25 = vmax.f32 %v1593_v16, 0.0 }
 0x106   :  { %2176 = vst [vmem:[%s3497_s6 + $0x90] sm:$0xff] %v2112_v13  ;;  %v2110_v18 = vadd.f32 %v3069_v48, %v1182_v17  ;;  %v2714_v19 = vpop.f32.mrf.mxu0 }
 0x107   :  { %2573 = vst [vmem:[%s3498_s5 + $0x30] sm:$0xff] %v2441_v15   ;;  %v1594_v21 = vadd.f32 %v2714_v19, %v3074_v50  ;;  %v2794_v22 = vpop.f32.mrf.mxu1  ;;  %v1655_v31 = vmax.f32 %v1591_v20, 0.0 }
 0x108   :  { %2174 = vst [vmem:[%s3497_s6 + $0x80] sm:$0xff] %v2110_v18  ;;  %v2113_v23 = vadd.f32 %v2794_v22, %v3069_v48  ;;  %v640_v24 = vpop.f32.mrf.mxu0 }
 0x109   :  { %v1658_v26 = vmax.f32 %v1594_v21, 0.0  ;;  %v1592_v27 = vadd.f32 %v3074_v50, %v640_v24  ;;  %v1185_v28 = vpop.f32.mrf.mxu1 }
 0x10a   :  { %2177 = vst [vmem:[%s3497_s6 + $0x98] sm:$0xff] %v2113_v23  ;;  %v2111_v29 = vadd.f32 %v3069_v48, %v1185_v28  ;;  %v2717_v30 = vpop.f32.mrf.mxu0 }
 0x10b   :  { %v2456_v32 = vpack.c.bf16 %v1658_v26, %v1657_v25  ;;  %v1656_v33 = vmax.f32 %v1592_v27, 0.0  ;;  %v2797_v34 = vpop.f32.mrf.mxu1  ;;  %v1597_v38 = vadd.f32 %v2717_v30, %v3074_v50 }
 0x10c   :  { %2175 = vst [vmem:[%s3497_s6 + $0x88] sm:$0xff] %v2111_v29  ;;  %v2116_v35 = vadd.f32 %v2797_v34, %v3069_v48  ;;  %v653_v36 = vpop.f32.mrf.mxu0 }
 0x10d   :  { %2576 = vst [vmem:[%s3498_s5 + $0x48] sm:$0xff] %v2456_v32   ;;  %v2451_v37 = vpack.c.bf16 %v1656_v33, %v1655_v31  ;;  %v1198_v39 = vpop.f32.mrf.mxu1  ;;  %v1595_v42 = vadd.f32 %v3074_v50, %v653_v36  ;;  %v1661_v47 = vmax.f32 %v1597_v38, 0.0 }
 0x10e   :  { %2180 = vst [vmem:[%s3497_s6 + $0xb0] sm:$0xff] %v2116_v35  ;;  %v2114_v40 = vadd.f32 %v3069_v48, %v1198_v39  ;;  %v2718_v41 = vpop.f32.mrf.mxu0 }
 0x10f   :  { %2575 = vst [vmem:[%s3498_s5 + $0x40] sm:$0xff] %v2451_v37   ;;  %v1598_v43 = vadd.f32 %v2718_v41, %v3074_v50  ;;  %v2798_v44 = vpop.f32.mrf.mxu1  ;;  %v1659_v55 = vmax.f32 %v1595_v42, 0.0 }
 0x110   :  { %2178 = vst [vmem:[%s3497_s6 + $0xa0] sm:$0xff] %v2114_v40  ;;  %v2117_v45 = vadd.f32 %v2798_v44, %v3069_v48  ;;  %v656_v46 = vpop.f32.mrf.mxu0 }
 0x111   :  { %v1662_v49 = vmax.f32 %v1598_v43, 0.0  ;;  %v1596_v51 = vadd.f32 %v3074_v50, %v656_v46  ;;  %v1201_v52 = vpop.f32.mrf.mxu1 }
 0x112   :  { %2181 = vst [vmem:[%s3497_s6 + $0xb8] sm:$0xff] %v2117_v45  ;;  %v2115_v53 = vadd.f32 %v3069_v48, %v1201_v52  ;;  %v2721_v54 = vpop.f32.mrf.mxu0 }
 0x113   :  { %v2466_v56 = vpack.c.bf16 %v1662_v49, %v1661_v47  ;;  %v1660_v57 = vmax.f32 %v1596_v51, 0.0  ;;  %v2801_v58 = vpop.f32.mrf.mxu1  ;;  %v1601_v62 = vadd.f32 %v2721_v54, %v3074_v50 }
 0x114   :  { %2179 = vst [vmem:[%s3497_s6 + $0xa8] sm:$0xff] %v2115_v53  ;;  %v2120_v59 = vadd.f32 %v2801_v58, %v3069_v48  ;;  %v669_v60 = vpop.f32.mrf.mxu0 }
 0x115   :  { %2578 = vst [vmem:[%s3498_s5 + $0x58] sm:$0xff] %v2466_v56   ;;  %v2461_v61 = vpack.c.bf16 %v1660_v57, %v1659_v55  ;;  %v1214_v63 = vpop.f32.mrf.mxu1  ;;  %v1599_v2 = vadd.f32 %v3074_v50, %v669_v60  ;;  %v1665_v7 = vmax.f32 %v1601_v62, 0.0 }
 0x116   :  { %2184 = vst [vmem:[%s3497_s6 + $0xd0] sm:$0xff] %v2120_v59  ;;  %v2118_v0 = vadd.f32 %v3069_v48, %v1214_v63  ;;  %v2722_v1 = vpop.f32.mrf.mxu0 }
 0x117   :  { %2577 = vst [vmem:[%s3498_s5 + $0x50] sm:$0xff] %v2461_v61   ;;  %v1602_v3 = vadd.f32 %v2722_v1, %v3074_v50  ;;  %v2802_v4 = vpop.f32.mrf.mxu1  ;;  %v1663_v13 = vmax.f32 %v1599_v2, 0.0 }
 0x118   :  { %2182 = vst [vmem:[%s3497_s6 + $0xc0] sm:$0xff] %v2118_v0  ;;  %v2121_v5 = vadd.f32 %v2802_v4, %v3069_v48  ;;  %v672_v6 = vpop.f32.mrf.mxu0 }
 0x119   :  { %v1666_v8 = vmax.f32 %v1602_v3, 0.0  ;;  %v1600_v9 = vadd.f32 %v3074_v50, %v672_v6  ;;  %v1217_v10 = vpop.f32.mrf.mxu1 }
 0x11a   :  { %2185 = vst [vmem:[%s3497_s6 + $0xd8] sm:$0xff] %v2121_v5  ;;  %v2119_v11 = vadd.f32 %v3069_v48, %v1217_v10  ;;  %v2725_v12 = vpop.f32.mrf.mxu0 }
 0x11b   :  { %v2476_v14 = vpack.c.bf16 %v1666_v8, %v1665_v7  ;;  %v1664_v15 = vmax.f32 %v1600_v9, 0.0  ;;  %v2805_v16 = vpop.f32.mrf.mxu1  ;;  %v1605_v20 = vadd.f32 %v2725_v12, %v3074_v50 }
 0x11c   :  { %2183 = vst [vmem:[%s3497_s6 + $0xc8] sm:$0xff] %v2119_v11  ;;  %v2124_v17 = vadd.f32 %v2805_v16, %v3069_v48  ;;  %v685_v18 = vpop.f32.mrf.mxu0 }
 0x11d   :  { %2580 = vst [vmem:[%s3498_s5 + $0x68] sm:$0xff] %v2476_v14   ;;  %v2471_v19 = vpack.c.bf16 %v1664_v15, %v1663_v13  ;;  %v1230_v21 = vpop.f32.mrf.mxu1  ;;  %v1603_v24 = vadd.f32 %v3074_v50, %v685_v18  ;;  %v1669_v29 = vmax.f32 %v1605_v20, 0.0 }
 0x11e   :  { %2188 = vst [vmem:[%s3497_s6 + $0xf0] sm:$0xff] %v2124_v17  ;;  %v2122_v22 = vadd.f32 %v3069_v48, %v1230_v21  ;;  %v2726_v23 = vpop.f32.mrf.mxu0 }
 0x11f   :  { %2579 = vst [vmem:[%s3498_s5 + $0x60] sm:$0xff] %v2471_v19   ;;  %v1606_v25 = vadd.f32 %v2726_v23, %v3074_v50  ;;  %v2806_v26 = vpop.f32.mrf.mxu1  ;;  %v1667_v35 = vmax.f32 %v1603_v24, 0.0 }
 0x120   :  { %2186 = vst [vmem:[%s3497_s6 + $0xe0] sm:$0xff] %v2122_v22  ;;  %v2125_v27 = vadd.f32 %v2806_v26, %v3069_v48  ;;  %v688_v28 = vpop.f32.mrf.mxu0 }
 0x121   :  { %v1670_v30 = vmax.f32 %v1606_v25, 0.0  ;;  %v1604_v31 = vadd.f32 %v3074_v50, %v688_v28  ;;  %v1233_v32 = vpop.f32.mrf.mxu1 }
 0x122   :  { %2189 = vst [vmem:[%s3497_s6 + $0xf8] sm:$0xff] %v2125_v27  ;;  %v2123_v33 = vadd.f32 %v3069_v48, %v1233_v32  ;;  %v2729_v34 = vpop.f32.mrf.mxu0 }
 0x123   :  { %v2486_v36 = vpack.c.bf16 %v1670_v30, %v1669_v29  ;;  %v1668_v37 = vmax.f32 %v1604_v31, 0.0  ;;  %v2809_v38 = vpop.f32.mrf.mxu1  ;;  %v1609_v42 = vadd.f32 %v2729_v34, %v3074_v50 }
 0x124   :  { %2187 = vst [vmem:[%s3497_s6 + $0xe8] sm:$0xff] %v2123_v33  ;;  %v2128_v39 = vadd.f32 %v2809_v38, %v3069_v48  ;;  %v701_v40 = vpop.f32.mrf.mxu0 }
 0x125   :  { %2582 = vst [vmem:[%s3498_s5 + $0x78] sm:$0xff] %v2486_v36   ;;  %v2481_v41 = vpack.c.bf16 %v1668_v37, %v1667_v35  ;;  %v1246_v43 = vpop.f32.mrf.mxu1  ;;  %v1607_v46 = vadd.f32 %v3074_v50, %v701_v40  ;;  %v1673_v53 = vmax.f32 %v1609_v42, 0.0 }
 0x126   :  { %2192 = vst [vmem:[%s3497_s6 + $0x110] sm:$0xff] %v2128_v39  ;;  %v2126_v44 = vadd.f32 %v3069_v48, %v1246_v43  ;;  %v2730_v45 = vpop.f32.mrf.mxu0 }
 0x127   :  { %2581 = vst [vmem:[%s3498_s5 + $0x70] sm:$0xff] %v2481_v41   ;;  %v1610_v47 = vadd.f32 %v2730_v45, %v3074_v50  ;;  %v2810_v49 = vpop.f32.mrf.mxu1  ;;  %v1671_v59 = vmax.f32 %v1607_v46, 0.0 }
 0x128   :  { %2190 = vst [vmem:[%s3497_s6 + $0x100] sm:$0xff] %v2126_v44  ;;  %v2129_v51 = vadd.f32 %v2810_v49, %v3069_v48  ;;  %v704_v52 = vpop.f32.mrf.mxu0 }
 0x129   :  { %v1674_v54 = vmax.f32 %v1610_v47, 0.0  ;;  %v1608_v55 = vadd.f32 %v3074_v50, %v704_v52  ;;  %v1249_v56 = vpop.f32.mrf.mxu1 }
 0x12a   :  { %2193 = vst [vmem:[%s3497_s6 + $0x118] sm:$0xff] %v2129_v51  ;;  %v2127_v57 = vadd.f32 %v3069_v48, %v1249_v56  ;;  %v2733_v58 = vpop.f32.mrf.mxu0 }
 0x12b   :  { %v2496_v60 = vpack.c.bf16 %v1674_v54, %v1673_v53  ;;  %v1672_v61 = vmax.f32 %v1608_v55, 0.0  ;;  %v2813_v62 = vpop.f32.mrf.mxu1  ;;  %v1613_v2 = vadd.f32 %v2733_v58, %v3074_v50 }
 0x12c   :  { %2191 = vst [vmem:[%s3497_s6 + $0x108] sm:$0xff] %v2127_v57  ;;  %v2132_v63 = vadd.f32 %v2813_v62, %v3069_v48  ;;  %v717_v0 = vpop.f32.mrf.mxu0 }
 0x12d   :  { %2584 = vst [vmem:[%s3498_s5 + $0x88] sm:$0xff] %v2496_v60   ;;  %v2491_v1 = vpack.c.bf16 %v1672_v61, %v1671_v59  ;;  %v1262_v3 = vpop.f32.mrf.mxu1  ;;  %v1611_v6 = vadd.f32 %v3074_v50, %v717_v0  ;;  %v1677_v11 = vmax.f32 %v1613_v2, 0.0 }
 0x12e   :  { %2196 = vst [vmem:[%s3497_s6 + $0x130] sm:$0xff] %v2132_v63  ;;  %v2130_v4 = vadd.f32 %v3069_v48, %v1262_v3  ;;  %v2734_v5 = vpop.f32.mrf.mxu0 }
 0x12f   :  { %2583 = vst [vmem:[%s3498_s5 + $0x80] sm:$0xff] %v2491_v1   ;;  %v1614_v7 = vadd.f32 %v2734_v5, %v3074_v50  ;;  %v2814_v8 = vpop.f32.mrf.mxu1  ;;  %v1675_v17 = vmax.f32 %v1611_v6, 0.0 }
 0x130   :  { %2194 = vst [vmem:[%s3497_s6 + $0x120] sm:$0xff] %v2130_v4  ;;  %v2133_v9 = vadd.f32 %v2814_v8, %v3069_v48  ;;  %v720_v10 = vpop.f32.mrf.mxu0 }
 0x131   :  { %v1678_v12 = vmax.f32 %v1614_v7, 0.0  ;;  %v1612_v13 = vadd.f32 %v3074_v50, %v720_v10  ;;  %v1265_v14 = vpop.f32.mrf.mxu1 }
 0x132   :  { %2197 = vst [vmem:[%s3497_s6 + $0x138] sm:$0xff] %v2133_v9  ;;  %v2131_v15 = vadd.f32 %v3069_v48, %v1265_v14  ;;  %v2737_v16 = vpop.f32.mrf.mxu0 }
 0x133   :  { %v2506_v18 = vpack.c.bf16 %v1678_v12, %v1677_v11  ;;  %v1676_v19 = vmax.f32 %v1612_v13, 0.0  ;;  %v2817_v20 = vpop.f32.mrf.mxu1  ;;  %v1617_v24 = vadd.f32 %v2737_v16, %v3074_v50 }
 0x134   :  { %2195 = vst [vmem:[%s3497_s6 + $0x128] sm:$0xff] %v2131_v15  ;;  %v2136_v21 = vadd.f32 %v2817_v20, %v3069_v48  ;;  %v733_v22 = vpop.f32.mrf.mxu0 }
 0x135   :  { %2586 = vst [vmem:[%s3498_s5 + $0x98] sm:$0xff] %v2506_v18   ;;  %v2501_v23 = vpack.c.bf16 %v1676_v19, %v1675_v17  ;;  %v1278_v25 = vpop.f32.mrf.mxu1  ;;  %v1615_v28 = vadd.f32 %v3074_v50, %v733_v22  ;;  %v1681_v33 = vmax.f32 %v1617_v24, 0.0 }
 0x136   :  { %2200 = vst [vmem:[%s3497_s6 + $0x150] sm:$0xff] %v2136_v21  ;;  %v2134_v26 = vadd.f32 %v3069_v48, %v1278_v25  ;;  %v2738_v27 = vpop.f32.mrf.mxu0 }
 0x137   :  { %2585 = vst [vmem:[%s3498_s5 + $0x90] sm:$0xff] %v2501_v23   ;;  %v1618_v29 = vadd.f32 %v2738_v27, %v3074_v50  ;;  %v2818_v30 = vpop.f32.mrf.mxu1  ;;  %v1679_v39 = vmax.f32 %v1615_v28, 0.0 }
 0x138   :  { %2198 = vst [vmem:[%s3497_s6 + $0x140] sm:$0xff] %v2134_v26  ;;  %v2137_v31 = vadd.f32 %v2818_v30, %v3069_v48  ;;  %v736_v32 = vpop.f32.mrf.mxu0 }
 0x139   :  { %v1682_v34 = vmax.f32 %v1618_v29, 0.0  ;;  %v1616_v35 = vadd.f32 %v3074_v50, %v736_v32  ;;  %v1281_v36 = vpop.f32.mrf.mxu1 }
 0x13a   :  { %2201 = vst [vmem:[%s3497_s6 + $0x158] sm:$0xff] %v2137_v31  ;;  %v2135_v37 = vadd.f32 %v3069_v48, %v1281_v36  ;;  %v2741_v38 = vpop.f32.mrf.mxu0 }
 0x13b   :  { %v2516_v40 = vpack.c.bf16 %v1682_v34, %v1681_v33  ;;  %v1680_v41 = vmax.f32 %v1616_v35, 0.0  ;;  %v2821_v42 = vpop.f32.mrf.mxu1  ;;  %v1621_v46 = vadd.f32 %v2741_v38, %v3074_v50 }
 0x13c   :  { %2199 = vst [vmem:[%s3497_s6 + $0x148] sm:$0xff] %v2135_v37  ;;  %v2140_v43 = vadd.f32 %v2821_v42, %v3069_v48  ;;  %v749_v44 = vpop.f32.mrf.mxu0 }
 0x13d   :  { %2588 = vst [vmem:[%s3498_s5 + $0xa8] sm:$0xff] %v2516_v40   ;;  %v2511_v45 = vpack.c.bf16 %v1680_v41, %v1679_v39  ;;  %v1294_v47 = vpop.f32.mrf.mxu1  ;;  %v1619_v52 = vadd.f32 %v3074_v50, %v749_v44  ;;  %v1685_v57 = vmax.f32 %v1621_v46, 0.0 }
 0x13e   :  { %2204 = vst [vmem:[%s3497_s6 + $0x170] sm:$0xff] %v2140_v43  ;;  %v2138_v49 = vadd.f32 %v3069_v48, %v1294_v47  ;;  %v2742_v51 = vpop.f32.mrf.mxu0 }
 0x13f   :  { %2587 = vst [vmem:[%s3498_s5 + $0xa0] sm:$0xff] %v2511_v45   ;;  %v1622_v53 = vadd.f32 %v2742_v51, %v3074_v50  ;;  %v2822_v54 = vpop.f32.mrf.mxu1  ;;  %v1683_v63 = vmax.f32 %v1619_v52, 0.0 }
 0x140   :  { %2202 = vst [vmem:[%s3497_s6 + $0x160] sm:$0xff] %v2138_v49  ;;  %v2141_v55 = vadd.f32 %v2822_v54, %v3069_v48  ;;  %v752_v56 = vpop.f32.mrf.mxu0 }
 0x141   :  { %v1686_v58 = vmax.f32 %v1622_v53, 0.0  ;;  %v1620_v59 = vadd.f32 %v3074_v50, %v752_v56  ;;  %v1297_v60 = vpop.f32.mrf.mxu1 }
 0x142   :  { %2205 = vst [vmem:[%s3497_s6 + $0x178] sm:$0xff] %v2141_v55  ;;  %v2139_v61 = vadd.f32 %v3069_v48, %v1297_v60  ;;  %v2745_v62 = vpop.f32.mrf.mxu0 }
 0x143   :  { %v2526_v0 = vpack.c.bf16 %v1686_v58, %v1685_v57  ;;  %v1684_v1 = vmax.f32 %v1620_v59, 0.0  ;;  %v2825_v2 = vpop.f32.mrf.mxu1  ;;  %v1625_v6 = vadd.f32 %v2745_v62, %v3074_v50 }
 0x144   :  { %2203 = vst [vmem:[%s3497_s6 + $0x168] sm:$0xff] %v2139_v61  ;;  %v2144_v3 = vadd.f32 %v2825_v2, %v3069_v48  ;;  %v765_v4 = vpop.f32.mrf.mxu0 }
 0x145   :  { %2590 = vst [vmem:[%s3498_s5 + $0xb8] sm:$0xff] %v2526_v0   ;;  %v2521_v5 = vpack.c.bf16 %v1684_v1, %v1683_v63  ;;  %v1310_v7 = vpop.f32.mrf.mxu1  ;;  %v1623_v10 = vadd.f32 %v3074_v50, %v765_v4  ;;  %v1689_v15 = vmax.f32 %v1625_v6, 0.0 }
 0x146   :  { %2208 = vst [vmem:[%s3497_s6 + $0x190] sm:$0xff] %v2144_v3  ;;  %v2142_v8 = vadd.f32 %v3069_v48, %v1310_v7  ;;  %v2746_v9 = vpop.f32.mrf.mxu0 }
 0x147   :  { %2589 = vst [vmem:[%s3498_s5 + $0xb0] sm:$0xff] %v2521_v5   ;;  %v1626_v11 = vadd.f32 %v2746_v9, %v3074_v50  ;;  %v2826_v12 = vpop.f32.mrf.mxu1  ;;  %v1687_v21 = vmax.f32 %v1623_v10, 0.0 }
 0x148   :  { %2206 = vst [vmem:[%s3497_s6 + $0x180] sm:$0xff] %v2142_v8  ;;  %v2145_v13 = vadd.f32 %v2826_v12, %v3069_v48  ;;  %v768_v14 = vpop.f32.mrf.mxu0 }
 0x149   :  { %v1690_v16 = vmax.f32 %v1626_v11, 0.0  ;;  %v1624_v17 = vadd.f32 %v3074_v50, %v768_v14  ;;  %v1313_v18 = vpop.f32.mrf.mxu1 }
 0x14a   :  { %2209 = vst [vmem:[%s3497_s6 + $0x198] sm:$0xff] %v2145_v13  ;;  %v2143_v19 = vadd.f32 %v3069_v48, %v1313_v18  ;;  %v2749_v20 = vpop.f32.mrf.mxu0 }
 0x14b   :  { %v2536_v22 = vpack.c.bf16 %v1690_v16, %v1689_v15  ;;  %v1688_v23 = vmax.f32 %v1624_v17, 0.0  ;;  %v2829_v24 = vpop.f32.mrf.mxu1  ;;  %v1629_v28 = vadd.f32 %v2749_v20, %v3074_v50 }
 0x14c   :  { %2207 = vst [vmem:[%s3497_s6 + $0x188] sm:$0xff] %v2143_v19  ;;  %v2148_v25 = vadd.f32 %v2829_v24, %v3069_v48  ;;  %v781_v26 = vpop.f32.mrf.mxu0 }
 0x14d   :  { %2592 = vst [vmem:[%s3498_s5 + $0xc8] sm:$0xff] %v2536_v22   ;;  %v2531_v27 = vpack.c.bf16 %v1688_v23, %v1687_v21  ;;  %v1326_v29 = vpop.f32.mrf.mxu1  ;;  %v1627_v32 = vadd.f32 %v3074_v50, %v781_v26  ;;  %v1693_v37 = vmax.f32 %v1629_v28, 0.0 }
 0x14e   :  { %2212 = vst [vmem:[%s3497_s6 + $0x1b0] sm:$0xff] %v2148_v25  ;;  %v2146_v30 = vadd.f32 %v3069_v48, %v1326_v29  ;;  %v2750_v31 = vpop.f32.mrf.mxu0 }
 0x14f   :  { %2591 = vst [vmem:[%s3498_s5 + $0xc0] sm:$0xff] %v2531_v27   ;;  %v1630_v33 = vadd.f32 %v2750_v31, %v3074_v50  ;;  %v2830_v34 = vpop.f32.mrf.mxu1  ;;  %v1691_v43 = vmax.f32 %v1627_v32, 0.0 }
 0x150   :  { %2210 = vst [vmem:[%s3497_s6 + $0x1a0] sm:$0xff] %v2146_v30  ;;  %v2149_v35 = vadd.f32 %v2830_v34, %v3069_v48  ;;  %v784_v36 = vpop.f32.mrf.mxu0 }
 0x151   :  { %v1694_v38 = vmax.f32 %v1630_v33, 0.0  ;;  %v1628_v39 = vadd.f32 %v3074_v50, %v784_v36  ;;  %v1329_v40 = vpop.f32.mrf.mxu1 }
 0x152   :  { %2213 = vst [vmem:[%s3497_s6 + $0x1b8] sm:$0xff] %v2149_v35  ;;  %v2147_v41 = vadd.f32 %v3069_v48, %v1329_v40  ;;  %v2753_v42 = vpop.f32.mrf.mxu0 }
 0x153   :  { %v2546_v44 = vpack.c.bf16 %v1694_v38, %v1693_v37  ;;  %v1692_v45 = vmax.f32 %v1628_v39, 0.0  ;;  %v2833_v46 = vpop.f32.mrf.mxu1  ;;  %v1633_v52 = vadd.f32 %v2753_v42, %v3074_v50 }
 0x154   :  { %2211 = vst [vmem:[%s3497_s6 + $0x1a8] sm:$0xff] %v2147_v41  ;;  %v2152_v47 = vadd.f32 %v2833_v46, %v3069_v48  ;;  %v797_v49 = vpop.f32.mrf.mxu0 }
 0x155   :  { %2594 = vst [vmem:[%s3498_s5 + $0xd8] sm:$0xff] %v2546_v44   ;;  %v2541_v51 = vpack.c.bf16 %v1692_v45, %v1691_v43  ;;  %v1342_v53 = vpop.f32.mrf.mxu1  ;;  %v1631_v56 = vadd.f32 %v3074_v50, %v797_v49  ;;  %v1697_v61 = vmax.f32 %v1633_v52, 0.0 }
 0x156   :  { %2216 = vst [vmem:[%s3497_s6 + $0x1d0] sm:$0xff] %v2152_v47  ;;  %v2150_v54 = vadd.f32 %v3069_v48, %v1342_v53  ;;  %v2754_v55 = vpop.f32.mrf.mxu0 }
 0x157   :  { %2593 = vst [vmem:[%s3498_s5 + $0xd0] sm:$0xff] %v2541_v51   ;;  %v1634_v57 = vadd.f32 %v2754_v55, %v3074_v50  ;;  %v2834_v58 = vpop.f32.mrf.mxu1  ;;  %v1695_v3 = vmax.f32 %v1631_v56, 0.0 }
 0x158   :  { %2214 = vst [vmem:[%s3497_s6 + $0x1c0] sm:$0xff] %v2150_v54  ;;  %v2153_v59 = vadd.f32 %v2834_v58, %v3069_v48  ;;  %v800_v60 = vpop.f32.mrf.mxu0 }
 0x159   :  { %v1698_v62 = vmax.f32 %v1634_v57, 0.0  ;;  %v1632_v63 = vadd.f32 %v3074_v50, %v800_v60  ;;  %v1345_v0 = vpop.f32.mrf.mxu1 }
 0x15a   :  { %2217 = vst [vmem:[%s3497_s6 + $0x1d8] sm:$0xff] %v2153_v59  ;;  %v2151_v1 = vadd.f32 %v3069_v48, %v1345_v0  ;;  %v2757_v2 = vpop.f32.mrf.mxu0 }
 0x15b   :  { %v2556_v4 = vpack.c.bf16 %v1698_v62, %v1697_v61  ;;  %v1696_v5 = vmax.f32 %v1632_v63, 0.0  ;;  %v2837_v6 = vpop.f32.mrf.mxu1  ;;  %v1637_v10 = vadd.f32 %v2757_v2, %v3074_v50 }
 0x15c   :  { %2215 = vst [vmem:[%s3497_s6 + $0x1c8] sm:$0xff] %v2151_v1  ;;  %v2156_v7 = vadd.f32 %v2837_v6, %v3069_v48  ;;  %v813_v8 = vpop.f32.mrf.mxu0 }
 0x15d   :  { %2596 = vst [vmem:[%s3498_s5 + $0xe8] sm:$0xff] %v2556_v4   ;;  %v2551_v9 = vpack.c.bf16 %v1696_v5, %v1695_v3  ;;  %v1358_v11 = vpop.f32.mrf.mxu1  ;;  %v1635_v14 = vadd.f32 %v3074_v50, %v813_v8  ;;  %v1701_v19 = vmax.f32 %v1637_v10, 0.0 }
 0x15e   :  { %2220 = vst [vmem:[%s3497_s6 + $0x1f0] sm:$0xff] %v2156_v7  ;;  %v2154_v12 = vadd.f32 %v3069_v48, %v1358_v11  ;;  %v2758_v13 = vpop.f32.mrf.mxu0 }
 0x15f   :  { %2595 = vst [vmem:[%s3498_s5 + $0xe0] sm:$0xff] %v2551_v9   ;;  %v1638_v15 = vadd.f32 %v2758_v13, %v3074_v50  ;;  %v2838_v16 = vpop.f32.mrf.mxu1  ;;  %v1699_v24 = vmax.f32 %v1635_v14, 0.0 }
 0x160   :  { %2218 = vst [vmem:[%s3497_s6 + $0x1e0] sm:$0xff] %v2154_v12  ;;  %v2157_v17 = vadd.f32 %v2838_v16, %v3069_v48  ;;  %v816_v18 = vpop.f32.mrf.mxu0 }
 0x161   :  { %v1702_v20 = vmax.f32 %v1638_v15, 0.0  ;;  %v1636_v21 = vadd.f32 %v3074_v50, %v816_v18  ;;  %v1361_v22 = vpop.f32.mrf.mxu1 }
 0x162   :  { %2221 = vst [vmem:[%s3497_s6 + $0x1f8] sm:$0xff] %v2157_v17  ;;  %v2155_v23 = vadd.f32 %v3069_v48, %v1361_v22 }
 0x163   :  { %v2566_v25 = vpack.c.bf16 %v1702_v20, %v1701_v19  ;;  %v1700_v26 = vmax.f32 %v1636_v21, 0.0 }
 0x164   :  { %2219 = vst [vmem:[%s3497_s6 + $0x1e8] sm:$0xff] %v2155_v23 }
 0x165   :  { %2598 = vst [vmem:[%s3498_s5 + $0xf8] sm:$0xff] %v2566_v25   ;;  %v2561_v27 = vpack.c.bf16 %v1700_v26, %v1699_v24 }
 0x167   :  { %2597 = vst [vmem:[%s3498_s5 + $0xf0] sm:$0xff] %v2561_v27  }

// kernel: dblock_forward.3
= control target key start
LH: loop header
LB: loop body
LE: loop exit
PB: predicated region body
PF: predicated region fallthrough
CT: control target
= control target key end

     0   :  { %v7519_v0 = vmov 0   ;;  %v4781_v2 = vmov 0.0   ;;  %vm339_vm0 = vcmask 1046528   ;;  %vm573_vm1 = vcmask 1040384   ;;  %s7512_s1 = inlined_call_operand.vmem [shape: bf16[3,3,128,128], index: 1, kind: input, shape index: {}]   ;;  %s7513_s0 = inlined_call_operand.vmem [shape: bf16[2,16,16,128], index: 0, kind: input, shape index: {}]   ;;  %s7514_s3 = inlined_call_operand.vmem [shape: f32[2,16,16,128], index: 3, kind: input, shape index: {}]   ;;  %s7515_s2 = inlined_call_operand.vmem [shape: f32[1,128], index: 2, kind: input, shape index: {}]   ;;  %s7516_s4 = inlined_call_operand.vmem [shape: bf16[2,16,16,128], index: 4, kind: output, shape index: {}]  }
   0x1   :  { %1968 = vmatprep.subr.bf16.mxu0 %v7519_v0  ;;  %4674 = vmatprep.subr.bf16.mxu1 %v7519_v0  ;;  %v4708_v1 = vld [vmem:[%s7512_s1 + $0x38] sm:$0xff]   ;;  %v340_v3 = vrot.slane %v4781_v2, 1  ;;  %v4709_v4 = vld [vmem:[%s7512_s1 + $0x30] sm:$0xff]   ;;  %v4710_v7 = vld [vmem:[%s7512_s1 + $0x28] sm:$0xff]   ;;  %v4901_v37 = vrot.slane %v4781_v2, 7  ;;  %v4932_v55 = vrot.slane %v4781_v2, 2 }
   0x2   :  { %1969 = vmatpush1.bf16.msra.mxu0 %v4708_v1  ;;  %4690 = vmatpush1.bf16.msra.mxu1 %v4708_v1  ;;  %v4711_v8 = vld [vmem:[%s7512_s1 + $0x20] sm:$0xff]   ;;  %v4712_v9 = vld [vmem:[%s7512_s1 + $0x18] sm:$0xff]   ;;  %v4713_v13 = vld [vmem:[%s7512_s1 + $0x10] sm:$0xff]   ;;  %vm432_vm2 = vcmask 1045504  }
   0x3   :  { %1970 = vmatprep.subr.bf16.mxu0 %v7519_v0  ;;  %4675 = vmatprep.subr.bf16.mxu1 %v7519_v0  ;;  %v576_v5 = vrot.slane %v340_v3, 7  ;;  %v4514_v10 = vld [vmem:[%s7513_s0 + $0xb8] sm:$0xff]   ;;  %v4714_v19 = vld [vmem:[%s7512_s1 + $0x8] sm:$0xff]   ;;  %v4715_v24 = vld [vmem:[%s7512_s1] sm:$0xff]   ;;  %v4936_v56 = vpack.c.bf16 %v4901_v37, %v4901_v37 }
   0x4   :  { %v4839_v11 = vunpack.c.l.bf16 %v4514_v10  ;;  %v4841_v12 = vunpack.c.h.bf16 %v4514_v10  ;;  %v4205_v25 = vld [vmem:[%s7513_s0] sm:$0xff]   ;;  %v4716_v26 = vld [vmem:[%s7512_s1 + $0x78] sm:$0xff]   ;;  %v4717_v29 = vld [vmem:[%s7512_s1 + $0x70] sm:$0xff]  }
   0x5   :  { %v4818_v6 = vpack.c.bf16 %v576_v5, %v576_v5  ;;  %v4874_v27 = vunpack.c.l.bf16 %v4205_v25  ;;  %v4876_v28 = vunpack.c.h.bf16 %v4205_v25  ;;  %v4515_v30 = vld [vmem:[%s7513_s0 + $0xc0] sm:$0xff]   ;;  %v4718_v35 = vld [vmem:[%s7512_s1 + $0x68] sm:$0xff]   ;;  %v4720_v50 = vld [vmem:[%s7512_s1 + $0x58] sm:$0xff]   ;;  %7678 = vst [vmem:[#allocation11_spill] sm:$0xff] %v4936_v56 }
   0x6   :  { %1971 = vmatpush1.bf16.msra.mxu0 %v4709_v4  ;;  %4691 = vmatpush1.bf16.msra.mxu1 %v4709_v4  ;;  %7671 = vst [vmem:[#allocation4_spill] sm:$0xff] %v4839_v11  ;;  %7672 = vst [vmem:[#allocation5_spill] sm:$0xff] %v4841_v12  ;;  %v408_v14 = vrot.slane %v4839_v11, 1  ;;  %v409_v15 = vrot.slane %v4841_v12, 1  ;;  %v4888_v33 = vunpack.c.l.bf16 %v4515_v30  ;;  %v4890_v34 = vunpack.c.h.bf16 %v4515_v30  ;;  %v4492_v36 = vld [vmem:[%s7513_s0 + $0x8] sm:$0xff]   ;;  %v4719_v44 = vld [vmem:[%s7512_s1 + $0x60] sm:$0xff]  }
   0x7   :  { %7670 = vst [vmem:[#allocation3_spill] sm:$0xff] %v4818_v6  ;;  %1972 = vmatprep.subr.bf16.mxu0 %v7519_v0  ;;  %4676 = vmatprep.subr.bf16.mxu1 %v7519_v0  ;;  %v342_v31 = vrot.slane %v4874_v27, 1  ;;  %v343_v32 = vrot.slane %v4876_v28, 1  ;;  %v4516_v38 = vld [vmem:[%s7513_s0 + $0xc8] sm:$0xff]   ;;  %v906_v39 = vrot.slane %v4839_v11, 7  ;;  %v914_v40 = vrot.slane %v4841_v12, 7 }
   0x8   :  { %2000 = vmatprep.mubr.bf16.mxu0 %v4818_v6  ;;  %v410_v16 = vsel %vm339_vm0, %v408_v14, %v409_v15  ;;  %v908_v17 = vrot.slane %v408_v14, 7  ;;  %v916_v18 = vrot.slane %v409_v15, 7  ;;  %7674 = vst [vmem:[#allocation7_spill] sm:$0xff] %v4888_v33  ;;  %7675 = vst [vmem:[#allocation8_spill] sm:$0xff] %v4890_v34  ;;  %v411_v42 = vrot.slane %v4888_v33, 1  ;;  %v4493_v58 = vld [vmem:[%s7513_s0 + $0x10] sm:$0xff]  }
   0x9   :  { %v909_v20 = vrot.slane %v410_v16, 7  ;;  %v344_v41 = vsel %vm339_vm0, %v342_v31, %v343_v32  ;;  %v412_v43 = vrot.slane %v4890_v34, 1  ;;  %v4914_v45 = vunpack.c.l.bf16 %v4492_v36  ;;  %v4721_v15 = vld [vmem:[%s7512_s1 + $0x50] sm:$0xff]  }
   0xa   :  { %1973 = vmatpush1.bf16.msra.mxu0 %v4710_v7  ;;  %4692 = vmatpush1.bf16.msra.mxu1 %v4710_v7  ;;  %v4916_v46 = vunpack.c.h.bf16 %v4492_v36  ;;  %v4918_v47 = vunpack.c.l.bf16 %v4516_v38  ;;  %v4920_v48 = vunpack.c.h.bf16 %v4516_v38  ;;  %v582_v49 = vrot.slane %v4874_v27, 7 }
   0xb   :  { %1974 = vmatprep.subr.bf16.mxu0 %v7519_v0  ;;  %4677 = vmatprep.subr.bf16.mxu1 %v7519_v0  ;;  %v910_v21 = vsel %vm573_vm1, %v908_v17, %v909_v20  ;;  %v917_v22 = vsel %vm573_vm1, %v909_v20, %v916_v18  ;;  %v907_v51 = vsel %vm573_vm1, %v4901_v37, %v906_v39  ;;  %v584_v53 = vrot.slane %v342_v31, 7  ;;  %v4517_v20 = vld [vmem:[%s7513_s0 + $0xd0] sm:$0xff]  }
   0xc   :  { %v4858_v23 = vpack.c.bf16 %v917_v22, %v910_v21  ;;  %7676 = vst [vmem:[#allocation9_spill] sm:$0xff] %v4918_v47  ;;  %7677 = vst [vmem:[#allocation10_spill] sm:$0xff] %v4920_v48  ;;  %v915_v52 = vsel %vm573_vm1, %v906_v39, %v914_v40  ;;  %v585_v54 = vrot.slane %v344_v41, 7  ;;  %v413_v57 = vsel %vm339_vm0, %v411_v42, %v412_v43  ;;  %v4722_v39 = vld [vmem:[%s7512_s1 + $0x48] sm:$0xff]  }
   0xd   :  { %v345_v59 = vrot.slane %v4914_v45, 1  ;;  %v346_v60 = vrot.slane %v4916_v46, 1  ;;  %v414_v61 = vrot.slane %v4918_v47, 1  ;;  %v415_v62 = vrot.slane %v4920_v48, 1 }
   0xe   :  { %1975 = vmatpush1.bf16.msra.mxu0 %v4711_v8  ;;  %4693 = vmatpush1.bf16.msra.mxu1 %v4711_v8  ;;  %7673 = vst [vmem:[#allocation6_spill] sm:$0xff] %v4858_v23  ;;  %v4948_v63 = vpack.c.bf16 %v915_v52, %v907_v51  ;;  %v602_v1 = vrot.slane %v343_v32, 7  ;;  %v583_v2 = vsel %vm573_vm1, %v4901_v37, %v582_v49  ;;  %v600_v3 = vrot.slane %v4876_v28, 7  ;;  %v4494_v52 = vld [vmem:[%s7513_s0 + $0x18] sm:$0xff]  }
   0xf   :  { %1976 = vmatprep.subr.bf16.mxu0 %v7519_v0  ;;  %4678 = vmatprep.subr.bf16.mxu1 %v7519_v0  ;;  %v586_v4 = vsel %vm573_vm1, %v584_v53, %v585_v54  ;;  %v922_v5 = vrot.slane %v411_v42, 7  ;;  %v920_v7 = vrot.slane %v4888_v33, 7  ;;  %v928_v8 = vrot.slane %v4890_v34, 7 }
  0x10   :  { %2192 = vmatprep.mubr.bf16.mxu1 %v4858_v23  ;;  %7679 = vst [vmem:[#allocation12_spill] sm:$0xff] %v4948_v63  ;;  %v930_v10 = vrot.slane %v412_v43, 7  ;;  %v4958_v14 = vunpack.c.h.bf16 %v4493_v58  ;;  %v347_v16 = vsel %vm339_vm0, %v345_v59, %v346_v60  ;;  %v416_v17 = vsel %vm339_vm0, %v414_v61, %v415_v62 }
  0x11   :  { %v590_v18 = vrot.slane %v4914_v45, 7  ;;  %v603_v21 = vsel %vm573_vm1, %v585_v54, %v602_v1  ;;  %v601_v22 = vsel %vm573_vm1, %v582_v49, %v600_v3  ;;  %v934_v25 = vrot.slane %v4918_v47, 7 }
  0x12   :  { %1977 = vmatpush1.bf16.msra.mxu0 %v4712_v9  ;;  %4694 = vmatpush1.bf16.msra.mxu1 %v4712_v9  ;;  %v923_v9 = vrot.slane %v413_v57, 7  ;;  %v608_v30 = vrot.slane %v346_v60, 7  ;;  %v936_v31 = vrot.slane %v414_v61, 7  ;;  %v593_v32 = vrot.slane %v347_v16, 7  ;;  %v4724_v16 = vld [vmem:[%s7512_s1 + $0xb8] sm:$0xff]  }
  0x13   :  { %1978 = vmatprep.subr.bf16.mxu0 %v7519_v0  ;;  %4679 = vmatprep.subr.bf16.mxu1 %v7519_v0  ;;  %v349_v38 = vrot.slane %v4958_v14, 1  ;;  %v4983_v40 = vpack.c.bf16 %v603_v21, %v586_v4  ;;  %v4985_v41 = vpack.c.bf16 %v601_v22, %v583_v2  ;;  %v4987_v42 = vunpack.c.l.bf16 %v4517_v20  ;;  %v4723_v2 = vld [vmem:[%s7512_s1 + $0x40] sm:$0xff]  }
  0x14   :  { %v4989_v43 = vunpack.c.h.bf16 %v4517_v20  ;;  %v942_v51 = vrot.slane %v4920_v48, 7  ;;  %v931_v53 = vsel %vm573_vm1, %v923_v9, %v930_v10  ;;  %v591_v54 = vsel %vm573_vm1, %v4901_v37, %v590_v18 }
  0x15   :  { %7680 = vst [vmem:[#allocation13_spill] sm:$0xff] %v4987_v42  ;;  %v609_v61 = vsel %vm573_vm1, %v593_v32, %v608_v30  ;;  %v417_v3 = vrot.slane %v4987_v42, 1  ;;  %v620_v21 = vrot.slane %v4958_v14, 7 }
  0x16   :  { %1979 = vmatpush1.bf16.msra.mxu0 %v4713_v13  ;;  %4695 = vmatpush1.bf16.msra.mxu1 %v4713_v13  ;;  %v4956_v13 = vunpack.c.l.bf16 %v4493_v58  ;;  %7681 = vst [vmem:[#allocation14_spill] sm:$0xff] %v4989_v43  ;;  %v935_v58 = vsel %vm573_vm1, %v4901_v37, %v934_v25  ;;  %v418_v4 = vrot.slane %v4989_v43, 1 }
  0x17   :  { %1980 = vmatprep.subr.bf16.mxu0 %v7519_v0  ;;  %4680 = vmatprep.subr.bf16.mxu1 %v7519_v0 }
  0x18   :  { %v348_v36 = vrot.slane %v4956_v13, 1  ;;  %v612_v20 = vrot.slane %v4956_v13, 7 }
  0x1a   :  { %1981 = vmatpush1.bf16.msra.mxu0 %v4714_v19  ;;  %4696 = vmatpush1.bf16.msra.mxu1 %v4714_v19  ;;  %v606_v19 = vrot.slane %v4916_v46, 7  ;;  %v350_v1 = vsel %vm339_vm0, %v348_v36, %v349_v38 }
  0x1b   :  { %1982 = vmatprep.subr.bf16.mxu0 %v7519_v0  ;;  %4681 = vmatprep.subr.bf16.mxu1 %v7519_v0 }
  0x1c   :  { %v607_v57 = vsel %vm573_vm1, %v590_v18, %v606_v19  ;;  %v614_v18 = vrot.slane %v348_v36, 7  ;;  %v622_v19 = vrot.slane %v349_v38, 7  ;;  %v4519_v36 = vld [vmem:[%s7513_s0 + $0xe0] sm:$0xff]  }
  0x1e   :  { %1983 = vmatpush1.bf16.msra.mxu0 %v4715_v24  ;;  %4697 = vmatpush1.bf16.msra.mxu1 %v4715_v24  ;;  %v592_v24 = vrot.slane %v345_v59, 7  ;;  %v4518_v59 = vld [vmem:[%s7513_s0 + $0xd8] sm:$0xff]  }
  0x1f   :  { %1984 = vmatprep.subr.bf16.mxu0 %v7519_v0  ;;  %4682 = vmatprep.subr.bf16.mxu1 %v7519_v0  ;;  %v5026_v10 = vunpack.c.l.bf16 %v4518_v59 }
  0x20   :  { %v594_v60 = vsel %vm573_vm1, %v592_v24, %v593_v32  ;;  %v5040_v24 = vpack.c.bf16 %v607_v57, %v591_v54  ;;  %v956_v54 = vrot.slane %v4989_v43, 7  ;;  %v4726_v57 = vld [vmem:[%s7512_s1 + $0xb0] sm:$0xff]   ;;  %v7692_v43 = vmov 0  }
  0x21   :  { %7683 = vst [vmem:[#allocation16_spill] sm:$0xff] %v5026_v10  ;;  %v5046_v30 = vpack.c.bf16 %v609_v61, %v594_v60  ;;  %v958_v61 = vrot.slane %v418_v4, 7 }
  0x22   :  { %1985 = vmatpush2.bf16.msra.mxu0 %v4716_v26  ;;  %4698 = vmatpush2.bf16.msra.mxu1 %v4716_v26  ;;  %v921_v26 = vsel %vm573_vm1, %v4901_v37, %v920_v7  ;;  %7686 = vst [vmem:[#allocation19_spill] sm:$0xff] %v5040_v24 }
  0x23   :  { %1986 = vmatprep.subr.bf16.mxu0 %v7519_v0  ;;  %4683 = vmatprep.subr.bf16.mxu1 %v7519_v0  ;;  %7687 = vst [vmem:[#allocation20_spill] sm:$0xff] %v5046_v30 }
  0x26   :  { %1987 = vmatpush2.bf16.msra.mxu0 %v4717_v29  ;;  %4699 = vmatpush2.bf16.msra.mxu1 %v4717_v29  ;;  %v929_v29 = vsel %vm573_vm1, %v920_v7, %v928_v8  ;;  %v5020_v7 = vunpack.c.h.bf16 %v4494_v52 }
  0x27   :  { %1988 = vmatprep.subr.bf16.mxu0 %v7519_v0  ;;  %4684 = vmatprep.subr.bf16.mxu1 %v7519_v0  ;;  %v4994_v49 = vpack.c.bf16 %v929_v29, %v921_v26  ;;  %v948_v26 = vrot.slane %v4987_v42, 7  ;;  %v4495_v29 = vld [vmem:[%s7513_s0 + $0x20] sm:$0xff]  }
  0x29   :  { %7682 = vst [vmem:[#allocation15_spill] sm:$0xff] %v4994_v49 }
  0x2a   :  { %1989 = vmatpush2.bf16.msra.mxu0 %v4718_v35  ;;  %4700 = vmatpush2.bf16.msra.mxu1 %v4718_v35  ;;  %v937_v35 = vrot.slane %v416_v17, 7  ;;  %v4725_v17 = vld [vmem:[%s7512_s1 + $0x138] sm:$0xff]  }
  0x2b   :  { %1990 = vmatprep.subr.bf16.mxu0 %v7519_v0  ;;  %4685 = vmatprep.subr.bf16.mxu1 %v7519_v0 }
  0x2e   :  { %1991 = vmatpush2.bf16.msra.mxu0 %v4719_v44  ;;  %4701 = vmatpush2.bf16.msra.mxu1 %v4719_v44  ;;  %v924_v44 = vsel %vm573_vm1, %v922_v5, %v923_v9  ;;  %v5018_v5 = vunpack.c.l.bf16 %v4494_v52  ;;  %v943_v9 = vsel %vm573_vm1, %v934_v25, %v942_v51  ;;  %v615_v25 = vrot.slane %v350_v1, 7 }
  0x2f   :  { %1992 = vmatprep.subr.bf16.mxu0 %v7519_v0  ;;  %4686 = vmatprep.subr.bf16.mxu1 %v7519_v0  ;;  %v5038_v22 = vpack.c.bf16 %v931_v53, %v924_v44  ;;  %v420_v44 = vrot.slane %v5026_v10, 1  ;;  %v950_v51 = vrot.slane %v417_v3, 7  ;;  %v613_v52 = vsel %vm573_vm1, %v4901_v37, %v612_v20 }
  0x30   :  { %v351_v32 = vrot.slane %v5018_v5, 1  ;;  %v621_v53 = vsel %vm573_vm1, %v612_v20, %v620_v21  ;;  %v957_v20 = vsel %vm573_vm1, %v948_v26, %v956_v54  ;;  %v634_v21 = vrot.slane %v5020_v7, 7 }
  0x31   :  { %7685 = vst [vmem:[#allocation18_spill] sm:$0xff] %v5038_v22 }
  0x32   :  { %1993 = vmatpush2.bf16.msra.mxu0 %v4720_v50  ;;  %4702 = vmatpush2.bf16.msra.mxu1 %v4720_v50  ;;  %v944_v50 = vrot.slane %v415_v62, 7  ;;  %v938_v62 = vsel %vm573_vm1, %v936_v31, %v937_v35  ;;  %v419_v31 = vsel %vm339_vm0, %v417_v3, %v418_v4  ;;  %v5077_v3 = vunpack.c.l.bf16 %v4495_v29 }
  0x33   :  { %1994 = vmatprep.subr.bf16.mxu0 %v7519_v0  ;;  %4687 = vmatprep.subr.bf16.mxu1 %v7519_v0  ;;  %v951_v60 = vrot.slane %v419_v31, 7  ;;  %v626_v4 = vrot.slane %v5018_v5, 7 }
  0x34   :  { %v945_v8 = vsel %vm573_vm1, %v937_v35, %v944_v50  ;;  %v352_v35 = vrot.slane %v5020_v7, 1  ;;  %v354_v23 = vrot.slane %v5077_v3, 1 }
  0x35   :  { %v5056_v38 = vpack.c.bf16 %v945_v8, %v938_v62  ;;  %v4729_v62 = vld [vmem:[%s7512_s1 + $0x130] sm:$0xff]   ;;  %v5079_v8 = vunpack.c.h.bf16 %v4495_v29  ;;  %v4496_v29 = vld [vmem:[%s7513_s0 + $0x28] sm:$0xff]  }
  0x36   :  { %1995 = vmatpush2.bf16.msra.mxu0 %v4721_v15  ;;  %4703 = vmatpush2.bf16.msra.mxu1 %v4721_v15  ;;  %v5028_v15 = vunpack.c.h.bf16 %v4518_v59  ;;  %v623_v59 = vsel %vm573_vm1, %v615_v25, %v622_v19  ;;  %v353_v1 = vsel %vm339_vm0, %v351_v32, %v352_v35  ;;  %v949_v19 = vsel %vm573_vm1, %v4901_v37, %v948_v26 }
  0x37   :  { %1996 = vmatprep.subr.bf16.mxu0 %v7519_v0  ;;  %4688 = vmatprep.subr.bf16.mxu1 %v7519_v0  ;;  %7688 = vst [vmem:[#allocation21_spill] sm:$0xff] %v5056_v38  ;;  %v629_v31 = vrot.slane %v353_v1, 7  ;;  %v5118_v1 = vpack.c.bf16 %v957_v20, %v949_v19  ;;  %v4737_v19 = vld [vmem:[%s7512_s1 + $0x120] sm:$0xff]   ;;  %v4520_v20 = vld [vmem:[%s7513_s0 + $0xe8] sm:$0xff]  }
  0x38   :  { %7684 = vst [vmem:[#allocation17_spill] sm:$0xff] %v5028_v15  ;;  %v421_v50 = vrot.slane %v5028_v15, 1 }
  0x39   :  { %7695 = vst [vmem:[#allocation27_spill] sm:$0xff] %v5118_v1 }
  0x3a   :  { %1997 = vmatpush2.bf16.msra.mxu0 %v4722_v39  ;;  %4704 = vmatpush2.bf16.msra.mxu1 %v4722_v39  ;;  %v5058_v39 = vpack.c.bf16 %v943_v9, %v935_v58  ;;  %v616_v58 = vsel %vm573_vm1, %v614_v18, %v615_v25  ;;  %v422_v9 = vsel %vm339_vm0, %v420_v44, %v421_v50  ;;  %v4727_v18 = vld [vmem:[%s7512_s1 + $0xa8] sm:$0xff]   ;;  %v962_v25 = vrot.slane %v5026_v10, 7 }
  0x3b   :  { %1998 = vmatprep.subr.bf16.mxu0 %v7519_v0  ;;  %4689 = vmatprep.subr.bf16.mxu1 %v7519_v0  ;;  %v965_v26 = vrot.slane %v422_v9, 7  ;;  %v972_v54 = vrot.slane %v421_v50, 7  ;;  %v355_v10 = vrot.slane %v5079_v8, 1  ;;  %v5109_v42 = vpack.c.bf16 %v623_v59, %v616_v58 }
  0x3c   :  { %7689 = vst [vmem:[#allocation22_spill] sm:$0xff] %v5058_v39  ;;  %v959_v50 = vsel %vm573_vm1, %v951_v60, %v958_v61  ;;  %v627_v9 = vsel %vm573_vm1, %v4901_v37, %v626_v4  ;;  %v5130_v58 = vunpack.c.l.bf16 %v4496_v29  ;;  %v5132_v59 = vunpack.c.h.bf16 %v4496_v29  ;;  %v4730_v29 = vld [vmem:[%s7512_s1 + $0x98] sm:$0xff]  }
  0x3d   :  { %7693 = vst [vmem:[#allocation25_spill] sm:$0xff] %v5109_v42 }
  0x3e   :  { %1999 = vmatpush2.bf16.msra.mxu0 %v4723_v2  ;;  %4705 = vmatpush2.bf16.msra.mxu1 %v4723_v2  ;;  %v628_v2 = vrot.slane %v351_v32, 7  ;;  %v636_v32 = vrot.slane %v352_v35, 7  ;;  %v5111_v35 = vpack.c.bf16 %v621_v53, %v613_v52  ;;  %v4728_v52 = vld [vmem:[%s7512_s1 + $0xa0] sm:$0xff]   ;;  %v635_v53 = vsel %vm573_vm1, %v626_v4, %v634_v21 }
  0x3f   :  { %2257 = vmatprep.subr.bf16.mxu1 %v7519_v0  ;;  %2546 = vmatprep.subr.bf16.mxu0 %v7519_v0  ;;  %v356_v4 = vsel %vm339_vm0, %v354_v23, %v355_v10  ;;  %v642_v21 = vrot.slane %v354_v23, 7  ;;  %v358_v47 = vrot.slane %v5132_v59, 1  ;;  %v5163_v23 = vunpack.c.l.bf16 %v4520_v20 }
  0x40   :  { %7694 = vst [vmem:[#allocation26_spill] sm:$0xff] %v5111_v35 }
  0x41   :  { %2001 = vmatmul.mubr.bf16.vlgmr.msra.gmra.mxu0 %v4936_v56  ;;  %2193 = vmatmul.mubr.bf16.vlgmr.msra.gmra.mxu1 %v4948_v63  ;;  %7697 = vst [vmem:[#allocation29_spill] sm:$0xff] %v5163_v23 }
  0x42   :  { %2258 = vmatpush1.bf16.msra.mxu1 %v4724_v16  ;;  %2547 = vmatpush1.bf16.msra.mxu0 %v4725_v17  ;;  %v5085_v16 = vunpack.c.l.bf16 %v4519_v36  ;;  %v5087_v17 = vunpack.c.h.bf16 %v4519_v36  ;;  %v964_v36 = vrot.slane %v420_v44, 7 }
  0x43   :  { %2259 = vmatprep.subr.bf16.mxu1 %v7519_v0  ;;  %2008 = vmatprep.mubr.bf16.mxu0 %v4983_v40 }
  0x44   :  { %7690 = vst [vmem:[#allocation23_spill] sm:$0xff] %v5085_v16  ;;  %7691 = vst [vmem:[#allocation24_spill] sm:$0xff] %v5087_v17  ;;  %2200 = vmatprep.mubr.bf16.mxu1 %v5038_v22  ;;  %2548 = vmatprep.subr.bf16.mxu0 %v7519_v0  ;;  %v970_v22 = vrot.slane %v5028_v15, 7  ;;  %v4733_v0 = vld [vmem:[%s7512_s1 + $0x128] sm:$0xff]   ;;  %v423_v44 = vrot.slane %v5085_v16, 1  ;;  %v973_v15 = vsel %vm573_vm1, %v965_v26, %v972_v54 }
  0x45   :  { %v5166_v54 = vpack.c.bf16 %v635_v53, %v627_v9  ;;  %v5185_v9 = vunpack.c.h.bf16 %v4520_v20 }
  0x46   :  { %2260 = vmatpush1.bf16.msra.mxu1 %v4726_v57  ;;  %2549 = vmatpush1.bf16.msra.mxu0 %v4729_v62  ;;  %v424_v57 = vrot.slane %v5087_v17, 1  ;;  %v952_v62 = vsel %vm573_vm1, %v950_v51, %v951_v60  ;;  %v963_v51 = vsel %vm573_vm1, %v4901_v37, %v962_v25  ;;  %v630_v60 = vsel %vm573_vm1, %v628_v2, %v629_v31 }
  0x47   :  { %2261 = vmatprep.subr.bf16.mxu1 %v7692_v43  ;;  %2550 = vmatprep.subr.bf16.mxu0 %v7692_v43  ;;  %v971_v61 = vsel %vm573_vm1, %v962_v25, %v970_v22  ;;  %v637_v2 = vsel %vm573_vm1, %v629_v31, %v636_v32  ;;  %v966_v22 = vsel %vm573_vm1, %v964_v36, %v965_v26  ;;  %v648_v25 = vrot.slane %v5079_v8, 7 }
  0x48   :  { %v425_v48 = vsel %vm339_vm0, %v423_v44, %v424_v57  ;;  %v643_v31 = vrot.slane %v356_v4, 7  ;;  %v650_v32 = vrot.slane %v355_v10, 7  ;;  %v357_v36 = vrot.slane %v5130_v58, 1  ;;  %7698 = vst [vmem:[#allocation30_spill] sm:$0xff] %v5166_v54  ;;  %7702 = vst [vmem:[#allocation34_spill] sm:$0xff] %v5185_v9 }
  0x49   :  { %2009 = vmatmul.mubr.bf16.gmra.mxu0 %v4985_v41  ;;  %2201 = vmatmul.mubr.bf16.gmra.mxu1 %v4994_v49  ;;  %v5160_v49 = vpack.c.bf16 %v959_v50, %v952_v62  ;;  %v984_v26 = vrot.slane %v5087_v17, 7  ;;  %v979_v4 = vrot.slane %v425_v48, 7  ;;  %v986_v10 = vrot.slane %v424_v57, 7  ;;  %v4731_v50 = vld [vmem:[%s7512_s1 + $0x90] sm:$0xff]  }
  0x4a   :  { %2262 = vmatpush1.bf16.msra.mxu1 %v4727_v18  ;;  %2016 = vmatprep.mubr.bf16.mxu0 %v5046_v30  ;;  %v640_v18 = vrot.slane %v5077_v3, 7  ;;  %v5170_v34 = vpack.c.bf16 %v637_v2, %v630_v60  ;;  %v5172_v33 = vpack.c.bf16 %v973_v15, %v966_v22  ;;  %v644_v48 = vsel %vm573_vm1, %v642_v21, %v643_v31 }
  0x4b   :  { %2263 = vmatprep.subr.bf16.mxu1 %v7692_v43  ;;  %2208 = vmatprep.mubr.bf16.mxu1 %v5056_v38  ;;  %v976_v38 = vrot.slane %v5085_v16, 7  ;;  %7696 = vst [vmem:[#allocation28_spill] sm:$0xff] %v5160_v49  ;;  %v5168_v16 = vpack.c.bf16 %v971_v61, %v963_v51  ;;  %v651_v57 = vsel %vm573_vm1, %v643_v31, %v650_v32  ;;  %v426_v60 = vrot.slane %v5163_v23, 1  ;;  %v4497_v61 = vld [vmem:[%s7513_s0 + $0x30] sm:$0xff]  }
  0x4c   :  { %2551 = vmatpush1.bf16.msra.mxu0 %v4733_v0  ;;  %v978_v0 = vrot.slane %v423_v44, 7  ;;  %7700 = vst [vmem:[#allocation32_spill] sm:$0xff] %v5170_v34  ;;  %7701 = vst [vmem:[#allocation33_spill] sm:$0xff] %v5172_v33  ;;  %v641_v44 = vsel %vm573_vm1, %v4901_v37, %v640_v18  ;;  %v649_v62 = vsel %vm573_vm1, %v640_v18, %v648_v25  ;;  %v656_v2 = vrot.slane %v357_v36, 7 }
  0x4d   :  { %2552 = vmatprep.subr.bf16.mxu0 %v7692_v43  ;;  %7699 = vst [vmem:[#allocation31_spill] sm:$0xff] %v5168_v16  ;;  %v359_v15 = vsel %vm339_vm0, %v357_v36, %v358_v47  ;;  %v977_v53 = vsel %vm573_vm1, %v4901_v37, %v976_v38  ;;  %v985_v51 = vsel %vm573_vm1, %v976_v38, %v984_v26  ;;  %v664_v22 = vrot.slane %v358_v47, 7  ;;  %v4732_v38 = vld [vmem:[%s7512_s1 + $0x88] sm:$0xff]   ;;  %v4521_v47 = vld [vmem:[%s7513_s0 + $0xf0] sm:$0xff]  }
  0x4e   :  { %2264 = vmatpush1.bf16.msra.mxu1 %v4728_v52  ;;  %v4741_v52 = vld [vmem:[%s7512_s1 + $0x118] sm:$0xff]   ;;  %v980_v20 = vsel %vm573_vm1, %v978_v0, %v979_v4  ;;  %v987_v21 = vsel %vm573_vm1, %v979_v4, %v986_v10  ;;  %v5206_v18 = vpack.c.bf16 %v651_v57, %v644_v48  ;;  %v5208_v25 = vpack.c.bf16 %v649_v62, %v641_v44  ;;  %v4745_v44 = vld [vmem:[%s7512_s1 + $0x110] sm:$0xff]  }
  0x4f   :  { %2265 = vmatprep.subr.bf16.mxu1 %v7692_v43  ;;  %v427_v31 = vrot.slane %v5185_v9, 1  ;;  %v662_v32 = vrot.slane %v5132_v59, 7  ;;  %v990_v36 = vrot.slane %v5163_v23, 7  ;;  %v436_v0 = vrot.slane %v4876_v28, 2 }
  0x50   :  { %2553 = vmatpush1.bf16.msra.mxu0 %v4737_v19  ;;  %v435_v19 = vrot.slane %v4874_v27, 2  ;;  %7703 = vst [vmem:[#allocation35_spill] sm:$0xff] %v5206_v18  ;;  %7704 = vst [vmem:[#allocation36_spill] sm:$0xff] %v5208_v25  ;;  %v654_v27 = vrot.slane %v5130_v58, 7  ;;  %v5219_v26 = vpack.c.bf16 %v987_v21, %v980_v20  ;;  %v5221_v4 = vpack.c.bf16 %v985_v51, %v977_v53 }
  0x51   :  { %2017 = vmatmul.mubr.bf16.gmra.mxu0 %v5040_v24  ;;  %2209 = vmatmul.mubr.bf16.gmra.mxu1 %v5058_v39  ;;  %v992_v10 = vrot.slane %v426_v60, 7  ;;  %v5228_v48 = vunpack.c.l.bf16 %v4497_v61  ;;  %v5230_v57 = vunpack.c.h.bf16 %v4497_v61  ;;  %v428_v20 = vsel %vm339_vm0, %v426_v60, %v427_v31 }
  0x52   :  { %2266 = vmatpush1.bf16.msra.mxu1 %v4730_v29  ;;  %2024 = vmatprep.mubr.bf16.mxu0 %v5109_v42  ;;  %v657_v29 = vrot.slane %v359_v15, 7  ;;  %7705 = vst [vmem:[#allocation37_spill] sm:$0xff] %v5219_v26  ;;  %7706 = vst [vmem:[#allocation38_spill] sm:$0xff] %v5221_v4  ;;  %v587_v62 = vrot.slane %v435_v19, 7  ;;  %v437_v28 = vsel %vm432_vm2, %v435_v19, %v436_v0  ;;  %v998_v61 = vrot.slane %v5185_v9, 7 }
  0x53   :  { %2267 = vmatprep.subr.bf16.mxu1 %v7692_v43  ;;  %2216 = vmatprep.mubr.bf16.mxu1 %v5160_v49  ;;  %v588_v53 = vrot.slane %v437_v28, 7  ;;  %v439_v21 = vrot.slane %v4914_v45, 2  ;;  %v440_v19 = vrot.slane %v4916_v46, 2  ;;  %v360_v45 = vrot.slane %v5228_v48, 1 }
  0x54   :  { %2554 = vmatprep.subr.bf16.mxu0 %v7692_v43  ;;  %v658_v15 = vsel %vm573_vm1, %v656_v2, %v657_v29  ;;  %v4734_v2 = vld [vmem:[%s7512_s1 + $0x80] sm:$0xff]   ;;  %v361_v46 = vrot.slane %v5230_v57, 1  ;;  %v1000_v49 = vrot.slane %v427_v31, 7 }
  0x55   :  { %2555 = vmatpush1.bf16.msra.mxu0 %v4741_v52  ;;  %v665_v52 = vsel %vm573_vm1, %v657_v29, %v664_v22  ;;  %v5247_v22 = vunpack.c.l.bf16 %v4521_v47  ;;  %v5249_v29 = vunpack.c.h.bf16 %v4521_v47  ;;  %v441_v28 = vsel %vm432_vm2, %v439_v21, %v440_v19  ;;  %v4747_v47 = vld [vmem:[%s7512_s1 + $0x108] sm:$0xff]  }
  0x56   :  { %2268 = vmatpush1.bf16.msra.mxu1 %v4731_v50  ;;  %2556 = vmatprep.subr.bf16.mxu0 %v7692_v43  ;;  %v438_v50 = vsel %vm432_vm2, %v436_v0, %v4932_v55  ;;  %v589_v0 = vsel %vm573_vm1, %v587_v62, %v588_v53  ;;  %v442_v62 = vsel %vm432_vm2, %v440_v19, %v4932_v55  ;;  %v596_v31 = vrot.slane %v441_v28, 7 }
  0x57   :  { %2269 = vmatprep.subr.bf16.mxu1 %v7692_v43  ;;  %v604_v51 = vrot.slane %v438_v50, 7  ;;  %7707 = vst [vmem:[#allocation39_spill] sm:$0xff] %v5247_v22  ;;  %7708 = vst [vmem:[#allocation40_spill] sm:$0xff] %v5249_v29  ;;  %v993_v50 = vrot.slane %v428_v20, 7  ;;  %v999_v20 = vsel %vm573_vm1, %v990_v36, %v998_v61  ;;  %v430_v19 = vrot.slane %v5249_v29, 1 }
  0x58   :  { %v5282_v9 = vpack.c.bf16 %v665_v52, %v658_v15  ;;  %v670_v15 = vrot.slane %v360_v45, 7 }
  0x59   :  { %2025 = vmatmul.mubr.bf16.gmra.mxu0 %v5111_v35  ;;  %2217 = vmatmul.mubr.bf16.gmra.mxu1 %v5118_v1  ;;  %v605_v60 = vsel %vm573_vm1, %v588_v53, %v604_v51  ;;  %v595_v53 = vrot.slane %v439_v21, 7  ;;  %v655_v51 = vsel %vm573_vm1, %v4901_v37, %v654_v27  ;;  %v429_v21 = vrot.slane %v5247_v22, 1 }
  0x5a   :  { %2270 = vmatpush1.bf16.msra.mxu1 %v4732_v38  ;;  %2032 = vmatprep.mubr.bf16.mxu0 %v5170_v34  ;;  %v5257_v38 = vpack.c.bf16 %v605_v60, %v589_v0  ;;  %v991_v0 = vsel %vm573_vm1, %v4901_v37, %v990_v36  ;;  %v610_v60 = vrot.slane %v442_v62, 7  ;;  %7709 = vst [vmem:[#allocation41_spill] sm:$0xff] %v5282_v9 }
  0x5b   :  { %2271 = vmatprep.subr.bf16.mxu1 %v7692_v43  ;;  %2224 = vmatprep.mubr.bf16.mxu1 %v5172_v33  ;;  %v663_v33 = vsel %vm573_vm1, %v654_v27, %v662_v32  ;;  %v362_v27 = vsel %vm339_vm0, %v360_v45, %v361_v46  ;;  %v668_v32 = vrot.slane %v5228_v48, 7  ;;  %v597_v28 = vsel %vm573_vm1, %v595_v53, %v596_v31 }
  0x5c   :  { %2557 = vmatpush1.bf16.msra.mxu0 %v4745_v44  ;;  %v4735_v44 = vld [vmem:[%s7512_s1 + $0xf8] sm:$0xff]   ;;  %v994_v23 = vsel %vm573_vm1, %v992_v10, %v993_v50  ;;  %v1001_v36 = vsel %vm573_vm1, %v993_v50, %v1000_v49  ;;  %v611_v61 = vsel %vm573_vm1, %v596_v31, %v610_v60  ;;  %v5289_v62 = vpack.c.bf16 %v663_v33, %v655_v51  ;;  %v4749_v49 = vld [vmem:[%s7512_s1 + $0x100] sm:$0xff]   ;;  %v4736_v33 = vld [vmem:[%s7512_s1 + $0xf0] sm:$0xff]  }
  0x5d   :  { %2558 = vmatprep.subr.bf16.mxu0 %v7692_v43  ;;  %v5291_v17 = vpack.c.bf16 %v999_v20, %v991_v0  ;;  %v676_v53 = vrot.slane %v5230_v57, 7  ;;  %v5297_v10 = vpack.c.bf16 %v611_v61, %v597_v28  ;;  %v671_v52 = vrot.slane %v362_v27, 7 }
  0x5e   :  { %2272 = vmatpush1.bf16.msra.mxu1 %v4734_v2  ;;  %v443_v2 = vrot.slane %v4956_v13, 2  ;;  %7710 = vst [vmem:[#allocation42_spill] sm:$0xff] %v5289_v62  ;;  %v4498_v13 = vld [vmem:[%s7513_s0 + $0x38] sm:$0xff]   ;;  %v431_v50 = vsel %vm339_vm0, %v429_v21, %v430_v19  ;;  %v5310_v51 = vpack.c.bf16 %v1001_v36, %v994_v23  ;;  %v678_v0 = vrot.slane %v361_v46, 7  ;;  %v4738_v36 = vld [vmem:[%s7512_s1 + $0xe8] sm:$0xff]  }
  0x5f   :  { %2273 = vmatprep.subr.bf16.mxu1 %v7692_v43  ;;  %7711 = vst [vmem:[#allocation43_spill] sm:$0xff] %v5291_v17  ;;  %7712 = vst [vmem:[#allocation44_spill] sm:$0xff] %v5297_v10  ;;  %v5314_v31 = vsel %vm573_vm1, %v4901_v37, %v668_v32  ;;  %v5316_v20 = vunpack.c.l.bf16 %v4498_v13  ;;  %v5318_v45 = vunpack.c.h.bf16 %v4498_v13  ;;  %v1006_v27 = vrot.slane %v429_v21, 7 }
  0x60   :  { %2559 = vmatpush1.bf16.msra.mxu0 %v4747_v47  ;;  %v444_v47 = vrot.slane %v4958_v14, 2  ;;  %7713 = vst [vmem:[#allocation45_spill] sm:$0xff] %v5310_v51  ;;  %v1007_v23 = vrot.slane %v431_v50, 7  ;;  %v1014_v28 = vrot.slane %v430_v19, 7  ;;  %v672_v61 = vsel %vm573_vm1, %v670_v15, %v671_v52 }
  0x61   :  { %2033 = vmatmul.mubr.bf16.gmra.mxu0 %v5166_v54  ;;  %2225 = vmatmul.mubr.bf16.gmra.mxu1 %v5168_v16  ;;  %v677_v13 = vsel %vm573_vm1, %v668_v32, %v676_v53  ;;  %v447_v21 = vrot.slane %v5018_v5, 2  ;;  %v679_v19 = vsel %vm573_vm1, %v671_v52, %v678_v0  ;;  %v448_v15 = vrot.slane %v5020_v7, 2 }
  0x62   :  { %2274 = vmatpush2.bf16.msra.mxu1 %v4735_v44  ;;  %2040 = vmatprep.mubr.bf16.mxu0 %v5206_v18  ;;  %v617_v44 = vrot.slane %v443_v2, 7  ;;  %v445_v14 = vsel %vm432_vm2, %v443_v2, %v444_v47  ;;  %v446_v60 = vsel %vm432_vm2, %v444_v47, %v4932_v55  ;;  %v4499_v2 = vld [vmem:[%s7513_s0 + $0x40] sm:$0xff]   ;;  %v1012_v32 = vrot.slane %v5249_v29, 7  ;;  %v4750_v47 = vld [vmem:[%s7512_s1 + $0x178] sm:$0xff]  }
  0x63   :  { %2275 = vmatprep.subr.bf16.mxu1 %v7692_v43  ;;  %2232 = vmatprep.mubr.bf16.mxu1 %v5219_v26  ;;  %v618_v46 = vrot.slane %v445_v14, 7  ;;  %v624_v26 = vrot.slane %v446_v60, 7  ;;  %v363_v53 = vrot.slane %v5316_v20, 1  ;;  %v364_v50 = vrot.slane %v5318_v45, 1 }
  0x64   :  { %2560 = vmatprep.subr.bf16.mxu0 %v7692_v43  ;;  %v1008_v52 = vsel %vm573_vm1, %v1006_v27, %v1007_v23  ;;  %v1015_v7 = vsel %vm573_vm1, %v1007_v23, %v1014_v28  ;;  %v5350_v0 = vunpack.c.l.bf16 %v4499_v2  ;;  %v5358_v14 = vunpack.c.h.bf16 %v4499_v2 }
  0x65   :  { %2561 = vmatpush1.bf16.msra.mxu0 %v4749_v49  ;;  %v1004_v49 = vrot.slane %v5247_v22, 7  ;;  %v625_v5 = vsel %vm573_vm1, %v618_v46, %v624_v26  ;;  %v4739_v26 = vld [vmem:[%s7512_s1 + $0xe0] sm:$0xff]   ;;  %v449_v60 = vsel %vm432_vm2, %v447_v21, %v448_v15  ;;  %v450_v27 = vsel %vm432_vm2, %v448_v15, %v4932_v55  ;;  %v4752_v15 = vld [vmem:[%s7512_s1 + $0x170] sm:$0xff]  }
  0x66   :  { %2276 = vmatpush2.bf16.msra.mxu1 %v4736_v33  ;;  %2562 = vmatprep.subr.bf16.mxu0 %v7692_v43  ;;  %v619_v33 = vsel %vm573_vm1, %v617_v44, %v618_v46  ;;  %v631_v46 = vrot.slane %v447_v21, 7  ;;  %v5365_v23 = vpack.c.bf16 %v679_v19, %v672_v61  ;;  %v365_v29 = vsel %vm339_vm0, %v363_v53, %v364_v50  ;;  %v4500_v19 = vld [vmem:[%s7513_s0 + $0x48] sm:$0xff]  }
  0x67   :  { %2277 = vmatprep.subr.bf16.mxu1 %v7692_v43  ;;  %v5352_v44 = vpack.c.bf16 %v625_v5, %v619_v33  ;;  %v1005_v28 = vsel %vm573_vm1, %v4901_v37, %v1004_v49  ;;  %v638_v33 = vrot.slane %v450_v27, 7  ;;  %v5369_v5 = vpack.c.bf16 %v1015_v7, %v1008_v52 }
  0x68   :  { %7715 = vst [vmem:[#allocation47_spill] sm:$0xff] %v5365_v23  ;;  %v1013_v2 = vsel %vm573_vm1, %v1004_v49, %v1012_v32  ;;  %v451_v21 = vrot.slane %v5077_v3, 2  ;;  %v684_v61 = vrot.slane %v363_v53, 7  ;;  %v452_v49 = vrot.slane %v5079_v8, 2  ;;  %v4740_v3 = vld [vmem:[%s7512_s1 + $0xd8] sm:$0xff]  }
  0x69   :  { %2041 = vmatmul.mubr.bf16.gmra.mxu0 %v5208_v25  ;;  %2233 = vmatmul.mubr.bf16.gmra.mxu1 %v5221_v4  ;;  %7714 = vst [vmem:[#allocation46_spill] sm:$0xff] %v5352_v44  ;;  %7716 = vst [vmem:[#allocation48_spill] sm:$0xff] %v5369_v5  ;;  %v692_v32 = vrot.slane %v364_v50, 7  ;;  %v366_v53 = vrot.slane %v5350_v0, 1  ;;  %v685_v27 = vrot.slane %v365_v29, 7  ;;  %v5402_v50 = vpack.c.bf16 %v677_v13, %v5314_v31 }
  0x6a   :  { %2278 = vmatpush2.bf16.msra.mxu1 %v4738_v36  ;;  %2048 = vmatprep.mubr.bf16.mxu0 %v5282_v9  ;;  %v632_v36 = vrot.slane %v449_v60, 7  ;;  %v454_v8 = vsel %vm432_vm2, %v452_v49, %v4932_v55  ;;  %v7719_v29 = vrot.slane %v4932_v55, 7  ;;  %v5416_v31 = vpack.c.bf16 %v1013_v2, %v1005_v28 }
  0x6b   :  { %2279 = vmatprep.subr.bf16.mxu1 %v7692_v43  ;;  %2240 = vmatprep.mubr.bf16.mxu1 %v5310_v51  ;;  %7718 = vst [vmem:[#allocation50_spill] sm:$0xff] %v5402_v50  ;;  %v682_v13 = vrot.slane %v5316_v20, 7  ;;  %v455_v51 = vrot.slane %v5130_v58, 2  ;;  %v696_v28 = vrot.slane %v5350_v0, 7  ;;  %v456_v58 = vrot.slane %v5132_v59, 2 }
  0x6c   :  { %2563 = vmatpush2.bf16.msra.mxu0 %v4750_v47  ;;  %v633_v60 = vsel %vm573_vm1, %v631_v46, %v632_v36  ;;  %v639_v52 = vsel %vm573_vm1, %v632_v36, %v638_v33  ;;  %v367_v47 = vrot.slane %v5358_v14, 1  ;;  %v453_v46 = vsel %vm432_vm2, %v451_v21, %v452_v49  ;;  %7721 = vst [vmem:[#allocation52_spill] sm:$0xff] %v5416_v31 }
  0x6d   :  { %2564 = vmatprep.subr.bf16.mxu0 %v7692_v43  ;;  %v5389_v7 = vpack.c.bf16 %v639_v52, %v633_v60  ;;  %v5395_v36 = vunpack.c.l.bf16 %v4500_v19  ;;  %v5397_v33 = vunpack.c.h.bf16 %v4500_v19  ;;  %v5407_v60 = vpack.c.bf16 %v7719_v29, %v7719_v29 }
  0x6e   :  { %2280 = vmatpush2.bf16.msra.mxu1 %v4739_v26  ;;  %v645_v26 = vrot.slane %v451_v21, 7  ;;  %v646_v52 = vrot.slane %v453_v46, 7  ;;  %v652_v49 = vrot.slane %v454_v8, 7  ;;  %v4754_v21 = vld [vmem:[%s7512_s1 + $0x168] sm:$0xff]   ;;  %v690_v19 = vrot.slane %v5318_v45, 7 }
  0x6f   :  { %7717 = vst [vmem:[#allocation49_spill] sm:$0xff] %v5389_v7  ;;  %2281 = vmatprep.subr.bf16.mxu1 %v7692_v43  ;;  %7720 = vst [vmem:[#allocation51_spill] sm:$0xff] %v5407_v60  ;;  %v368_v46 = vsel %vm339_vm0, %v366_v53, %v367_v47  ;;  %v693_v8 = vsel %vm573_vm1, %v685_v27, %v692_v32  ;;  %v369_v2 = vrot.slane %v5395_v36, 1 }
  0x70   :  { %2565 = vmatpush2.bf16.msra.mxu0 %v4752_v15  ;;  %v4742_v15 = vld [vmem:[%s7512_s1 + $0xd0] sm:$0xff]   ;;  %v647_v29 = vsel %vm573_vm1, %v645_v26, %v646_v52  ;;  %v699_v32 = vrot.slane %v368_v46, 7  ;;  %v4743_v26 = vld [vmem:[%s7512_s1 + $0xc8] sm:$0xff]   ;;  %v683_v4 = vsel %vm573_vm1, %v4901_v37, %v682_v13 }
  0x71   :  { %2049 = vmatmul.mubr.bf16.gmra.mxu0 %v5289_v62  ;;  %2241 = vmatmul.mubr.bf16.gmra.mxu1 %v5291_v17  ;;  %v4501_v17 = vld [vmem:[%s7513_s0 + $0x50] sm:$0xff]  }
  0x72   :  { %2282 = vmatpush2.bf16.msra.mxu1 %v4740_v3  ;;  %2056 = vmatprep.mubr.bf16.mxu0 %v5365_v23  ;;  %v686_v3 = vsel %vm573_vm1, %v684_v61, %v685_v27  ;;  %v698_v61 = vrot.slane %v366_v53, 7  ;;  %v5448_v59 = vunpack.c.l.bf16 %v4501_v17  ;;  %v457_v53 = vsel %vm432_vm2, %v455_v51, %v456_v58 }
  0x73   :  { %2283 = vmatprep.subr.bf16.mxu1 %v7692_v43  ;;  %2248 = vmatprep.mubr.bf16.mxu1 %v5369_v5  ;;  %v653_v5 = vsel %vm573_vm1, %v646_v52, %v652_v49  ;;  %v5441_v22 = vpack.c.bf16 %v693_v8, %v686_v3  ;;  %v706_v52 = vrot.slane %v367_v47, 7  ;;  %v659_v49 = vrot.slane %v455_v51, 7 }
  0x74   :  { %2566 = vmatprep.subr.bf16.mxu0 %v7692_v43  ;;  %v5435_v27 = vpack.c.bf16 %v653_v5, %v647_v29  ;;  %v704_v5 = vrot.slane %v5358_v14, 7  ;;  %v5458_v47 = vunpack.c.h.bf16 %v4501_v17  ;;  %v660_v3 = vrot.slane %v457_v53, 7  ;;  %v4756_v29 = vld [vmem:[%s7512_s1 + $0x160] sm:$0xff]  }
  0x75   :  { %2567 = vmatpush2.bf16.msra.mxu0 %v4754_v21  ;;  %7723 = vst [vmem:[#allocation54_spill] sm:$0xff] %v5441_v22  ;;  %v458_v21 = vsel %vm432_vm2, %v456_v58, %v4932_v55  ;;  %v691_v51 = vsel %vm573_vm1, %v682_v13, %v690_v19  ;;  %v700_v58 = vsel %vm573_vm1, %v698_v61, %v699_v32  ;;  %v4744_v17 = vld [vmem:[%s7512_s1 + $0xc0] sm:$0xff]   ;;  %v712_v19 = vrot.slane %v369_v2, 7 }
  0x76   :  { %7722 = vst [vmem:[#allocation53_spill] sm:$0xff] %v5435_v27  ;;  %2284 = vmatpush2.bf16.msra.mxu1 %v4742_v15  ;;  %2568 = vmatprep.subr.bf16.mxu0 %v7692_v43  ;;  %v7724_v15 = vrot.slane %v5397_v33, 1  ;;  %v666_v8 = vrot.slane %v458_v21, 7  ;;  %v707_v53 = vsel %vm573_vm1, %v699_v32, %v706_v52  ;;  %v661_v21 = vsel %vm573_vm1, %v659_v49, %v660_v3 }
  0x77   :  { %2285 = vmatprep.subr.bf16.mxu1 %v7692_v43  ;;  %v705_v13 = vsel %vm573_vm1, %v696_v28, %v704_v5  ;;  %v372_v16 = vrot.slane %v5448_v59, 1  ;;  %v373_v1 = vrot.slane %v5458_v47, 1  ;;  %v459_v32 = vrot.slane %v5228_v48, 2  ;;  %v4746_v48 = vld [vmem:[%s7512_s1 + $0x1b8] sm:$0xff]  }
  0x78   :  { %v5456_v46 = vsel %vm339_vm0, %v369_v2, %v7724_v15  ;;  %v697_v15 = vsel %vm573_vm1, %v4901_v37, %v696_v28  ;;  %v460_v52 = vrot.slane %v5230_v57, 2  ;;  %v5489_v49 = vpack.c.bf16 %v691_v51, %v683_v4 }
  0x79   :  { %2057 = vmatmul.mubr.bf16.gmra.mxu0 %v5402_v50  ;;  %2249 = vmatmul.mubr.bf16.gmra.mxu1 %v5416_v31  ;;  %v667_v31 = vsel %vm573_vm1, %v660_v3, %v666_v8  ;;  %v713_v61 = vrot.slane %v5456_v46, 7  ;;  %v5491_v28 = vpack.c.bf16 %v707_v53, %v700_v58  ;;  %v464_v2 = vrot.slane %v5318_v45, 2  ;;  %v4502_v8 = vld [vmem:[%s7513_s0 + $0x58] sm:$0xff]  }
  0x7a   :  { %2286 = vmatpush2.bf16.msra.mxu1 %v4743_v26  ;;  %2064 = vmatprep.mubr.bf16.mxu0 %v5441_v22  ;;  %v5480_v26 = vpack.c.bf16 %v667_v31, %v661_v21  ;;  %7726 = vst [vmem:[#allocation56_spill] sm:$0xff] %v5489_v49  ;;  %v463_v31 = vrot.slane %v5316_v20, 2  ;;  %v5499_v57 = vpack.c.bf16 %v705_v13, %v697_v15  ;;  %v673_v46 = vrot.slane %v459_v32, 7 }
  0x7b   :  { %2287 = vmatprep.subr.bf16.mxu1 %v7692_v43  ;;  %2289 = vmatprep.mubr.bf16.mxu1 %v4985_v41  ;;  %v4757_v41 = vld [vmem:[%s7512_s1 + $0x158] sm:$0xff]   ;;  %7727 = vst [vmem:[#allocation57_spill] sm:$0xff] %v5491_v28  ;;  %v461_v5 = vsel %vm432_vm2, %v459_v32, %v460_v52  ;;  %v462_v4 = vsel %vm432_vm2, %v460_v52, %v4932_v55  ;;  %v7729_v45 = vrot.slane %v5397_v33, 1  ;;  %v4759_v52 = vld [vmem:[%s7512_s1 + $0x150] sm:$0xff]  }
  0x7c   :  { %7725 = vst [vmem:[#allocation55_spill] sm:$0xff] %v5480_v26  ;;  %2569 = vmatpush2.bf16.msra.mxu0 %v4756_v29  ;;  %7728 = vst [vmem:[#allocation58_spill] sm:$0xff] %v5499_v57  ;;  %v714_v20 = vsel %vm573_vm1, %v712_v19, %v713_v61  ;;  %v674_v29 = vrot.slane %v461_v5, 7  ;;  %v680_v51 = vrot.slane %v462_v4, 7  ;;  %v374_v58 = vsel %vm339_vm0, %v372_v16, %v373_v1 }
  0x7d   :  { %2570 = vmatprep.subr.bf16.mxu0 %v7692_v43  ;;  %v720_v3 = vrot.slane %v7729_v45, 7  ;;  %v465_v15 = vsel %vm432_vm2, %v463_v31, %v464_v2  ;;  %v687_v53 = vrot.slane %v463_v31, 7  ;;  %v5526_v31 = vunpack.c.l.bf16 %v4502_v8 }
  0x7e   :  { %2288 = vmatpush2.bf16.msra.mxu1 %v4744_v17  ;;  %v466_v17 = vsel %vm432_vm2, %v464_v2, %v4932_v55  ;;  %v675_v21 = vsel %vm573_vm1, %v673_v46, %v674_v29  ;;  %v681_v13 = vsel %vm573_vm1, %v674_v29, %v680_v51  ;;  %v688_v19 = vrot.slane %v465_v15, 7 }
  0x7f   :  { %2835 = vmatprep.subr.bf16.mxu1 %v7692_v43  ;;  %v694_v32 = vrot.slane %v466_v17, 7  ;;  %v5528_v2 = vunpack.c.h.bf16 %v4502_v8  ;;  %v5530_v5 = vpack.c.bf16 %v681_v13, %v675_v21  ;;  %v467_v4 = vrot.slane %v5350_v0, 2  ;;  %v4503_v0 = vld [vmem:[%s7513_s0 + $0x60] sm:$0xff]  }
  0x80   :  { %2571 = vmatpush2.bf16.msra.mxu0 %v4757_v41  ;;  %v4748_v41 = vld [vmem:[%s7512_s1 + $0x1b0] sm:$0xff]   ;;  %v721_v46 = vsel %vm573_vm1, %v713_v61, %v720_v3  ;;  %v468_v29 = vrot.slane %v5358_v14, 2  ;;  %v710_v51 = vrot.slane %v5395_v36, 7  ;;  %v718_v8 = vrot.slane %v5397_v33, 7 }
  0x81   :  { %2065 = vmatmul.mubr.bf16.gmra.mxu0 %v5489_v49  ;;  %2290 = vmatmul.mubr.bf16.vlgmr.msra.gmra.mxu1 %v5407_v60  ;;  %7730 = vst [vmem:[#allocation59_spill] sm:$0xff] %v5530_v5  ;;  %v695_v45 = vsel %vm573_vm1, %v688_v19, %v694_v32  ;;  %v726_v15 = vrot.slane %v372_v16, 7  ;;  %v727_v61 = vrot.slane %v374_v58, 7  ;;  %v701_v14 = vrot.slane %v467_v4, 7  ;;  %v4751_v58 = vld [vmem:[%s7512_s1 + $0x1a8] sm:$0xff]  }
  0x82   :  { %2836 = vmatpush1.bf16.msra.mxu1 %v4746_v48  ;;  %2072 = vmatprep.mubr.bf16.mxu0 %v5491_v28  ;;  %v689_v48 = vsel %vm573_vm1, %v687_v53, %v688_v19  ;;  %v469_v3 = vsel %vm432_vm2, %v467_v4, %v468_v29  ;;  %v470_v53 = vsel %vm432_vm2, %v468_v29, %v4932_v55  ;;  %v734_v16 = vrot.slane %v373_v1, 7  ;;  %v4761_v1 = vld [vmem:[%s7512_s1 + $0x148] sm:$0xff]  }
  0x83   :  { %2297 = vmatprep.mubr.bf16.mxu1 %v5040_v24  ;;  %2837 = vmatprep.subr.bf16.mxu1 %v7692_v43  ;;  %v5544_v17 = vpack.c.bf16 %v695_v45, %v689_v48  ;;  %v5550_v21 = vpack.c.bf16 %v721_v46, %v714_v20  ;;  %v375_v13 = vrot.slane %v5526_v31, 1  ;;  %v376_v19 = vrot.slane %v5528_v2, 1 }
  0x84   :  { %2572 = vmatprep.subr.bf16.mxu0 %v7692_v43  ;;  %v5559_v32 = vunpack.c.l.bf16 %v4503_v0  ;;  %v5561_v4 = vunpack.c.h.bf16 %v4503_v0  ;;  %v702_v20 = vrot.slane %v469_v3, 7  ;;  %v719_v46 = vsel %vm573_vm1, %v710_v51, %v718_v8 }
  0x85   :  { %7731 = vst [vmem:[#allocation60_spill] sm:$0xff] %v5544_v17  ;;  %2573 = vmatpush2.bf16.msra.mxu0 %v4759_v52  ;;  %7732 = vst [vmem:[#allocation61_spill] sm:$0xff] %v5550_v21  ;;  %v708_v52 = vrot.slane %v470_v53, 7  ;;  %v728_v48 = vsel %vm573_vm1, %v726_v15, %v727_v61  ;;  %v724_v45 = vrot.slane %v5448_v59, 7  ;;  %v471_v0 = vrot.slane %v5395_v36, 2  ;;  %v4753_v36 = vld [vmem:[%s7512_s1 + $0x1a0] sm:$0xff]  }
  0x86   :  { %2838 = vmatpush1.bf16.msra.mxu1 %v4748_v41  ;;  %2574 = vmatprep.subr.bf16.mxu0 %v7692_v43  ;;  %v711_v41 = vsel %vm573_vm1, %v4901_v37, %v710_v51  ;;  %v703_v29 = vsel %vm573_vm1, %v701_v14, %v702_v20  ;;  %v735_v3 = vsel %vm573_vm1, %v727_v61, %v734_v16  ;;  %v732_v51 = vrot.slane %v5458_v47, 7  ;;  %v4763_v61 = vld [vmem:[%s7512_s1 + $0x140] sm:$0xff]  }
  0x87   :  { %2839 = vmatprep.subr.bf16.mxu1 %v7692_v43  ;;  %v377_v8 = vsel %vm339_vm0, %v375_v13, %v376_v19  ;;  %v709_v53 = vsel %vm573_vm1, %v702_v20, %v708_v52  ;;  %v378_v15 = vrot.slane %v5559_v32, 1  ;;  %v379_v24 = vrot.slane %v5561_v4, 1  ;;  %v4504_v52 = vld [vmem:[%s7513_s0 + $0x68] sm:$0xff]  }
  0x88   :  { %v5586_v14 = vpack.c.bf16 %v709_v53, %v703_v29  ;;  %v5592_v16 = vpack.c.bf16 %v719_v46, %v711_v41  ;;  %v746_v20 = vrot.slane %v5528_v2, 7  ;;  %v715_v29 = vrot.slane %v471_v0, 7 }
  0x89   :  { %2073 = vmatmul.mubr.bf16.gmra.mxu0 %v5499_v57  ;;  %2298 = vmatmul.mubr.bf16.gmra.mxu1 %v5257_v38  ;;  %v741_v41 = vrot.slane %v377_v8, 7  ;;  %v725_v39 = vsel %vm573_vm1, %v4901_v37, %v724_v45  ;;  %v733_v63 = vsel %vm573_vm1, %v724_v45, %v732_v51  ;;  %v748_v23 = vrot.slane %v376_v19, 7 }
  0x8a   :  { %2080 = vmatprep.mubr.bf16.mxu0 %v5550_v21  ;;  %2305 = vmatprep.mubr.bf16.mxu1 %v5111_v35  ;;  %7733 = vst [vmem:[#allocation62_spill] sm:$0xff] %v5586_v14  ;;  %v472_v35 = vrot.slane %v5397_v33, 2  ;;  %7734 = vst [vmem:[#allocation63_spill] sm:$0xff] %v5592_v16  ;;  %v5604_v33 = vld [vmem:[%s7512_s1 + $0x238] sm:$0xff]   ;;  %v5609_v21 = vpack.c.bf16 %v735_v3, %v728_v48  ;;  %v380_v12 = vsel %vm339_vm0, %v378_v15, %v379_v24 }
  0x8b   :  { %2840 = vmatpush1.bf16.msra.mxu1 %v4751_v58  ;;  %2575 = vmatpush2.bf16.msra.mxu0 %v4761_v1  ;;  %v738_v58 = vrot.slane %v5526_v31, 7  ;;  %v740_v1 = vrot.slane %v375_v13, 7  ;;  %v5615_v11 = vunpack.c.l.bf16 %v4504_v52  ;;  %v4755_v13 = vld [vmem:[%s7512_s1 + $0x198] sm:$0xff]   ;;  %v5622_v48 = vunpack.c.h.bf16 %v4504_v52 }
  0x8c   :  { %2841 = vmatprep.subr.bf16.mxu1 %v7692_v43  ;;  %2576 = vmatprep.subr.bf16.mxu0 %v7692_v43  ;;  %v473_v46 = vsel %vm432_vm2, %v471_v0, %v472_v35  ;;  %v474_v53 = vsel %vm432_vm2, %v472_v35, %v4932_v55  ;;  %7735 = vst [vmem:[#allocation64_spill] sm:$0xff] %v5609_v21  ;;  %v752_v51 = vrot.slane %v5559_v32, 7 }
  0x8d   :  { %v716_v28 = vrot.slane %v473_v46, 7  ;;  %v722_v22 = vrot.slane %v474_v53, 7  ;;  %v739_v35 = vsel %vm573_vm1, %v4901_v37, %v738_v58  ;;  %v742_v0 = vsel %vm573_vm1, %v740_v1, %v741_v41 }
  0x8e   :  { %v747_v3 = vsel %vm573_vm1, %v738_v58, %v746_v20  ;;  %v749_v52 = vsel %vm573_vm1, %v741_v41, %v748_v23  ;;  %v760_v1 = vrot.slane %v5561_v4, 7  ;;  %v381_v58 = vrot.slane %v5615_v11, 1  ;;  %v4758_v20 = vld [vmem:[%s7512_s1 + $0x190] sm:$0xff]  }
  0x8f   :  { %2842 = vmatpush1.bf16.msra.mxu1 %v4753_v36  ;;  %2577 = vmatpush2.bf16.msra.mxu0 %v4763_v61  ;;  %v717_v45 = vsel %vm573_vm1, %v715_v29, %v716_v28  ;;  %v723_v19 = vsel %vm573_vm1, %v716_v28, %v722_v22  ;;  %v754_v36 = vrot.slane %v378_v15, 7  ;;  %v755_v22 = vrot.slane %v380_v12, 7 }
  0x90   :  { %2843 = vmatprep.subr.bf16.mxu1 %v7692_v43  ;;  %4594 = vmatprep.subr.bf16.mxu0 %v5604_v33  ;;  %v5633_v8 = vpack.c.bf16 %v723_v19, %v717_v45  ;;  %v475_v28 = vrot.slane %v5448_v59, 2  ;;  %v476_v61 = vrot.slane %v5458_v47, 2  ;;  %v762_v29 = vrot.slane %v379_v24, 7 }
  0x91   :  { %2081 = vmatmul.mubr.bf16.gmra.mxu0 %v5592_v16  ;;  %2306 = vmatmul.mubr.bf16.gmra.mxu1 %v5297_v10  ;;  %v382_v46 = vrot.slane %v5622_v48, 1  ;;  %v5650_v24 = vpack.c.bf16 %v733_v63, %v725_v39  ;;  %v5652_v47 = vpack.c.bf16 %v747_v3, %v739_v35  ;;  %v5654_v53 = vpack.c.bf16 %v749_v52, %v742_v0  ;;  %v4507_v63 = vld [vmem:[%s7513_s0 + $0x80] sm:$0xff]  }
  0x92   :  { %7736 = vst [vmem:[#allocation65_spill] sm:$0xff] %v5633_v8  ;;  %2088 = vmatprep.mubr.bf16.mxu0 %v5609_v21  ;;  %2313 = vmatprep.mubr.bf16.mxu1 %v5166_v54  ;;  %v477_v12 = vsel %vm432_vm2, %v475_v28, %v476_v61  ;;  %v478_v59 = vsel %vm432_vm2, %v476_v61, %v4932_v55  ;;  %v729_v23 = vrot.slane %v475_v28, 7  ;;  %v766_v19 = vrot.slane %v5615_v11, 7  ;;  %v4505_v61 = vld [vmem:[%s7513_s0 + $0x70] sm:$0xff]  }
  0x93   :  { %2844 = vmatpush1.bf16.msra.mxu1 %v4755_v13  ;;  %7737 = vst [vmem:[#allocation66_spill] sm:$0xff] %v5650_v24  ;;  %7738 = vst [vmem:[#allocation67_spill] sm:$0xff] %v5652_v47  ;;  %v730_v15 = vrot.slane %v477_v12, 7  ;;  %v736_v41 = vrot.slane %v478_v59, 7  ;;  %v756_v13 = vsel %vm573_vm1, %v754_v36, %v755_v22  ;;  %v753_v45 = vsel %vm573_vm1, %v4901_v37, %v752_v51  ;;  %v4760_v36 = vld [vmem:[%s7512_s1 + $0x188] sm:$0xff]  }
  0x94   :  { %2845 = vmatprep.subr.bf16.mxu1 %v7692_v43  ;;  %7739 = vst [vmem:[#allocation68_spill] sm:$0xff] %v5654_v53  ;;  %v763_v39 = vsel %vm573_vm1, %v755_v22, %v762_v29  ;;  %v479_v3 = vrot.slane %v5526_v31, 2  ;;  %v761_v28 = vsel %vm573_vm1, %v752_v51, %v760_v1  ;;  %v383_v52 = vsel %vm339_vm0, %v381_v58, %v382_v46 }
  0x95   :  { %v731_v35 = vsel %vm573_vm1, %v729_v23, %v730_v15  ;;  %v737_v0 = vsel %vm573_vm1, %v730_v15, %v736_v41  ;;  %v774_v12 = vrot.slane %v5622_v48, 7  ;;  %v5681_v22 = vunpack.c.l.bf16 %v4505_v61 }
  0x96   :  { %v5676_v59 = vpack.c.bf16 %v737_v0, %v731_v35  ;;  %v5683_v31 = vunpack.c.h.bf16 %v4505_v61  ;;  %v5685_v29 = vunpack.c.l.bf16 %v4507_v63  ;;  %v480_v51 = vrot.slane %v5528_v2, 2  ;;  %v4762_v2 = vld [vmem:[%s7512_s1 + $0x180] sm:$0xff]  }
  0x97   :  { %2846 = vmatpush1.bf16.msra.mxu1 %v4758_v20  ;;  %v5690_v1 = vpack.c.bf16 %v763_v39, %v756_v13  ;;  %v768_v20 = vrot.slane %v381_v58, 7  ;;  %v5692_v23 = vunpack.c.h.bf16 %v4507_v63  ;;  %v743_v15 = vrot.slane %v479_v3, 7 }
  0x98   :  { %7740 = vst [vmem:[#allocation69_spill] sm:$0xff] %v5676_v59  ;;  %2847 = vmatprep.subr.bf16.mxu1 %v7692_v43  ;;  %v776_v41 = vrot.slane %v382_v46, 7  ;;  %v767_v35 = vsel %vm573_vm1, %v4901_v37, %v766_v19  ;;  %v481_v61 = vsel %vm432_vm2, %v479_v3, %v480_v51  ;;  %v482_v0 = vsel %vm432_vm2, %v480_v51, %v4932_v55 }
  0x99   :  { %2089 = vmatmul.mubr.bf16.gmra.mxu0 %v5650_v24  ;;  %2314 = vmatmul.mubr.bf16.gmra.mxu1 %v5352_v44  ;;  %7741 = vst [vmem:[#allocation70_spill] sm:$0xff] %v5690_v1  ;;  %v769_v13 = vrot.slane %v383_v52, 7  ;;  %v775_v58 = vsel %vm573_vm1, %v766_v19, %v774_v12  ;;  %v744_v63 = vrot.slane %v481_v61, 7  ;;  %v750_v39 = vrot.slane %v482_v0, 7  ;;  %v4508_v0 = vld [vmem:[%s7513_s0 + $0x88] sm:$0xff]  }
  0x9a   :  { %2096 = vmatprep.mubr.bf16.mxu0 %v5654_v53  ;;  %2321 = vmatprep.mubr.bf16.mxu1 %v5208_v25  ;;  %v384_v46 = vrot.slane %v5681_v22, 1  ;;  %v385_v25 = vrot.slane %v5683_v31, 1  ;;  %v387_v3 = vrot.slane %v5685_v29, 1  ;;  %v483_v51 = vrot.slane %v5559_v32, 2  ;;  %v4765_v32 = vld [vmem:[%s7512_s1 + $0x1f8] sm:$0xff]  }
  0x9b   :  { %2848 = vmatpush1.bf16.msra.mxu1 %v4760_v36  ;;  %v388_v36 = vrot.slane %v5692_v23, 1  ;;  %v745_v54 = vsel %vm573_vm1, %v743_v15, %v744_v63  ;;  %v751_v52 = vsel %vm573_vm1, %v744_v63, %v750_v39  ;;  %v484_v19 = vrot.slane %v5561_v4, 2 }
  0x9c   :  { %2849 = vmatprep.subr.bf16.mxu1 %v7692_v43  ;;  %v5712_v12 = vpack.c.bf16 %v761_v28, %v753_v45  ;;  %v5714_v61 = vpack.c.bf16 %v775_v58, %v767_v35  ;;  %v5719_v53 = vpack.c.bf16 %v751_v52, %v745_v54  ;;  %v770_v15 = vsel %vm573_vm1, %v768_v20, %v769_v13 }
  0x9d   :  { %v777_v63 = vsel %vm573_vm1, %v769_v13, %v776_v41  ;;  %v485_v4 = vsel %vm432_vm2, %v483_v51, %v484_v19  ;;  %v486_v45 = vsel %vm432_vm2, %v484_v19, %v4932_v55  ;;  %v386_v54 = vsel %vm339_vm0, %v384_v46, %v385_v25 }
  0x9e   :  { %7742 = vst [vmem:[#allocation71_spill] sm:$0xff] %v5712_v12  ;;  %7743 = vst [vmem:[#allocation72_spill] sm:$0xff] %v5714_v61  ;;  %v757_v28 = vrot.slane %v483_v51, 7  ;;  %v758_v35 = vrot.slane %v485_v4, 7  ;;  %v780_v20 = vrot.slane %v5681_v22, 7  ;;  %v389_v41 = vsel %vm339_vm0, %v387_v3, %v388_v36  ;;  %v4766_v4 = vld [vmem:[%s7512_s1 + $0x1f0] sm:$0xff]  }
  0x9f   :  { %7744 = vst [vmem:[#allocation73_spill] sm:$0xff] %v5719_v53  ;;  %2850 = vmatpush1.bf16.msra.mxu1 %v4762_v2  ;;  %v764_v2 = vrot.slane %v486_v45, 7  ;;  %v5737_v13 = vunpack.c.l.bf16 %v4508_v0  ;;  %v5739_v58 = vunpack.c.h.bf16 %v4508_v0  ;;  %v788_v39 = vrot.slane %v5683_v31, 7 }
  0xa0   :  { %2851 = vmatprep.subr.bf16.mxu1 %v7692_v43  ;;  %v759_v52 = vsel %vm573_vm1, %v757_v28, %v758_v35  ;;  %v487_v19 = vrot.slane %v5615_v11, 2  ;;  %v782_v45 = vrot.slane %v384_v46, 7  ;;  %v810_v0 = vrot.slane %v387_v3, 7  ;;  %v4509_v46 = vld [vmem:[%s7513_s0 + $0x90] sm:$0xff]  }
  0xa1   :  { %2097 = vmatmul.mubr.bf16.gmra.mxu0 %v5652_v47  ;;  %2322 = vmatmul.mubr.bf16.gmra.mxu1 %v5389_v7  ;;  %v765_v51 = vsel %vm573_vm1, %v758_v35, %v764_v2  ;;  %v811_v9 = vrot.slane %v389_v41, 7  ;;  %v826_v18 = vrot.slane %v388_v36, 7  ;;  %v488_v28 = vrot.slane %v5622_v48, 2 }
  0xa2   :  { %2104 = vmatprep.mubr.bf16.mxu0 %v5690_v1  ;;  %2329 = vmatprep.mubr.bf16.mxu1 %v5289_v62  ;;  %v783_v62 = vrot.slane %v386_v54, 7  ;;  %v790_v1 = vrot.slane %v385_v25, 7  ;;  %v5748_v21 = vpack.c.bf16 %v765_v51, %v759_v52  ;;  %v5752_v35 = vpack.c.bf16 %v777_v63, %v770_v15  ;;  %v4768_v15 = vld [vmem:[%s7512_s1 + $0x1e8] sm:$0xff]  }
  0xa3   :  { %2852 = vmatpush2.bf16.msra.mxu1 %v4765_v32  ;;  %v390_v11 = vrot.slane %v5737_v13, 1  ;;  %v391_v32 = vrot.slane %v5739_v58, 1  ;;  %v771_v25 = vrot.slane %v487_v19, 7  ;;  %v781_v54 = vsel %vm573_vm1, %v4901_v37, %v780_v20 }
  0xa4   :  { %7745 = vst [vmem:[#allocation74_spill] sm:$0xff] %v5748_v21  ;;  %2853 = vmatprep.subr.bf16.mxu1 %v7692_v43  ;;  %7746 = vst [vmem:[#allocation75_spill] sm:$0xff] %v5752_v35  ;;  %v789_v3 = vsel %vm573_vm1, %v780_v20, %v788_v39  ;;  %v489_v36 = vsel %vm432_vm2, %v487_v19, %v488_v28  ;;  %v490_v48 = vsel %vm432_vm2, %v488_v28, %v4932_v55 }
  0xa5   :  { %v784_v63 = vsel %vm573_vm1, %v782_v45, %v783_v62  ;;  %v791_v2 = vsel %vm573_vm1, %v783_v62, %v790_v1  ;;  %v772_v41 = vrot.slane %v489_v36, 7  ;;  %v778_v52 = vrot.slane %v490_v48, 7 }
  0xa6   :  { %v812_v20 = vsel %vm573_vm1, %v810_v0, %v811_v9  ;;  %v827_v39 = vsel %vm573_vm1, %v811_v9, %v826_v18  ;;  %v5775_v51 = vunpack.c.l.bf16 %v4509_v46  ;;  %v5777_v19 = vunpack.c.h.bf16 %v4509_v46  ;;  %v4510_v18 = vld [vmem:[%s7513_s0 + $0x98] sm:$0xff]  }
  0xa7   :  { %2854 = vmatpush2.bf16.msra.mxu1 %v4766_v4  ;;  %v5782_v62 = vsel %vm339_vm0, %v390_v11, %v391_v32  ;;  %v773_v1 = vsel %vm573_vm1, %v771_v25, %v772_v41  ;;  %v779_v4 = vsel %vm573_vm1, %v772_v41, %v778_v52  ;;  %v5786_v45 = vpack.c.bf16 %v791_v2, %v784_v63 }
  0xa8   :  { %2855 = vmatprep.subr.bf16.mxu1 %v7692_v43  ;;  %v5788_v0 = vpack.c.bf16 %v789_v3, %v781_v54  ;;  %v5794_v28 = vpack.c.bf16 %v779_v4, %v773_v1  ;;  %v5796_v46 = vpack.c.bf16 %v827_v39, %v812_v20  ;;  %v5799_v25 = vrot.slane %v390_v11, 7  ;;  %v4511_v54 = vld [vmem:[%s7513_s0 + $0xa0] sm:$0xff]   ;;  %v4512_v3 = vld [vmem:[%s7513_s0 + $0xa8] sm:$0xff]   ;;  %v4513_v11 = vld [vmem:[%s7513_s0 + $0xb0] sm:$0xff]  }
  0xa9   :  { %2105 = vmatmul.mubr.bf16.gmra.mxu0 %v5712_v12  ;;  %2330 = vmatmul.mubr.bf16.gmra.mxu1 %v5435_v27  ;;  %7747 = vst [vmem:[#allocation76_spill] sm:$0xff] %v5786_v45  ;;  %v5801_v48 = vrot.slane %v391_v32, 7  ;;  %v491_v32 = vrot.slane %v5681_v22, 2  ;;  %v5817_v41 = vunpack.c.l.bf16 %v4510_v18  ;;  %v5819_v52 = vunpack.c.h.bf16 %v4510_v18 }
  0xaa   :  { %2112 = vmatprep.mubr.bf16.mxu0 %v5752_v35  ;;  %2337 = vmatprep.mubr.bf16.mxu1 %v5402_v50  ;;  %7748 = vst [vmem:[#allocation77_spill] sm:$0xff] %v5788_v0  ;;  %7749 = vst [vmem:[#allocation78_spill] sm:$0xff] %v5794_v28  ;;  %v492_v20 = vrot.slane %v5683_v31, 2  ;;  %v495_v39 = vrot.slane %v5685_v29, 2  ;;  %v5823_v1 = vunpack.c.l.bf16 %v4511_v54  ;;  %v5825_v4 = vunpack.c.h.bf16 %v4511_v54 }
  0xab   :  { %2856 = vmatpush2.bf16.msra.mxu1 %v4768_v15  ;;  %v5827_v63 = vunpack.c.l.bf16 %v4512_v3  ;;  %v5829_v2 = vunpack.c.h.bf16 %v4512_v3  ;;  %v5831_v15 = vunpack.c.l.bf16 %v4513_v11  ;;  %v5833_v36 = vunpack.c.h.bf16 %v4513_v11  ;;  %v4769_v3 = vld [vmem:[%s7512_s1 + $0x1e0] sm:$0xff]  }
  0xac   :  { %2857 = vmatprep.subr.bf16.mxu1 %v7692_v43  ;;  %v493_v22 = vsel %vm432_vm2, %v491_v32, %v492_v20  ;;  %v494_v18 = vsel %vm432_vm2, %v492_v20, %v4932_v55  ;;  %v785_v31 = vrot.slane %v491_v32, 7  ;;  %v496_v50 = vrot.slane %v5692_v23, 2 }
  0xad   :  { %v786_v54 = vrot.slane %v493_v22, 7  ;;  %v792_v9 = vrot.slane %v494_v18, 7  ;;  %v813_v11 = vrot.slane %v495_v39, 7  ;;  %v499_v20 = vrot.slane %v5737_v13, 2 }
  0xae   :  { %v500_v35 = vrot.slane %v5739_v58, 2  ;;  %v497_v18 = vsel %vm432_vm2, %v495_v39, %v496_v50  ;;  %v498_v27 = vsel %vm432_vm2, %v496_v50, %v4932_v55  ;;  %v507_v30 = vrot.slane %v5817_v41, 2 }
  0xaf   :  { %v787_v32 = vsel %vm573_vm1, %v785_v31, %v786_v54  ;;  %v793_v22 = vsel %vm573_vm1, %v786_v54, %v792_v9  ;;  %2858 = vmatpush2.bf16.msra.mxu1 %v4769_v3  ;;  %v828_v34 = vrot.slane %v498_v27, 7  ;;  %v821_v31 = vrot.slane %v499_v20, 7 }
  0xb0   :  { %v501_v7 = vsel %vm432_vm2, %v499_v20, %v500_v35  ;;  %2859 = vmatprep.subr.bf16.mxu1 %v7692_v43  ;;  %v502_v42 = vsel %vm432_vm2, %v500_v35, %v4932_v55  ;;  %v504_v9 = vrot.slane %v5777_v19, 2 }
  0xb1   :  { %2113 = vmatmul.mubr.bf16.gmra.mxu0 %v5714_v61  ;;  %2338 = vmatmul.mubr.bf16.gmra.mxu1 %v5480_v26  ;;  %v503_v26 = vrot.slane %v5775_v51, 2  ;;  %v822_v44 = vrot.slane %v501_v7, 7  ;;  %v834_v54 = vrot.slane %v502_v42, 7  ;;  %v508_v42 = vrot.slane %v5819_v52, 2 }
  0xb2   :  { %2120 = vmatprep.mubr.bf16.mxu0 %v5786_v45  ;;  %2345 = vmatprep.mubr.bf16.mxu1 %v5489_v49  ;;  %v5854_v45 = vpack.c.bf16 %v793_v22, %v787_v32  ;;  %v814_v49 = vrot.slane %v497_v18, 7  ;;  %v506_v18 = vsel %vm432_vm2, %v504_v9, %v4932_v55 }
  0xb3   :  { %v841_v3 = vrot.slane %v503_v26, 7  ;;  %v823_v27 = vsel %vm573_vm1, %v821_v31, %v822_v44  ;;  %v505_v22 = vsel %vm432_vm2, %v503_v26, %v504_v9  ;;  %v835_v35 = vsel %vm573_vm1, %v822_v44, %v834_v54 }
  0xb4   :  { %7750 = vst [vmem:[#allocation79_spill] sm:$0xff] %v5854_v45  ;;  %v815_v39 = vsel %vm573_vm1, %v813_v11, %v814_v49  ;;  %v829_v50 = vsel %vm573_vm1, %v814_v49, %v828_v34  ;;  %v842_v7 = vrot.slane %v505_v22, 7  ;;  %v848_v20 = vrot.slane %v506_v18, 7 }
  0xb5   :  { %v5863_v32 = vpack.c.bf16 %v829_v50, %v815_v39  ;;  %v5873_v34 = vpack.c.bf16 %v835_v35, %v823_v27  ;;  %v511_v49 = vrot.slane %v5823_v1, 2  ;;  %v512_v26 = vrot.slane %v5825_v4, 2 }
  0xb6   :  { %v843_v44 = vsel %vm573_vm1, %v841_v3, %v842_v7  ;;  %v849_v11 = vsel %vm573_vm1, %v842_v7, %v848_v20  ;;  %v855_v31 = vrot.slane %v507_v30, 7  ;;  %v515_v9 = vrot.slane %v5827_v63, 2 }
  0xb7   :  { %7751 = vst [vmem:[#allocation80_spill] sm:$0xff] %v5873_v34  ;;  %v5883_v39 = vpack.c.bf16 %v849_v11, %v843_v44  ;;  %v509_v50 = vsel %vm432_vm2, %v507_v30, %v508_v42  ;;  %v510_v54 = vsel %vm432_vm2, %v508_v42, %v4932_v55  ;;  %v513_v27 = vsel %vm432_vm2, %v511_v49, %v512_v26 }
  0xb8   :  { %v856_v22 = vrot.slane %v509_v50, 7  ;;  %v862_v18 = vrot.slane %v510_v54, 7  ;;  %v514_v35 = vsel %vm432_vm2, %v512_v26, %v4932_v55  ;;  %v869_v3 = vrot.slane %v511_v49, 7 }
  0xb9   :  { %2121 = vmatmul.mubr.bf16.gmra.mxu0 %v5788_v0  ;;  %2346 = vmatmul.mubr.bf16.gmra.mxu1 %v5530_v5  ;;  %7752 = vst [vmem:[#allocation81_spill] sm:$0xff] %v5883_v39  ;;  %v876_v7 = vrot.slane %v514_v35, 7  ;;  %v516_v20 = vrot.slane %v5829_v2, 2  ;;  %v519_v11 = vrot.slane %v5831_v15, 2  ;;  %v520_v42 = vrot.slane %v5833_v36, 2 }
  0xba   :  { %2128 = vmatprep.mubr.bf16.mxu0 %v4818_v6  ;;  %2353 = vmatprep.mubr.bf16.mxu1 %v5499_v57  ;;  %v870_v6 = vrot.slane %v513_v27, 7  ;;  %v883_v57 = vrot.slane %v515_v9, 7  ;;  %v857_v44 = vsel %vm573_vm1, %v855_v31, %v856_v22  ;;  %v863_v30 = vsel %vm573_vm1, %v856_v22, %v862_v18 }
  0xbb   :  { %v5896_v5 = vpack.c.bf16 %v863_v30, %v857_v44  ;;  %v517_v49 = vsel %vm432_vm2, %v515_v9, %v516_v20  ;;  %v518_v27 = vsel %vm432_vm2, %v516_v20, %v4932_v55  ;;  %v521_v22 = vsel %vm432_vm2, %v519_v11, %v520_v42 }
  0xbc   :  { %v871_v50 = vsel %vm573_vm1, %v869_v3, %v870_v6  ;;  %v877_v26 = vsel %vm573_vm1, %v870_v6, %v876_v7  ;;  %v884_v31 = vrot.slane %v517_v49, 7  ;;  %v890_v18 = vrot.slane %v518_v27, 7 }
  0xbd   :  { %7753 = vst [vmem:[#allocation82_spill] sm:$0xff] %v5896_v5  ;;  %v5901_v54 = vpack.c.bf16 %v877_v26, %v871_v50  ;;  %v522_v35 = vsel %vm432_vm2, %v520_v42, %v4932_v55  ;;  %v897_v3 = vrot.slane %v519_v11, 7  ;;  %v898_v6 = vrot.slane %v521_v22, 7  ;;  %v4771_v11 = vld [vmem:[%s7512_s1 + $0x1d8] sm:$0xff]  }
  0xbe   :  { %v7755_v9 = vrot.slane %v5685_v29, 7  ;;  %v7756_v20 = vrot.slane %v5692_v23, 7  ;;  %v885_v50 = vsel %vm573_vm1, %v883_v57, %v884_v31  ;;  %v904_v42 = vrot.slane %v522_v35, 7  ;;  %2860 = vmatpush2.bf16.msra.mxu1 %v4771_v11 }
  0xbf   :  { %7754 = vst [vmem:[#allocation83_spill] sm:$0xff] %v5901_v54  ;;  %v7758_v26 = vrot.slane %v5782_v62, 7  ;;  %v891_v29 = vsel %vm573_vm1, %v884_v31, %v890_v18  ;;  %v899_v22 = vsel %vm573_vm1, %v897_v3, %v898_v6  ;;  %v7760_v57 = vrot.slane %v5777_v19, 1  ;;  %2861 = vmatprep.subr.bf16.mxu1 %v7692_v43 }
  0xc0   :  { %v809_v7 = vsel %vm573_vm1, %v4901_v37, %v7755_v9  ;;  %v7757_v44 = vmov %v7755_v9  ;;  %v7761_v35 = vrot.slane %v5775_v51, 1  ;;  %v816_v31 = vrot.slane %v5737_v13, 7 }
  0xc1   :  { %2129 = vmatmul.mubr.bf16.gmra.mxu0 %v4936_v56  ;;  %2354 = vmatmul.mubr.bf16.gmra.mxu1 %v5544_v17  ;;  %v825_v30 = vsel %vm573_vm1, %v7757_v44, %v7756_v20  ;;  %v820_v49 = vsel %vm573_vm1, %v5799_v25, %v7758_v26  ;;  %v7759_v27 = vmov %v7758_v26  ;;  %v5940_v20 = vpack.c.bf16 %v891_v29, %v885_v50 }
  0xc2   :  { %2136 = vmatprep.mubr.bf16.mxu0 %v5796_v46  ;;  %2361 = vmatprep.mubr.bf16.mxu1 %v5592_v16  ;;  %v833_v23 = vsel %vm573_vm1, %v7759_v27, %v5801_v48  ;;  %v395_v9 = vsel %vm339_vm0, %v7761_v35, %v7760_v57  ;;  %v905_v44 = vsel %vm573_vm1, %v898_v6, %v904_v42  ;;  %v830_v18 = vrot.slane %v5739_v58, 7 }
  0xc3   :  { %7762 = vst [vmem:[#allocation84_spill] sm:$0xff] %v5940_v20  ;;  %v5943_v25 = vpack.c.bf16 %v825_v30, %v809_v7  ;;  %v5945_v62 = vpack.c.bf16 %v905_v44, %v899_v22  ;;  %v5948_v48 = vpack.c.bf16 %v833_v23, %v820_v49  ;;  %v7764_v3 = vmov %v7761_v35 }
  0xc4   :  { %v838_v26 = vrot.slane %v7764_v3, 7  ;;  %v839_v50 = vrot.slane %v395_v9, 7  ;;  %v7765_v27 = vmov %v7760_v57  ;;  %v396_v7 = vrot.slane %v5817_v41, 1 }
  0xc5   :  { %7763 = vst [vmem:[#allocation85_spill] sm:$0xff] %v5945_v62  ;;  %v846_v6 = vrot.slane %v7765_v27, 7  ;;  %v397_v30 = vrot.slane %v5819_v52, 1  ;;  %v817_v13 = vsel %vm573_vm1, %v4901_v37, %v816_v31  ;;  %v831_v58 = vsel %vm573_vm1, %v816_v31, %v830_v18  ;;  %v4772_v18 = vld [vmem:[%s7512_s1 + $0x1d0] sm:$0xff]  }
  0xc6   :  { %v840_v42 = vsel %vm573_vm1, %v838_v26, %v839_v50  ;;  %v5968_v23 = vpack.c.bf16 %v831_v58, %v817_v13  ;;  %v836_v22 = vrot.slane %v5775_v51, 7  ;;  %v844_v57 = vrot.slane %v5777_v19, 7  ;;  %2862 = vmatpush2.bf16.msra.mxu1 %v4772_v18 }
  0xc7   :  { %v847_v11 = vsel %vm573_vm1, %v839_v50, %v846_v6  ;;  %v398_v49 = vsel %vm339_vm0, %v396_v7, %v397_v30  ;;  %v852_v35 = vrot.slane %v396_v7, 7  ;;  %v860_v44 = vrot.slane %v397_v30, 7  ;;  %2863 = vmatprep.subr.bf16.mxu1 %v7692_v43 }
  0xc8   :  { %7766 = vst [vmem:[#allocation86_spill] sm:$0xff] %v5968_v23  ;;  %v5970_v29 = vpack.c.bf16 %v847_v11, %v840_v42  ;;  %v853_v9 = vrot.slane %v398_v49, 7  ;;  %v399_v3 = vrot.slane %v5823_v1, 1  ;;  %v400_v31 = vrot.slane %v5825_v4, 1 }
  0xc9   :  { %2137 = vmatmul.mubr.bf16.gmra.mxu0 %v5943_v25  ;;  %2362 = vmatmul.mubr.bf16.gmra.mxu1 %v5586_v14  ;;  %v837_v51 = vsel %vm573_vm1, %v4901_v37, %v836_v22  ;;  %v845_v19 = vsel %vm573_vm1, %v836_v22, %v844_v57  ;;  %v850_v30 = vrot.slane %v5817_v41, 7  ;;  %v858_v13 = vrot.slane %v5819_v52, 7 }
  0xca   :  { %2144 = vmatprep.mubr.bf16.mxu0 %v5948_v48  ;;  %2369 = vmatprep.mubr.bf16.mxu1 %v5650_v24  ;;  %v854_v26 = vsel %vm573_vm1, %v852_v35, %v853_v9  ;;  %v861_v50 = vsel %vm573_vm1, %v853_v9, %v860_v44  ;;  %v401_v27 = vsel %vm339_vm0, %v399_v3, %v400_v31  ;;  %v866_v58 = vrot.slane %v399_v3, 7 }
  0xcb   :  { %v5989_v6 = vpack.c.bf16 %v845_v19, %v837_v51  ;;  %v5992_v7 = vpack.c.bf16 %v861_v50, %v854_v26  ;;  %v867_v42 = vrot.slane %v401_v27, 7  ;;  %v874_v11 = vrot.slane %v400_v31, 7 }
  0xcc   :  { %v402_v49 = vrot.slane %v5827_v63, 1  ;;  %v403_v22 = vrot.slane %v5829_v2, 1  ;;  %v851_v41 = vsel %vm573_vm1, %v4901_v37, %v850_v30  ;;  %v859_v52 = vsel %vm573_vm1, %v850_v30, %v858_v13  ;;  %v4506_v30 = vld [vmem:[%s7513_s0 + $0x78] sm:$0xff]   ;;  %v4774_v13 = vld [vmem:[%s7512_s1 + $0x1c8] sm:$0xff]  }
  0xcd   :  { %7767 = vst [vmem:[#allocation87_spill] sm:$0xff] %v5989_v6  ;;  %v868_v57 = vsel %vm573_vm1, %v866_v58, %v867_v42  ;;  %v875_v35 = vsel %vm573_vm1, %v867_v42, %v874_v11  ;;  %v6008_v44 = vpack.c.bf16 %v859_v52, %v851_v41  ;;  %v864_v31 = vrot.slane %v5823_v1, 7  ;;  %2864 = vmatpush2.bf16.msra.mxu1 %v4774_v13 }
  0xce   :  { %v404_v9 = vsel %vm339_vm0, %v402_v49, %v403_v22  ;;  %v6010_v3 = vpack.c.bf16 %v875_v35, %v868_v57  ;;  %v872_v51 = vrot.slane %v5825_v4, 7  ;;  %v880_v19 = vrot.slane %v402_v49, 7  ;;  %2865 = vmatprep.subr.bf16.mxu1 %v7692_v43 }
  0xcf   :  { %7768 = vst [vmem:[#allocation88_spill] sm:$0xff] %v6008_v44  ;;  %v881_v18 = vrot.slane %v404_v9, 7  ;;  %v888_v26 = vrot.slane %v403_v22, 7  ;;  %v405_v50 = vrot.slane %v5831_v15, 1  ;;  %v406_v27 = vrot.slane %v5833_v36, 1 }
  0xd0   :  { %v865_v1 = vsel %vm573_vm1, %v4901_v37, %v864_v31  ;;  %v873_v4 = vsel %vm573_vm1, %v864_v31, %v872_v51  ;;  %v6031_v11 = vunpack.c.l.bf16 %v4506_v30  ;;  %v6033_v49 = vunpack.c.h.bf16 %v4506_v30 }
  0xd1   :  { %2145 = vmatmul.mubr.bf16.gmra.mxu0 %v5968_v23  ;;  %2370 = vmatmul.mubr.bf16.gmra.mxu1 %v5633_v8  ;;  %v882_v58 = vsel %vm573_vm1, %v880_v19, %v881_v18  ;;  %v889_v42 = vsel %vm573_vm1, %v881_v18, %v888_v26  ;;  %v407_v22 = vsel %vm339_vm0, %v405_v50, %v406_v27  ;;  %v878_v57 = vrot.slane %v5827_v63, 7 }
  0xd2   :  { %2152 = vmatprep.mubr.bf16.mxu0 %v5970_v29  ;;  %2377 = vmatprep.mubr.bf16.mxu1 %v5652_v47  ;;  %v6036_v41 = vpack.c.bf16 %v873_v4, %v865_v1  ;;  %v6039_v52 = vpack.c.bf16 %v889_v42, %v882_v58  ;;  %v886_v35 = vrot.slane %v5829_v2, 7  ;;  %v894_v9 = vrot.slane %v405_v50, 7  ;;  %v7807_v47 = vld [vmem:[#allocation15_spill] sm:$0xff] }
  0xd3   :  { %v895_v31 = vrot.slane %v407_v22, 7  ;;  %v902_v51 = vrot.slane %v406_v27, 7  ;;  %v794_v19 = vrot.slane %v6031_v11, 7  ;;  %v802_v18 = vrot.slane %v6033_v49, 7 }
  0xd4   :  { %7769 = vst [vmem:[#allocation89_spill] sm:$0xff] %v6036_v41  ;;  %7770 = vst [vmem:[#allocation90_spill] sm:$0xff] %v6039_v52  ;;  %v879_v43 = vsel %vm573_vm1, %v4901_v37, %v878_v57  ;;  %v887_v63 = vsel %vm573_vm1, %v878_v57, %v886_v35  ;;  %v892_v13 = vrot.slane %v5831_v15, 7  ;;  %v900_v58 = vrot.slane %v5833_v36, 7  ;;  %v4775_v57 = vld [vmem:[%s7512_s1 + $0x1c0] sm:$0xff]   ;;  %v4767_v36 = vld [vmem:[%s7512_s1 + $0x230] sm:$0xff]  }
  0xd5   :  { %v896_v2 = vsel %vm573_vm1, %v894_v9, %v895_v31  ;;  %v903_v26 = vsel %vm573_vm1, %v895_v31, %v902_v51  ;;  %v795_v50 = vsel %vm573_vm1, %v4901_v37, %v794_v19  ;;  %v803_v27 = vsel %vm573_vm1, %v794_v19, %v802_v18  ;;  %2866 = vmatpush2.bf16.msra.mxu1 %v4775_v57 }
  0xd6   :  { %v6057_v30 = vpack.c.bf16 %v887_v63, %v879_v43  ;;  %v6059_v1 = vpack.c.bf16 %v903_v26, %v896_v2  ;;  %v6061_v4 = vpack.c.bf16 %v803_v27, %v795_v50  ;;  %v893_v42 = vsel %vm573_vm1, %v4901_v37, %v892_v13  ;;  %v7778_v2 = vld [vmem:[#allocation20_spill] sm:$0xff]  ;;  %v7779_v26 = vld [vmem:[#allocation46_spill] sm:$0xff] }
  0xd7   :  { %v901_v22 = vsel %vm573_vm1, %v892_v13, %v900_v58  ;;  %v4776_v13 = vld [vmem:[%s7512_s1 + $0x218] sm:$0xff]  }
  0xd8   :  { %7771 = vst [vmem:[#allocation91_spill] sm:$0xff] %v6057_v30  ;;  %7772 = vst [vmem:[#allocation92_spill] sm:$0xff] %v6059_v1  ;;  %v6075_v15 = vpack.c.bf16 %v901_v22, %v893_v42 }
  0xd9   :  { %2153 = vmatmul.mubr.bf16.gmra.mxu0 %v5989_v6  ;;  %2378 = vmatmul.mubr.bf16.gmra.mxu1 %v5676_v59  ;;  %7773 = vst [vmem:[#allocation93_spill] sm:$0xff] %v6061_v4 }
  0xda   :  { %2160 = vmatprep.mubr.bf16.mxu0 %v5992_v7  ;;  %2385 = vmatprep.mubr.bf16.mxu1 %v5712_v12  ;;  %7774 = vst [vmem:[#allocation94_spill] sm:$0xff] %v6075_v15  ;;  %v7804_v12 = vld [vmem:[#allocation8_spill] sm:$0xff] }
  0xe1   :  { %2161 = vmatmul.mubr.bf16.gmra.mxu0 %v6008_v44  ;;  %2386 = vmatmul.mubr.bf16.gmra.mxu1 %v5719_v53 }
  0xe2   :  { %2168 = vmatprep.mubr.bf16.mxu0 %v6010_v3  ;;  %2393 = vmatprep.mubr.bf16.mxu1 %v5714_v61  ;;  %v7803_v61 = vld [vmem:[#allocation7_spill] sm:$0xff] }
  0xe9   :  { %2169 = vmatmul.mubr.bf16.gmra.mxu0 %v6036_v41  ;;  %2394 = vmatmul.mubr.bf16.gmra.mxu1 %v5748_v21 }
  0xea   :  { %2176 = vmatprep.mubr.bf16.mxu0 %v6039_v52  ;;  %2401 = vmatprep.mubr.bf16.mxu1 %v5788_v0  ;;  %v560_v52 = vrot.slane %v6033_v49, 1 }
  0xf1   :  { %2177 = vmatmul.mubr.bf16.gmra.mxu0 %v6057_v30  ;;  %2402 = vmatmul.mubr.bf16.gmra.mxu1 %v5794_v28 }
  0xf2   :  { %2184 = vmatprep.mubr.bf16.mxu0 %v6059_v1  ;;  %2409 = vmatprep.mubr.bf16.mxu1 %v6061_v4  ;;  %v7810_v1 = vld [vmem:[#allocation9_spill] sm:$0xff] }
  0xf9   :  { %2185 = vmatmul.mubr.bf16.gmra.mxu0 %v6075_v15  ;;  %2410 = vmatmul.mubr.bf16.gmra.mxu1 %v5854_v45 }
  0xfa   :  { %2417 = vmatprep.mubr.bf16.mxu1 %v5943_v25  ;;  %2578 = vmatprep.mubr.bf16.mxu0 %v5257_v38  ;;  %v4770_v38 = vld [vmem:[%s7512_s1 + $0x228] sm:$0xff]  }
 0x101   :  { %v6084_v35 = vpop.f32.mrf.mxu0  ;;  %v6086_v9 = vpop.f32.mrf.mxu1  ;;  %2418 = vmatmul.mubr.bf16.gmra.mxu1 %v5407_v60  ;;  %2579 = vmatmul.mubr.bf16.vlgmr.msra.gmra.mxu0 %v4983_v40  ;;  %v7791_v60 = vld [vmem:[#allocation55_spill] sm:$0xff] }
 0x102   :  { %7775 = vst [vmem:[#allocation95_spill] sm:$0xff] %v6086_v9  ;;  %4595 = vmatpush3.bf16.msra.mxu0 %v5604_v33  ;;  %2425 = vmatprep.mubr.bf16.mxu1 %v5968_v23  ;;  %v4773_v33 = vld [vmem:[%s7512_s1 + $0x220] sm:$0xff]  }
 0x103   :  { %v2004_v31 = vpop.f32.mrf.mxu0  ;;  %v2196_v25 = vpop.f32.mrf.mxu1  ;;  %2586 = vmatprep.mubr.bf16.mxu0 %v5297_v10  ;;  %4596 = vmatprep.subr.bf16.mxu0 %v4767_v36 }
 0x104   :  { %v7782_v25 = vld [vmem:[#allocation25_spill] sm:$0xff] }
 0x105   :  { %v6096_v51 = vpop.f32.mrf.mxu0  ;;  %v6098_v19 = vpop.f32.mrf.mxu1 }
 0x106   :  { %7776 = vst [vmem:[#allocation96_spill] sm:$0xff] %v6098_v19  ;;  %4597 = vmatpush3.bf16.msra.mxu0 %v4767_v36 }
 0x107   :  { %v2007_v18 = vpop.f32.mrf.mxu0  ;;  %v2199_v40 = vpop.f32.mrf.mxu1  ;;  %4598 = vmatprep.subr.bf16.mxu0 %v4770_v38 }
 0x109   :  { %v6103_v43 = vpop.f32.mrf.mxu0  ;;  %v6105_v63 = vpop.f32.mrf.mxu1  ;;  %2426 = vmatmul.mubr.bf16.gmra.mxu1 %v5863_v32  ;;  %2587 = vmatmul.mubr.bf16.gmra.mxu0 %v7778_v2 }
 0x10a   :  { %7777 = vst [vmem:[#allocation97_spill] sm:$0xff] %v6105_v63  ;;  %2433 = vmatprep.mubr.bf16.mxu1 %v5989_v6  ;;  %2594 = vmatprep.mubr.bf16.mxu0 %v7779_v26  ;;  %v7787_v63 = vld [vmem:[#allocation53_spill] sm:$0xff] }
 0x10b   :  { %v2012_v50 = vpop.f32.mrf.mxu0  ;;  %v2204_v27 = vpop.f32.mrf.mxu1  ;;  %4599 = vmatpush3.bf16.msra.mxu0 %v4770_v38  ;;  %v7783_v38 = vld [vmem:[#allocation49_spill] sm:$0xff] }
 0x10c   :  { %4600 = vmatprep.subr.bf16.mxu0 %v4773_v33  ;;  %v7798_v26 = vld [vmem:[#allocation5_spill] sm:$0xff] }
 0x10d   :  { %v6114_v58 = vpop.f32.mrf.mxu0  ;;  %v6116_v42 = vpop.f32.mrf.mxu1 }
 0x10e   :  { %7780 = vst [vmem:[#allocation20_spill] sm:$0xff] %v6116_v42  ;;  %v7786_v42 = vld [vmem:[#allocation32_spill] sm:$0xff] }
 0x10f   :  { %v2015_v22 = vpop.f32.mrf.mxu0  ;;  %v2207_v57 = vpop.f32.mrf.mxu1  ;;  %4601 = vmatpush3.bf16.msra.mxu0 %v4773_v33 }
 0x110   :  { %4602 = vmatprep.subr.bf16.mxu0 %v4776_v13 }
 0x111   :  { %v6118_v36 = vpop.f32.mrf.mxu0  ;;  %v6120_v31 = vpop.f32.mrf.mxu1  ;;  %2434 = vmatmul.mubr.bf16.gmra.mxu1 %v5873_v34  ;;  %2595 = vmatmul.mubr.bf16.gmra.mxu0 %v7782_v25 }
 0x112   :  { %7781 = vst [vmem:[#allocation98_spill] sm:$0xff] %v6120_v31  ;;  %2441 = vmatprep.mubr.bf16.mxu1 %v6008_v44  ;;  %2602 = vmatprep.mubr.bf16.mxu0 %v7783_v38 }
 0x113   :  { %v2020_v18 = vpop.f32.mrf.mxu0  ;;  %v2212_v40 = vpop.f32.mrf.mxu1  ;;  %4603 = vmatpush3.bf16.msra.mxu0 %v4776_v13 }
 0x115   :  { %v6126_v50 = vpop.f32.mrf.mxu0  ;;  %v6128_v27 = vpop.f32.mrf.mxu1 }
 0x116   :  { %7784 = vst [vmem:[#allocation25_spill] sm:$0xff] %v6128_v27 }
 0x117   :  { %v2023_v33 = vpop.f32.mrf.mxu0  ;;  %v2215_v22 = vpop.f32.mrf.mxu1 }
 0x119   :  { %v6130_v57 = vpop.f32.mrf.mxu0  ;;  %v6132_v31 = vpop.f32.mrf.mxu1  ;;  %2442 = vmatmul.mubr.bf16.gmra.mxu1 %v5883_v39  ;;  %2603 = vmatmul.mubr.bf16.gmra.mxu0 %v7786_v42 }
 0x11a   :  { %7785 = vst [vmem:[#allocation99_spill] sm:$0xff] %v6132_v31  ;;  %2449 = vmatprep.mubr.bf16.mxu1 %v6036_v41  ;;  %2610 = vmatprep.mubr.bf16.mxu0 %v7787_v63  ;;  %v7790_v31 = vld [vmem:[#allocation35_spill] sm:$0xff] }
 0x11b   :  { %v2028_v18 = vpop.f32.mrf.mxu0  ;;  %v2220_v13 = vpop.f32.mrf.mxu1 }
 0x11c   :  { %v4777_v18 = vld [vmem:[%s7512_s1 + $0x210] sm:$0xff]  }
 0x11d   :  { %v6138_v40 = vpop.f32.mrf.mxu0  ;;  %v6140_v19 = vpop.f32.mrf.mxu1  ;;  %4604 = vmatprep.subr.bf16.mxu0 %v4777_v18 }
 0x11e   :  { %7788 = vst [vmem:[#allocation32_spill] sm:$0xff] %v6140_v19  ;;  %4605 = vmatpush3.bf16.msra.mxu0 %v4777_v18  ;;  %v7797_v18 = vld [vmem:[#allocation4_spill] sm:$0xff] }
 0x11f   :  { %v2031_v33 = vpop.f32.mrf.mxu0  ;;  %v2223_v22 = vpop.f32.mrf.mxu1  ;;  %v523_v38 = vrot.slane %v7797_v18, 2 }
 0x121   :  { %v6142_v27 = vpop.f32.mrf.mxu0  ;;  %v6144_v9 = vpop.f32.mrf.mxu1  ;;  %2450 = vmatmul.mubr.bf16.gmra.mxu1 %v5896_v5  ;;  %2611 = vmatmul.mubr.bf16.gmra.mxu0 %v7790_v31 }
 0x122   :  { %7789 = vst [vmem:[#allocation100_spill] sm:$0xff] %v6144_v9  ;;  %2457 = vmatprep.mubr.bf16.mxu1 %v6057_v30  ;;  %2618 = vmatprep.mubr.bf16.mxu0 %v7791_v60  ;;  %v7794_v30 = vld [vmem:[#allocation41_spill] sm:$0xff] }
 0x123   :  { %v2036_v13 = vpop.f32.mrf.mxu0  ;;  %v2228_v19 = vpop.f32.mrf.mxu1 }
 0x124   :  { %v7795_v13 = vld [vmem:[#allocation59_spill] sm:$0xff] }
 0x125   :  { %v6153_v33 = vpop.f32.mrf.mxu0  ;;  %v6155_v22 = vpop.f32.mrf.mxu1 }
 0x126   :  { %7792 = vst [vmem:[#allocation35_spill] sm:$0xff] %v6155_v22 }
 0x127   :  { %v2039_v9 = vpop.f32.mrf.mxu0  ;;  %v2231_v41 = vpop.f32.mrf.mxu1 }
 0x129   :  { %v6157_v44 = vpop.f32.mrf.mxu0  ;;  %v6159_v63 = vpop.f32.mrf.mxu1  ;;  %2458 = vmatmul.mubr.bf16.gmra.mxu1 %v5901_v54  ;;  %2619 = vmatmul.mubr.bf16.gmra.mxu0 %v7794_v30 }
 0x12a   :  { %7793 = vst [vmem:[#allocation101_spill] sm:$0xff] %v6159_v63  ;;  %2465 = vmatprep.mubr.bf16.mxu1 %v6075_v15  ;;  %2626 = vmatprep.mubr.bf16.mxu0 %v7795_v13  ;;  %v524_v63 = vrot.slane %v7798_v26, 2  ;;  %v7800_v15 = vld [vmem:[#allocation47_spill] sm:$0xff] }
 0x12b   :  { %v2044_v19 = vpop.f32.mrf.mxu0  ;;  %v2236_v60 = vpop.f32.mrf.mxu1 }
 0x12c   :  { %v7801_v19 = vld [vmem:[#allocation12_spill] sm:$0xff] }
 0x12d   :  { %v6165_v6 = vpop.f32.mrf.mxu0  ;;  %v6167_v22 = vpop.f32.mrf.mxu1 }
 0x12e   :  { %7796 = vst [vmem:[#allocation41_spill] sm:$0xff] %v6167_v22 }
 0x12f   :  { %v2047_v9 = vpop.f32.mrf.mxu0  ;;  %v2239_v41 = vpop.f32.mrf.mxu1 }
 0x130   :  { %v525_v9 = vsel %vm432_vm2, %v523_v38, %v524_v63  ;;  %v526_v41 = vsel %vm432_vm2, %v524_v63, %v4932_v55  ;;  %v7806_v63 = vld [vmem:[#allocation54_spill] sm:$0xff] }
 0x131   :  { %v6171_v23 = vpop.f32.mrf.mxu0  ;;  %v6173_v10 = vpop.f32.mrf.mxu1  ;;  %2466 = vmatmul.mubr.bf16.gmra.mxu1 %v5940_v20  ;;  %2627 = vmatmul.mubr.bf16.gmra.mxu0 %v7800_v15  ;;  %v912_v13 = vrot.slane %v525_v9, 7  ;;  %v918_v56 = vrot.slane %v526_v41, 7 }
 0x132   :  { %7799 = vst [vmem:[#allocation4_spill] sm:$0xff] %v6173_v10  ;;  %2473 = vmatprep.mubr.bf16.mxu1 %v7801_v19  ;;  %2634 = vmatprep.mubr.bf16.mxu0 %v5544_v17  ;;  %v911_v10 = vrot.slane %v523_v38, 7  ;;  %v527_v19 = vrot.slane %v7803_v61, 2  ;;  %v528_v17 = vrot.slane %v7804_v12, 2 }
 0x133   :  { %v2052_v60 = vpop.f32.mrf.mxu0  ;;  %v2244_v22 = vpop.f32.mrf.mxu1 }
 0x134   :  { %v913_v38 = vsel %vm573_vm1, %v911_v10, %v912_v13  ;;  %v529_v12 = vsel %vm432_vm2, %v527_v19, %v528_v17  ;;  %v530_v9 = vsel %vm432_vm2, %v528_v17, %v4932_v55  ;;  %v7812_v17 = vld [vmem:[#allocation57_spill] sm:$0xff] }
 0x135   :  { %v6182_v26 = vpop.f32.mrf.mxu0  ;;  %v6184_v18 = vpop.f32.mrf.mxu1  ;;  %v926_v24 = vrot.slane %v529_v12, 7 }
 0x136   :  { %7802 = vst [vmem:[#allocation5_spill] sm:$0xff] %v6184_v18 }
 0x137   :  { %v2055_v4 = vpop.f32.mrf.mxu0  ;;  %v2247_v0 = vpop.f32.mrf.mxu1 }
 0x138   :  { %v919_v0 = vsel %vm573_vm1, %v912_v13, %v918_v56  ;;  %v531_v56 = vrot.slane %v7810_v1, 2  ;;  %v7811_v13 = vld [vmem:[#allocation10_spill] sm:$0xff] }
 0x139   :  { %v6188_v60 = vpop.f32.mrf.mxu0  ;;  %v6190_v22 = vpop.f32.mrf.mxu1  ;;  %2474 = vmatmul.mubr.bf16.gmra.mxu1 %v5945_v62  ;;  %2635 = vmatmul.mubr.bf16.gmra.mxu0 %v7806_v63  ;;  %v6205_v18 = vpack.c.bf16 %v919_v0, %v913_v38  ;;  %v7814_v38 = vld [vmem:[#allocation22_spill] sm:$0xff] }
 0x13a   :  { %7805 = vst [vmem:[#allocation47_spill] sm:$0xff] %v6190_v22  ;;  %2481 = vmatprep.mubr.bf16.mxu1 %v7807_v47  ;;  %2642 = vmatprep.mubr.bf16.mxu0 %v5586_v14  ;;  %v925_v47 = vrot.slane %v527_v19, 7  ;;  %v932_v14 = vrot.slane %v530_v9, 7  ;;  %v4778_v19 = vld [vmem:[%s7512_s1 + $0x208] sm:$0xff]  }
 0x13b   :  { %v2060_v4 = vpop.f32.mrf.mxu0  ;;  %v2252_v61 = vpop.f32.mrf.mxu1  ;;  %7809 = vst [vmem:[#allocation8_spill] sm:$0xff] %v6205_v18  ;;  %4606 = vmatprep.subr.bf16.mxu0 %v4778_v19 }
 0x13c   :  { %v532_v4 = vrot.slane %v7811_v13, 2  ;;  %v933_v1 = vsel %vm573_vm1, %v926_v24, %v932_v14  ;;  %4607 = vmatpush3.bf16.msra.mxu0 %v4778_v19 }
 0x13d   :  { %v6201_v41 = vpop.f32.mrf.mxu0  ;;  %v6203_v22 = vpop.f32.mrf.mxu1 }
 0x13e   :  { %7808 = vst [vmem:[#allocation7_spill] sm:$0xff] %v6203_v22  ;;  %v533_v9 = vsel %vm432_vm2, %v531_v56, %v532_v4 }
 0x13f   :  { %v2063_v16 = vpop.f32.mrf.mxu0  ;;  %v2255_v10 = vpop.f32.mrf.mxu1 }
 0x140   :  { %v927_v16 = vsel %vm573_vm1, %v925_v47, %v926_v24  ;;  %v939_v24 = vrot.slane %v531_v56, 7  ;;  %v940_v47 = vrot.slane %v533_v9, 7 }
 0x141   :  { %v6209_v61 = vpop.f32.mrf.mxu0  ;;  %v2291_v63 = vpop.f32.mrf.mxu1  ;;  %2482 = vmatmul.mubr.bf16.gmra.mxu1 %v6205_v18  ;;  %2643 = vmatmul.mubr.bf16.gmra.mxu0 %v7812_v17  ;;  %v6228_v13 = vpack.c.bf16 %v933_v1, %v927_v16  ;;  %v7818_v17 = vld [vmem:[#allocation14_spill] sm:$0xff]  ;;  %v7819_v16 = vld [vmem:[#allocation61_spill] sm:$0xff] }
 0x142   :  { %v6214_v22 = vadd.f32 %v2291_v63, %v6084_v35  ;;  %2489 = vmatprep.mubr.bf16.mxu1 %v7814_v38  ;;  %2650 = vmatprep.mubr.bf16.mxu0 %v5633_v8  ;;  %v534_v35 = vsel %vm432_vm2, %v532_v4, %v4932_v55  ;;  %v7817_v8 = vld [vmem:[#allocation13_spill] sm:$0xff]  ;;  %v536_v18 = vrot.slane %v7818_v17, 2  ;;  %v941_v56 = vsel %vm573_vm1, %v939_v24, %v940_v47 }
 0x143   :  { %v2068_v0 = vpop.f32.mrf.mxu0  ;;  %v2293_v12 = vpop.f32.mrf.mxu1  ;;  %7815 = vst [vmem:[#allocation10_spill] sm:$0xff] %v6228_v13  ;;  %v946_v38 = vrot.slane %v534_v35, 7 }
 0x144   :  { %7813 = vst [vmem:[#allocation9_spill] sm:$0xff] %v6214_v22  ;;  %v535_v22 = vrot.slane %v7817_v8, 2  ;;  %v538_v35 = vsel %vm432_vm2, %v536_v18, %v4932_v55 }
 0x145   :  { %v6226_v63 = vpop.f32.mrf.mxu0  ;;  %v2294_v10 = vpop.f32.mrf.mxu1  ;;  %v947_v8 = vsel %vm573_vm1, %v940_v47, %v946_v38  ;;  %v960_v24 = vrot.slane %v538_v35, 7  ;;  %v7824_v47 = vld [vmem:[#allocation16_spill] sm:$0xff] }
 0x146   :  { %v6231_v14 = vadd.f32 %v2294_v10, %v6096_v51  ;;  %v7821_v51 = vld [vmem:[#allocation27_spill] sm:$0xff]  ;;  %v537_v9 = vsel %vm432_vm2, %v535_v22, %v536_v18 }
 0x147   :  { %v2071_v0 = vpop.f32.mrf.mxu0  ;;  %v2296_v12 = vpop.f32.mrf.mxu1 }
 0x148   :  { %7816 = vst [vmem:[#allocation102_spill] sm:$0xff] %v6231_v14  ;;  %v953_v12 = vrot.slane %v535_v22, 7 }
 0x149   :  { %v6235_v4 = vpop.f32.mrf.mxu0  ;;  %v2299_v62 = vpop.f32.mrf.mxu1  ;;  %2490 = vmatmul.mubr.bf16.gmra.mxu1 %v6228_v13  ;;  %2651 = vmatmul.mubr.bf16.gmra.mxu0 %v7819_v16  ;;  %v7826_v16 = vld [vmem:[#allocation64_spill] sm:$0xff] }
 0x14a   :  { %v6240_v1 = vadd.f32 %v2299_v62, %v6103_v43  ;;  %2497 = vmatprep.mubr.bf16.mxu1 %v7821_v51  ;;  %2658 = vmatprep.mubr.bf16.mxu0 %v5676_v59  ;;  %v6251_v62 = vpack.c.bf16 %v947_v8, %v941_v56  ;;  %v954_v51 = vrot.slane %v537_v9, 7 }
 0x14b   :  { %v2076_v19 = vpop.f32.mrf.mxu0  ;;  %v2301_v17 = vpop.f32.mrf.mxu1 }
 0x14c   :  { %7820 = vst [vmem:[#allocation13_spill] sm:$0xff] %v6240_v1  ;;  %7822 = vst [vmem:[#allocation14_spill] sm:$0xff] %v6251_v62  ;;  %v539_v19 = vrot.slane %v7824_v47, 2  ;;  %v7825_v17 = vld [vmem:[#allocation17_spill] sm:$0xff]  ;;  %v961_v22 = vsel %vm573_vm1, %v954_v51, %v960_v24  ;;  %v7831_v24 = vld [vmem:[#allocation23_spill] sm:$0xff] }
 0x14d   :  { %v6249_v10 = vpop.f32.mrf.mxu0  ;;  %v2302_v0 = vpop.f32.mrf.mxu1  ;;  %v540_v1 = vrot.slane %v7825_v17, 2 }
 0x14e   :  { %v6254_v43 = vadd.f32 %v2302_v0, %v6114_v58  ;;  %v7828_v58 = vld [vmem:[#allocation31_spill] sm:$0xff] }
 0x14f   :  { %v2079_v59 = vpop.f32.mrf.mxu0  ;;  %v2304_v38 = vpop.f32.mrf.mxu1  ;;  %v541_v35 = vsel %vm432_vm2, %v539_v19, %v540_v1  ;;  %v542_v0 = vsel %vm432_vm2, %v540_v1, %v4932_v55 }
 0x150   :  { %7823 = vst [vmem:[#allocation103_spill] sm:$0xff] %v6254_v43  ;;  %v955_v59 = vsel %vm573_vm1, %v953_v12, %v954_v51  ;;  %v974_v12 = vrot.slane %v542_v0, 7 }
 0x151   :  { %v6258_v14 = vpop.f32.mrf.mxu0  ;;  %v2307_v18 = vpop.f32.mrf.mxu1  ;;  %2498 = vmatmul.mubr.bf16.gmra.mxu1 %v6251_v62  ;;  %2659 = vmatmul.mubr.bf16.gmra.mxu0 %v7826_v16  ;;  %v7833_v16 = vld [vmem:[#allocation68_spill] sm:$0xff] }
 0x152   :  { %v6263_v56 = vadd.f32 %v2307_v18, %v6118_v36  ;;  %2505 = vmatprep.mubr.bf16.mxu1 %v7828_v58  ;;  %2666 = vmatprep.mubr.bf16.mxu0 %v5719_v53  ;;  %v6274_v36 = vpack.c.bf16 %v961_v22, %v955_v59  ;;  %v967_v18 = vrot.slane %v539_v19, 7  ;;  %v968_v58 = vrot.slane %v541_v35, 7 }
 0x153   :  { %v2084_v8 = vpop.f32.mrf.mxu0  ;;  %v2309_v9 = vpop.f32.mrf.mxu1 }
 0x154   :  { %7827 = vst [vmem:[#allocation16_spill] sm:$0xff] %v6263_v56  ;;  %7829 = vst [vmem:[#allocation17_spill] sm:$0xff] %v6274_v36  ;;  %v543_v8 = vrot.slane %v7831_v24, 2  ;;  %v7832_v9 = vld [vmem:[#allocation24_spill] sm:$0xff]  ;;  %v975_v19 = vsel %vm573_vm1, %v968_v58, %v974_v12 }
 0x155   :  { %v6272_v38 = vpop.f32.mrf.mxu0  ;;  %v2310_v47 = vpop.f32.mrf.mxu1  ;;  %v544_v56 = vrot.slane %v7832_v9, 2  ;;  %v7837_v9 = vld [vmem:[#allocation29_spill] sm:$0xff] }
 0x156   :  { %v6277_v17 = vadd.f32 %v2310_v47, %v6126_v50  ;;  %v7835_v50 = vld [vmem:[#allocation38_spill] sm:$0xff] }
 0x157   :  { %v2087_v53 = vpop.f32.mrf.mxu0  ;;  %v2312_v51 = vpop.f32.mrf.mxu1  ;;  %v545_v0 = vsel %vm432_vm2, %v543_v8, %v544_v56  ;;  %v546_v47 = vsel %vm432_vm2, %v544_v56, %v4932_v55 }
 0x158   :  { %7830 = vst [vmem:[#allocation104_spill] sm:$0xff] %v6277_v17  ;;  %v969_v53 = vsel %vm573_vm1, %v967_v18, %v968_v58  ;;  %v981_v58 = vrot.slane %v543_v8, 7  ;;  %v982_v12 = vrot.slane %v545_v0, 7  ;;  %v565_v17 = vrot.slane %v6031_v11, 2 }
 0x159   :  { %v6281_v43 = vpop.f32.mrf.mxu0  ;;  %v2315_v1 = vpop.f32.mrf.mxu1  ;;  %2506 = vmatmul.mubr.bf16.gmra.mxu1 %v6274_v36  ;;  %2667 = vmatmul.mubr.bf16.gmra.mxu0 %v7833_v16  ;;  %v7846_v36 = vld [vmem:[#allocation40_spill] sm:$0xff] }
 0x15a   :  { %v6286_v59 = vadd.f32 %v2315_v1, %v6130_v57  ;;  %2513 = vmatprep.mubr.bf16.mxu1 %v7835_v50  ;;  %2674 = vmatprep.mubr.bf16.mxu0 %v5748_v21  ;;  %v6297_v57 = vpack.c.bf16 %v975_v19, %v969_v53  ;;  %v547_v1 = vrot.slane %v7837_v9, 2  ;;  %v7838_v50 = vld [vmem:[#allocation34_spill] sm:$0xff]  ;;  %v566_v53 = vrot.slane %v6033_v49, 2 }
 0x15b   :  { %v2092_v22 = vpop.f32.mrf.mxu0  ;;  %v2317_v35 = vpop.f32.mrf.mxu1  ;;  %v548_v21 = vrot.slane %v7838_v50, 2 }
 0x15c   :  { %7834 = vst [vmem:[#allocation23_spill] sm:$0xff] %v6286_v59  ;;  %7836 = vst [vmem:[#allocation24_spill] sm:$0xff] %v6297_v57  ;;  %v988_v22 = vrot.slane %v546_v47, 7  ;;  %v4522_v35 = vld [vmem:[%s7513_s0 + $0xf8] sm:$0xff]   ;;  %v995_v16 = vrot.slane %v547_v1, 7 }
 0x15d   :  { %v6295_v51 = vpop.f32.mrf.mxu0  ;;  %v2318_v24 = vpop.f32.mrf.mxu1  ;;  %v549_v8 = vsel %vm432_vm2, %v547_v1, %v548_v21  ;;  %v550_v50 = vsel %vm432_vm2, %v548_v21, %v4932_v55  ;;  %v6316_v0 = vunpack.c.l.bf16 %v4522_v35  ;;  %v6318_v47 = vunpack.c.h.bf16 %v4522_v35 }
 0x15e   :  { %v6302_v18 = vadd.f32 %v2318_v24, %v6138_v40  ;;  %v7840_v40 = vld [vmem:[#allocation70_spill] sm:$0xff]  ;;  %v7844_v24 = vld [vmem:[#allocation43_spill] sm:$0xff]  ;;  %v567_v35 = vsel %vm432_vm2, %v565_v17, %v566_v53 }
 0x15f   :  { %v2095_v56 = vpop.f32.mrf.mxu0  ;;  %v2320_v59 = vpop.f32.mrf.mxu1  ;;  %7841 = vst [vmem:[#allocation34_spill] sm:$0xff] %v6316_v0  ;;  %7842 = vst [vmem:[#allocation105_spill] sm:$0xff] %v6318_v47  ;;  %v1026_v1 = vrot.slane %v6318_v47, 7 }
 0x160   :  { %7839 = vst [vmem:[#allocation29_spill] sm:$0xff] %v6302_v18  ;;  %v983_v56 = vsel %vm573_vm1, %v981_v58, %v982_v12  ;;  %v989_v18 = vsel %vm573_vm1, %v982_v12, %v988_v22  ;;  %v552_v58 = vrot.slane %v7846_v36, 2  ;;  %v559_v36 = vrot.slane %v6031_v11, 1 }
 0x161   :  { %v6309_v19 = vpop.f32.mrf.mxu0  ;;  %v2323_v9 = vpop.f32.mrf.mxu1  ;;  %2514 = vmatmul.mubr.bf16.gmra.mxu1 %v6297_v57  ;;  %2675 = vmatmul.mubr.bf16.gmra.mxu0 %v7840_v40  ;;  %v4779_v40 = vld [vmem:[%s7512_s1 + $0x200] sm:$0xff]   ;;  %v6337_v62 = vpack.c.bf16 %v989_v18, %v983_v56 }
 0x162   :  { %v6321_v59 = vadd.f32 %v2323_v9, %v6142_v27  ;;  %2521 = vmatprep.mubr.bf16.mxu1 %v7844_v24  ;;  %2682 = vmatprep.mubr.bf16.mxu0 %v5794_v28  ;;  %v568_v27 = vsel %vm432_vm2, %v566_v53, %v4932_v55  ;;  %v996_v9 = vrot.slane %v549_v8, 7  ;;  %v1002_v24 = vrot.slane %v550_v50, 7 }
 0x163   :  { %v2100_v21 = vpop.f32.mrf.mxu0  ;;  %v2325_v57 = vpop.f32.mrf.mxu1  ;;  %4608 = vmatprep.subr.bf16.mxu0 %v4779_v40  ;;  %v799_v53 = vrot.slane %v565_v17, 7  ;;  %v800_v8 = vrot.slane %v567_v35, 7  ;;  %v806_v50 = vrot.slane %v568_v27, 7  ;;  %v554_v49 = vsel %vm432_vm2, %v552_v58, %v4932_v55  ;;  %v7849_v17 = vld [vmem:[#allocation52_spill] sm:$0xff] }
 0x164   :  { %7843 = vst [vmem:[#allocation106_spill] sm:$0xff] %v6321_v59  ;;  %v7845_v59 = vld [vmem:[#allocation39_spill] sm:$0xff]  ;;  %v1018_v57 = vrot.slane %v6316_v0, 7  ;;  %4609 = vmatpush3.bf16.msra.mxu0 %v4779_v40  ;;  %v997_v18 = vsel %vm573_vm1, %v995_v16, %v996_v9  ;;  %v1003_v56 = vsel %vm573_vm1, %v996_v9, %v1002_v24 }
 0x165   :  { %v551_v28 = vrot.slane %v7845_v59, 2  ;;  %v6335_v12 = vpop.f32.mrf.mxu0  ;;  %v2326_v22 = vpop.f32.mrf.mxu1  ;;  %7847 = vst [vmem:[#allocation39_spill] sm:$0xff] %v6337_v62  ;;  %v801_v24 = vsel %vm573_vm1, %v799_v53, %v800_v8  ;;  %v807_v35 = vsel %vm573_vm1, %v800_v8, %v806_v50  ;;  %v796_v8 = vrot.slane %v559_v36, 7 }
 0x166   :  { %v6342_v21 = vadd.f32 %v2326_v22, %v6153_v33  ;;  %v7848_v33 = vld [vmem:[#allocation75_spill] sm:$0xff]  ;;  %v1027_v11 = vsel %vm573_vm1, %v1018_v57, %v1026_v1  ;;  %v6366_v22 = vpack.c.bf16 %v1003_v56, %v997_v18  ;;  %v7853_v56 = vld [vmem:[#allocation76_spill] sm:$0xff] }
 0x167   :  { %v2103_v59 = vpop.f32.mrf.mxu0  ;;  %v2328_v13 = vpop.f32.mrf.mxu1  ;;  %v553_v0 = vsel %vm432_vm2, %v551_v28, %v552_v58 }
 0x168   :  { %v1019_v13 = vsel %vm573_vm1, %v4901_v37, %v1018_v57  ;;  %v561_v37 = vsel %vm339_vm0, %v559_v36, %v560_v52  ;;  %7850 = vst [vmem:[#allocation40_spill] sm:$0xff] %v6366_v22  ;;  %v1009_v57 = vrot.slane %v551_v28, 7  ;;  %v6372_v59 = vpack.c.bf16 %v807_v35, %v801_v24 }
 0x169   :  { %v6349_v47 = vpop.f32.mrf.mxu0  ;;  %v2331_v40 = vpop.f32.mrf.mxu1  ;;  %2522 = vmatmul.mubr.bf16.gmra.mxu1 %v6337_v62  ;;  %2683 = vmatmul.mubr.bf16.gmra.mxu0 %v7848_v33  ;;  %v797_v50 = vrot.slane %v561_v37, 7 }
 0x16a   :  { %v6359_v16 = vadd.f32 %v2331_v40, %v6157_v44  ;;  %2529 = vmatprep.mubr.bf16.mxu1 %v7849_v17  ;;  %2690 = vmatprep.mubr.bf16.mxu0 %v5854_v45  ;;  %v6370_v44 = vpack.c.bf16 %v1027_v11, %v1019_v13  ;;  %7852 = vst [vmem:[#allocation107_spill] sm:$0xff] %v6372_v59  ;;  %v1010_v40 = vrot.slane %v553_v0, 7  ;;  %v1016_v17 = vrot.slane %v554_v49, 7 }
 0x16b   :  { %v2108_v27 = vpop.f32.mrf.mxu0  ;;  %v2333_v9 = vpop.f32.mrf.mxu1 }
 0x16c   :  { %7851 = vst [vmem:[#allocation75_spill] sm:$0xff] %v6370_v44  ;;  %v804_v27 = vrot.slane %v560_v52, 7  ;;  %v1011_v13 = vsel %vm573_vm1, %v1009_v57, %v1010_v40  ;;  %v1017_v0 = vsel %vm573_vm1, %v1010_v40, %v1016_v17 }
 0x16d   :  { %v6368_v1 = vpop.f32.mrf.mxu0  ;;  %v2334_v58 = vpop.f32.mrf.mxu1  ;;  %v6392_v35 = vpack.c.bf16 %v1017_v0, %v1011_v13 }
 0x16e   :  { %v6375_v53 = vadd.f32 %v2334_v58, %v6165_v6  ;;  %v805_v6 = vsel %vm573_vm1, %v797_v50, %v804_v27 }
 0x16f   :  { %v2111_v9 = vpop.f32.mrf.mxu0  ;;  %v2336_v45 = vpop.f32.mrf.mxu1 }
 0x170   :  { %v798_v45 = vsel %vm573_vm1, %v796_v8, %v797_v50 }
 0x171   :  { %v6377_v18 = vpop.f32.mrf.mxu0  ;;  %v2339_v28 = vpop.f32.mrf.mxu1  ;;  %2530 = vmatmul.mubr.bf16.gmra.mxu1 %v6366_v22  ;;  %2691 = vmatmul.mubr.bf16.gmra.mxu0 %v7853_v56  ;;  %v6394_v37 = vpack.c.bf16 %v805_v6, %v798_v45 }
 0x172   :  { %v6384_v11 = vadd.f32 %v2339_v28, %v6171_v23  ;;  %2537 = vmatprep.mubr.bf16.mxu1 %v6370_v44  ;;  %2698 = vmatprep.mubr.bf16.mxu0 %v6372_v59 }
 0x173   :  { %v2116_v52 = vpop.f32.mrf.mxu0  ;;  %v2341_v36 = vpop.f32.mrf.mxu1 }
 0x175   :  { %v6390_v49 = vpop.f32.mrf.mxu0  ;;  %v2342_v24 = vpop.f32.mrf.mxu1 }
 0x176   :  { %v6397_v23 = vadd.f32 %v2342_v24, %v6182_v26 }
 0x177   :  { %v2119_v17 = vpop.f32.mrf.mxu0  ;;  %v2344_v57 = vpop.f32.mrf.mxu1 }
 0x179   :  { %v6399_v58 = vpop.f32.mrf.mxu0  ;;  %v2347_v40 = vpop.f32.mrf.mxu1  ;;  %2538 = vmatmul.mubr.bf16.gmra.mxu1 %v6392_v35  ;;  %2699 = vmatmul.mubr.bf16.gmra.mxu0 %v6394_v37 }
 0x17a   :  { %v6404_v8 = vadd.f32 %v2347_v40, %v6188_v60  ;;  %2706 = vmatprep.mubr.bf16.mxu0 %v5863_v32  ;;  %2867 = vmatprep.mubr.bf16.mxu1 %v7778_v2  ;;  %v7854_v60 = vld [vmem:[#allocation19_spill] sm:$0xff] }
 0x17b   :  { %v2124_v50 = vpop.f32.mrf.mxu0  ;;  %v2349_v27 = vpop.f32.mrf.mxu1 }
 0x17d   :  { %v6408_v26 = vpop.f32.mrf.mxu0  ;;  %v2350_v9 = vpop.f32.mrf.mxu1 }
 0x17e   :  { %v6411_v28 = vadd.f32 %v2350_v9, %v6201_v41 }
 0x17f   :  { %v2127_v13 = vpop.f32.mrf.mxu0  ;;  %v2352_v0 = vpop.f32.mrf.mxu1 }
 0x181   :  { %v6413_v45 = vpop.f32.mrf.mxu0  ;;  %v2355_v6 = vpop.f32.mrf.mxu1  ;;  %2707 = vmatmul.mubr.bf16.gmra.mxu0 %v5796_v46  ;;  %2868 = vmatmul.mubr.bf16.vlgmr.msra.gmra.mxu1 %v7854_v60 }
 0x182   :  { %v6418_v32 = vadd.f32 %v2355_v6, %v6209_v61  ;;  %2714 = vmatprep.mubr.bf16.mxu0 %v5873_v34  ;;  %2875 = vmatprep.mubr.bf16.mxu1 %v7782_v25  ;;  %v7855_v61 = vld [vmem:[#allocation26_spill] sm:$0xff] }
 0x183   :  { %v2132_v2 = vpop.f32.mrf.mxu0  ;;  %v2357_v52 = vpop.f32.mrf.mxu1  ;;  %v7869_v34 = vld [vmem:[#allocation6_spill] sm:$0xff] }
 0x185   :  { %v6422_v41 = vpop.f32.mrf.mxu0  ;;  %v2358_v36 = vpop.f32.mrf.mxu1 }
 0x186   :  { %v6425_v24 = vadd.f32 %v2358_v36, %v6226_v63 }
 0x187   :  { %v2135_v17 = vpop.f32.mrf.mxu0  ;;  %v2360_v57 = vpop.f32.mrf.mxu1 }
 0x189   :  { %v6427_v46 = vpop.f32.mrf.mxu0  ;;  %v2363_v40 = vpop.f32.mrf.mxu1  ;;  %2715 = vmatmul.mubr.bf16.gmra.mxu0 %v5948_v48  ;;  %2876 = vmatmul.mubr.bf16.gmra.mxu1 %v7855_v61 }
 0x18a   :  { %v6432_v50 = vadd.f32 %v2363_v40, %v6235_v4  ;;  %2722 = vmatprep.mubr.bf16.mxu0 %v5883_v39  ;;  %2883 = vmatprep.mubr.bf16.mxu1 %v7786_v42  ;;  %v7856_v4 = vld [vmem:[#allocation30_spill] sm:$0xff] }
 0x18b   :  { %v2140_v25 = vpop.f32.mrf.mxu0  ;;  %v2365_v27 = vpop.f32.mrf.mxu1 }
 0x18d   :  { %v6436_v63 = vpop.f32.mrf.mxu0  ;;  %v2366_v9 = vpop.f32.mrf.mxu1 }
 0x18e   :  { %v6439_v13 = vadd.f32 %v2366_v9, %v6249_v10 }
 0x18f   :  { %v2143_v0 = vpop.f32.mrf.mxu0  ;;  %v2368_v6 = vpop.f32.mrf.mxu1 }
 0x191   :  { %v6441_v60 = vpop.f32.mrf.mxu0  ;;  %v2371_v2 = vpop.f32.mrf.mxu1  ;;  %2723 = vmatmul.mubr.bf16.gmra.mxu0 %v5970_v29  ;;  %2884 = vmatmul.mubr.bf16.gmra.mxu1 %v7856_v4 }
 0x192   :  { %v6446_v52 = vadd.f32 %v2371_v2, %v6258_v14  ;;  %2730 = vmatprep.mubr.bf16.mxu0 %v5896_v5  ;;  %2891 = vmatprep.mubr.bf16.mxu1 %v7790_v31  ;;  %v7857_v14 = vld [vmem:[#allocation36_spill] sm:$0xff] }
 0x193   :  { %v2148_v42 = vpop.f32.mrf.mxu0  ;;  %v2373_v36 = vpop.f32.mrf.mxu1 }
 0x195   :  { %v6450_v10 = vpop.f32.mrf.mxu0  ;;  %v2374_v17 = vpop.f32.mrf.mxu1 }
 0x196   :  { %v6453_v57 = vadd.f32 %v2374_v17, %v6272_v38 }
 0x197   :  { %v2151_v40 = vpop.f32.mrf.mxu0  ;;  %v2376_v61 = vpop.f32.mrf.mxu1 }
 0x199   :  { %v6455_v25 = vpop.f32.mrf.mxu0  ;;  %v2379_v27 = vpop.f32.mrf.mxu1  ;;  %2731 = vmatmul.mubr.bf16.gmra.mxu0 %v5992_v7  ;;  %2892 = vmatmul.mubr.bf16.gmra.mxu1 %v7857_v14 }
 0x19a   :  { %v6460_v9 = vadd.f32 %v2379_v27, %v6281_v43  ;;  %2738 = vmatprep.mubr.bf16.mxu0 %v5901_v54  ;;  %2899 = vmatprep.mubr.bf16.mxu1 %v7794_v30  ;;  %v7858_v43 = vld [vmem:[#allocation42_spill] sm:$0xff]  ;;  %v7863_v54 = vld [vmem:[#allocation92_spill] sm:$0xff] }
 0x19b   :  { %v2156_v31 = vpop.f32.mrf.mxu0  ;;  %v2381_v0 = vpop.f32.mrf.mxu1 }
 0x19d   :  { %v6464_v38 = vpop.f32.mrf.mxu0  ;;  %v2382_v6 = vpop.f32.mrf.mxu1 }
 0x19e   :  { %v6467_v2 = vadd.f32 %v2382_v6, %v6295_v51 }
 0x19f   :  { %v2159_v4 = vpop.f32.mrf.mxu0  ;;  %v2384_v42 = vpop.f32.mrf.mxu1 }
 0x1a0   :  { %v7859_v42 = vld [vmem:[#allocation90_spill] sm:$0xff] }
 0x1a1   :  { %v6469_v36 = vpop.f32.mrf.mxu0  ;;  %v2387_v17 = vpop.f32.mrf.mxu1  ;;  %2739 = vmatmul.mubr.bf16.gmra.mxu0 %v6010_v3  ;;  %2900 = vmatmul.mubr.bf16.gmra.mxu1 %v7858_v43  ;;  %v7862_v43 = vld [vmem:[#allocation54_spill] sm:$0xff] }
 0x1a2   :  { %v6474_v40 = vadd.f32 %v2387_v17, %v6309_v19  ;;  %2746 = vmatprep.mubr.bf16.mxu0 %v5940_v20  ;;  %2907 = vmatprep.mubr.bf16.mxu1 %v7800_v15  ;;  %v7860_v19 = vld [vmem:[#allocation50_spill] sm:$0xff]  ;;  %v7861_v15 = vld [vmem:[#allocation85_spill] sm:$0xff] }
 0x1a3   :  { %v2164_v30 = vpop.f32.mrf.mxu0  ;;  %v2389_v61 = vpop.f32.mrf.mxu1 }
 0x1a5   :  { %v6478_v51 = vpop.f32.mrf.mxu0  ;;  %v2390_v27 = vpop.f32.mrf.mxu1 }
 0x1a6   :  { %v6481_v14 = vadd.f32 %v2390_v27, %v6335_v12 }
 0x1a7   :  { %v2167_v31 = vpop.f32.mrf.mxu0  ;;  %v2392_v0 = vpop.f32.mrf.mxu1 }
 0x1a9   :  { %v6483_v6 = vpop.f32.mrf.mxu0  ;;  %v2395_v4 = vpop.f32.mrf.mxu1  ;;  %2747 = vmatmul.mubr.bf16.gmra.mxu0 %v7859_v42  ;;  %2908 = vmatmul.mubr.bf16.gmra.mxu1 %v7860_v19 }
 0x1aa   :  { %v6488_v17 = vadd.f32 %v2395_v4, %v6349_v47  ;;  %2754 = vmatprep.mubr.bf16.mxu0 %v7861_v15  ;;  %2915 = vmatprep.mubr.bf16.mxu1 %v7862_v43  ;;  %v7864_v47 = vld [vmem:[#allocation56_spill] sm:$0xff] }
 0x1ab   :  { %v2172_v30 = vpop.f32.mrf.mxu0  ;;  %v2397_v61 = vpop.f32.mrf.mxu1  ;;  %v7866_v43 = vld [vmem:[#allocation8_spill] sm:$0xff] }
 0x1ac   :  { %v7867_v30 = vld [vmem:[#allocation57_spill] sm:$0xff] }
 0x1ad   :  { %v6492_v12 = vpop.f32.mrf.mxu0  ;;  %v2398_v27 = vpop.f32.mrf.mxu1 }
 0x1ae   :  { %v6495_v31 = vadd.f32 %v2398_v27, %v6368_v1 }
 0x1af   :  { %v2175_v0 = vpop.f32.mrf.mxu0  ;;  %v2400_v44 = vpop.f32.mrf.mxu1 }
 0x1b1   :  { %v6497_v20 = vpop.f32.mrf.mxu0  ;;  %v2403_v19 = vpop.f32.mrf.mxu1  ;;  %2755 = vmatmul.mubr.bf16.gmra.mxu0 %v7863_v54  ;;  %2916 = vmatmul.mubr.bf16.gmra.mxu1 %v7864_v47 }
 0x1b2   :  { %v6502_v4 = vadd.f32 %v2403_v19, %v6377_v18  ;;  %2762 = vmatprep.mubr.bf16.mxu0 %v7866_v43  ;;  %2923 = vmatprep.mubr.bf16.mxu1 %v7867_v30  ;;  %v7870_v18 = vld [vmem:[#allocation58_spill] sm:$0xff] }
 0x1b3   :  { %v2180_v61 = vpop.f32.mrf.mxu0  ;;  %v2405_v15 = vpop.f32.mrf.mxu1  ;;  %v7872_v30 = vld [vmem:[#allocation10_spill] sm:$0xff] }
 0x1b4   :  { %7865 = vst [vmem:[#allocation76_spill] sm:$0xff] %v6502_v4  ;;  %v7873_v15 = vld [vmem:[#allocation61_spill] sm:$0xff] }
 0x1b5   :  { %v6506_v1 = vpop.f32.mrf.mxu0  ;;  %v2406_v27 = vpop.f32.mrf.mxu1 }
 0x1b6   :  { %v6509_v44 = vadd.f32 %v2406_v27, %v6390_v49 }
 0x1b7   :  { %v2183_v0 = vpop.f32.mrf.mxu0  ;;  %v2408_v5 = vpop.f32.mrf.mxu1 }
 0x1b8   :  { %7868 = vst [vmem:[#allocation19_spill] sm:$0xff] %v6509_v44 }
 0x1b9   :  { %v6511_v39 = vpop.f32.mrf.mxu0  ;;  %v2411_v47 = vpop.f32.mrf.mxu1  ;;  %2763 = vmatmul.mubr.bf16.gmra.mxu0 %v7869_v34  ;;  %2924 = vmatmul.mubr.bf16.gmra.mxu1 %v7870_v18  ;;  %v7875_v18 = vld [vmem:[#allocation18_spill] sm:$0xff] }
 0x1ba   :  { %v6516_v19 = vadd.f32 %v2411_v47, %v6399_v58  ;;  %2770 = vmatprep.mubr.bf16.mxu0 %v7872_v30  ;;  %2931 = vmatprep.mubr.bf16.mxu1 %v7873_v15  ;;  %v7876_v58 = vld [vmem:[#allocation63_spill] sm:$0xff]  ;;  %v7878_v15 = vld [vmem:[#allocation9_spill] sm:$0xff]  ;;  %v7880_v30 = vld [vmem:[#allocation64_spill] sm:$0xff] }
 0x1bb   :  { %v2188_v61 = vpop.f32.mrf.mxu0  ;;  %v2413_v43 = vpop.f32.mrf.mxu1 }
 0x1bc   :  { %7871 = vst [vmem:[#allocation26_spill] sm:$0xff] %v6516_v19  ;;  %v7879_v43 = vld [vmem:[#allocation14_spill] sm:$0xff] }
 0x1bd   :  { %v6520_v49 = vpop.f32.mrf.mxu0  ;;  %v2414_v27 = vpop.f32.mrf.mxu1  ;;  %v7882_v19 = vld [vmem:[#allocation102_spill] sm:$0xff] }
 0x1be   :  { %v6523_v5 = vadd.f32 %v2414_v27, %v6408_v26 }
 0x1bf   :  { %v2191_v0 = vpop.f32.mrf.mxu0  ;;  %v2416_v44 = vpop.f32.mrf.mxu1 }
 0x1c0   :  { %7874 = vst [vmem:[#allocation30_spill] sm:$0xff] %v6523_v5 }
 0x1c1   :  { %v2419_v59 = vpop.f32.mrf.mxu1  ;;  %v2580_v4 = vpop.f32.mrf.mxu0  ;;  %2771 = vmatmul.mubr.bf16.gmra.mxu0 %v7875_v18  ;;  %2932 = vmatmul.mubr.bf16.gmra.mxu1 %v7876_v58 }
 0x1c2   :  { %v6528_v47 = vadd.f32 %v2419_v59, %v6413_v45  ;;  %v6531_v61 = vadd.f32 %v2580_v4, %v7878_v15  ;;  %2778 = vmatprep.mubr.bf16.mxu0 %v7879_v43  ;;  %2939 = vmatprep.mubr.bf16.mxu1 %v7880_v30  ;;  %v7884_v4 = vld [vmem:[#allocation21_spill] sm:$0xff]  ;;  %v7885_v15 = vld [vmem:[#allocation66_spill] sm:$0xff] }
 0x1c3   :  { %v2421_v26 = vpop.f32.mrf.mxu1  ;;  %v2582_v27 = vpop.f32.mrf.mxu0  ;;  %v7888_v43 = vld [vmem:[#allocation17_spill] sm:$0xff] }
 0x1c4   :  { %7877 = vst [vmem:[#allocation36_spill] sm:$0xff] %v6528_v47  ;;  %v7887_v26 = vld [vmem:[#allocation13_spill] sm:$0xff] }
 0x1c5   :  { %v2422_v0 = vpop.f32.mrf.mxu1  ;;  %v2583_v44 = vpop.f32.mrf.mxu0 }
 0x1c6   :  { %v6536_v5 = vadd.f32 %v2422_v0, %v6422_v41  ;;  %v6539_v18 = vadd.f32 %v2583_v44, %v7882_v19  ;;  %v7889_v41 = vld [vmem:[#allocation68_spill] sm:$0xff] }
 0x1c7   :  { %v2424_v58 = vpop.f32.mrf.mxu1  ;;  %v2585_v59 = vpop.f32.mrf.mxu0 }
 0x1c8   :  { %7881 = vst [vmem:[#allocation42_spill] sm:$0xff] %v6536_v5  ;;  %7883 = vst [vmem:[#allocation90_spill] sm:$0xff] %v6539_v18  ;;  %v7891_v18 = vld [vmem:[#allocation103_spill] sm:$0xff] }
 0x1c9   :  { %v2427_v45 = vpop.f32.mrf.mxu1  ;;  %v2588_v47 = vpop.f32.mrf.mxu0  ;;  %2779 = vmatmul.mubr.bf16.gmra.mxu0 %v7884_v4  ;;  %2940 = vmatmul.mubr.bf16.gmra.mxu1 %v7885_v15 }
 0x1ca   :  { %v6544_v30 = vadd.f32 %v2427_v45, %v6427_v46  ;;  %v6547_v27 = vadd.f32 %v2588_v47, %v7887_v26  ;;  %2786 = vmatprep.mubr.bf16.mxu0 %v7888_v43  ;;  %2947 = vmatprep.mubr.bf16.mxu1 %v7889_v41  ;;  %v7893_v47 = vld [vmem:[#allocation28_spill] sm:$0xff]  ;;  %v7894_v26 = vld [vmem:[#allocation67_spill] sm:$0xff] }
 0x1cb   :  { %v2429_v19 = vpop.f32.mrf.mxu1  ;;  %v2590_v0 = vpop.f32.mrf.mxu0  ;;  %v7897_v43 = vld [vmem:[#allocation24_spill] sm:$0xff] }
 0x1cc   :  { %7886 = vst [vmem:[#allocation50_spill] sm:$0xff] %v6544_v30  ;;  %v7896_v19 = vld [vmem:[#allocation16_spill] sm:$0xff] }
 0x1cd   :  { %v2430_v44 = vpop.f32.mrf.mxu1  ;;  %v2591_v58 = vpop.f32.mrf.mxu0 }
 0x1ce   :  { %v6552_v59 = vadd.f32 %v2430_v44, %v6436_v63  ;;  %v6555_v5 = vadd.f32 %v2591_v58, %v7891_v18  ;;  %v7898_v63 = vld [vmem:[#allocation70_spill] sm:$0xff] }
 0x1cf   :  { %v2432_v15 = vpop.f32.mrf.mxu1  ;;  %v2593_v46 = vpop.f32.mrf.mxu0 }
 0x1d0   :  { %7890 = vst [vmem:[#allocation54_spill] sm:$0xff] %v6552_v59  ;;  %7892 = vst [vmem:[#allocation92_spill] sm:$0xff] %v6555_v5  ;;  %v7899_v5 = vld [vmem:[#allocation104_spill] sm:$0xff] }
 0x1d1   :  { %v2435_v45 = vpop.f32.mrf.mxu1  ;;  %v2596_v30 = vpop.f32.mrf.mxu0  ;;  %2787 = vmatmul.mubr.bf16.gmra.mxu0 %v7893_v47  ;;  %2948 = vmatmul.mubr.bf16.gmra.mxu1 %v7894_v26 }
 0x1d2   :  { %v6560_v41 = vadd.f32 %v2435_v45, %v6441_v60  ;;  %v6563_v0 = vadd.f32 %v2596_v30, %v7896_v19  ;;  %2794 = vmatprep.mubr.bf16.mxu0 %v7897_v43  ;;  %2955 = vmatprep.mubr.bf16.mxu1 %v7898_v63  ;;  %v7901_v30 = vld [vmem:[#allocation33_spill] sm:$0xff]  ;;  %v7902_v19 = vld [vmem:[#allocation71_spill] sm:$0xff] }
 0x1d3   :  { %v2437_v18 = vpop.f32.mrf.mxu1  ;;  %v2598_v44 = vpop.f32.mrf.mxu0 }
 0x1d4   :  { %7895 = vst [vmem:[#allocation56_spill] sm:$0xff] %v6560_v41  ;;  %v7904_v18 = vld [vmem:[#allocation23_spill] sm:$0xff] }
 0x1d5   :  { %v2438_v58 = vpop.f32.mrf.mxu1  ;;  %v2599_v15 = vpop.f32.mrf.mxu0 }
 0x1d6   :  { %v6568_v46 = vadd.f32 %v2438_v58, %v6450_v10  ;;  %v6571_v59 = vadd.f32 %v2599_v15, %v7899_v5 }
 0x1d7   :  { %v2440_v26 = vpop.f32.mrf.mxu1  ;;  %v2601_v60 = vpop.f32.mrf.mxu0 }
 0x1d8   :  { %7900 = vst [vmem:[#allocation57_spill] sm:$0xff] %v6571_v59  ;;  %v7906_v60 = vld [vmem:[#allocation29_spill] sm:$0xff] }
 0x1d9   :  { %v2443_v45 = vpop.f32.mrf.mxu1  ;;  %v2604_v41 = vpop.f32.mrf.mxu0  ;;  %2795 = vmatmul.mubr.bf16.gmra.mxu0 %v7901_v30  ;;  %2956 = vmatmul.mubr.bf16.gmra.mxu1 %v7902_v19  ;;  %v7910_v59 = vld [vmem:[#allocation37_spill] sm:$0xff] }
 0x1da   :  { %v6576_v63 = vadd.f32 %v2443_v45, %v6455_v25  ;;  %v6579_v44 = vadd.f32 %v2604_v41, %v7904_v18  ;;  %2802 = vmatprep.mubr.bf16.mxu0 %v6337_v62  ;;  %2963 = vmatprep.mubr.bf16.mxu1 %v7848_v33  ;;  %v7908_v45 = vld [vmem:[#allocation34_spill] sm:$0xff]  ;;  %v7909_v41 = vld [vmem:[#allocation105_spill] sm:$0xff]  ;;  %v7911_v33 = vld [vmem:[#allocation72_spill] sm:$0xff] }
 0x1db   :  { %v2445_v10 = vpop.f32.mrf.mxu1  ;;  %v2606_v5 = vpop.f32.mrf.mxu0  ;;  %v570_v18 = vrot.slane %v7909_v41, 2 }
 0x1dc   :  { %7903 = vst [vmem:[#allocation6_spill] sm:$0xff] %v6576_v63  ;;  %7905 = vst [vmem:[#allocation58_spill] sm:$0xff] %v6579_v44  ;;  %v569_v63 = vrot.slane %v7908_v45, 2 }
 0x1dd   :  { %v2446_v58 = vpop.f32.mrf.mxu1  ;;  %v2607_v15 = vpop.f32.mrf.mxu0 }
 0x1de   :  { %v6584_v26 = vadd.f32 %v2446_v58, %v6464_v38  ;;  %v6587_v43 = vadd.f32 %v2607_v15, %v7906_v60  ;;  %v7913_v38 = vld [vmem:[#allocation106_spill] sm:$0xff]  ;;  %v571_v60 = vsel %vm432_vm2, %v569_v63, %v570_v18 }
 0x1df   :  { %v2448_v19 = vpop.f32.mrf.mxu1  ;;  %v2609_v25 = vpop.f32.mrf.mxu0 }
 0x1e0   :  { %7907 = vst [vmem:[#allocation61_spill] sm:$0xff] %v6587_v43  ;;  %v572_v19 = vsel %vm432_vm2, %v570_v18, %v4932_v55  ;;  %v7915_v55 = vld [vmem:[#allocation45_spill] sm:$0xff] }
 0x1e1   :  { %v2451_v44 = vpop.f32.mrf.mxu1  ;;  %v2612_v62 = vpop.f32.mrf.mxu0  ;;  %2803 = vmatmul.mubr.bf16.gmra.mxu0 %v7910_v59  ;;  %2964 = vmatmul.mubr.bf16.gmra.mxu1 %v7911_v33  ;;  %v7916_v18 = vld [vmem:[#allocation77_spill] sm:$0xff] }
 0x1e2   :  { %v6594_v10 = vadd.f32 %v2451_v44, %v6469_v36  ;;  %v6597_v5 = vadd.f32 %v2612_v62, %v7913_v38  ;;  %2810 = vmatprep.mubr.bf16.mxu0 %v6366_v22  ;;  %2971 = vmatprep.mubr.bf16.mxu1 %v7853_v56  ;;  %v562_v62 = vrot.slane %v7908_v45, 1  ;;  %v563_v44 = vrot.slane %v7909_v41, 1 }
 0x1e3   :  { %v2453_v58 = vpop.f32.mrf.mxu1  ;;  %v2614_v15 = vpop.f32.mrf.mxu0  ;;  %v1030_v22 = vrot.slane %v572_v19, 7 }
 0x1e4   :  { %7912 = vst [vmem:[#allocation63_spill] sm:$0xff] %v6594_v10  ;;  %7914 = vst [vmem:[#allocation9_spill] sm:$0xff] %v6597_v5  ;;  %v1023_v58 = vrot.slane %v569_v63, 7  ;;  %v1024_v15 = vrot.slane %v571_v60, 7 }
 0x1e5   :  { %v2454_v25 = vpop.f32.mrf.mxu1  ;;  %v2615_v43 = vpop.f32.mrf.mxu0 }
 0x1e6   :  { %v6605_v33 = vadd.f32 %v2454_v25, %v6478_v51  ;;  %v6608_v36 = vadd.f32 %v2615_v43, %v6342_v21  ;;  %v564_v43 = vsel %vm339_vm0, %v562_v62, %v563_v44  ;;  %v1025_v41 = vsel %vm573_vm1, %v1023_v58, %v1024_v15  ;;  %v7917_v58 = vld [vmem:[#allocation48_spill] sm:$0xff] }
 0x1e7   :  { %v2456_v56 = vpop.f32.mrf.mxu1  ;;  %v2617_v38 = vpop.f32.mrf.mxu0  ;;  %v1031_v60 = vsel %vm573_vm1, %v1024_v15, %v1030_v22  ;;  %v7918_v22 = vld [vmem:[#allocation93_spill] sm:$0xff] }
 0x1e8   :  { %v1020_v56 = vrot.slane %v562_v62, 7 }
 0x1e9   :  { %v2459_v5 = vpop.f32.mrf.mxu1  ;;  %v2620_v10 = vpop.f32.mrf.mxu0  ;;  %2811 = vmatmul.mubr.bf16.gmra.mxu0 %v7915_v55  ;;  %2972 = vmatmul.mubr.bf16.gmra.mxu1 %v7916_v18 }
 0x1ea   :  { %v6615_v51 = vadd.f32 %v2459_v5, %v6483_v6  ;;  %v6618_v21 = vadd.f32 %v2620_v10, %v6359_v16  ;;  %2818 = vmatprep.mubr.bf16.mxu0 %v6392_v35  ;;  %2979 = vmatprep.mubr.bf16.mxu1 %v6394_v37  ;;  %v1021_v6 = vrot.slane %v564_v43, 7  ;;  %v6631_v10 = vpack.c.bf16 %v1031_v60, %v1025_v41 }
 0x1eb   :  { %v2461_v63 = vpop.f32.mrf.mxu1  ;;  %v2622_v45 = vpop.f32.mrf.mxu0  ;;  %v1028_v37 = vrot.slane %v563_v44, 7 }
 0x1ec   :  { %v1022_v62 = vsel %vm573_vm1, %v1020_v56, %v1021_v6 }
 0x1ed   :  { %v2462_v19 = vpop.f32.mrf.mxu1  ;;  %v2623_v25 = vpop.f32.mrf.mxu0  ;;  %v1029_v44 = vsel %vm573_vm1, %v1021_v6, %v1028_v37 }
 0x1ee   :  { %v6626_v5 = vadd.f32 %v2462_v19, %v6492_v12  ;;  %v6629_v16 = vadd.f32 %v2623_v25, %v6375_v53  ;;  %v7919_v53 = vld [vmem:[#allocation3_spill] sm:$0xff]  ;;  %v6645_v25 = vpack.c.bf16 %v1029_v44, %v1022_v62 }
 0x1ef   :  { %v2464_v38 = vpop.f32.mrf.mxu1  ;;  %v2625_v18 = vpop.f32.mrf.mxu0 }
 0x1f1   :  { %v2467_v63 = vpop.f32.mrf.mxu1  ;;  %v2628_v45 = vpop.f32.mrf.mxu0  ;;  %2819 = vmatmul.mubr.bf16.gmra.mxu0 %v7917_v58  ;;  %2980 = vmatmul.mubr.bf16.gmra.mxu1 %v7918_v22 }
 0x1f2   :  { %v6637_v15 = vadd.f32 %v2467_v63, %v6497_v20  ;;  %v6640_v12 = vadd.f32 %v2628_v45, %v6384_v11  ;;  %2826 = vmatprep.mubr.bf16.mxu0 %v6631_v10  ;;  %2987 = vmatprep.mubr.bf16.mxu1 %v7919_v53  ;;  %v7920_v45 = vld [vmem:[#allocation11_spill] sm:$0xff] }
 0x1f3   :  { %v2469_v43 = vpop.f32.mrf.mxu1  ;;  %v2630_v41 = vpop.f32.mrf.mxu0 }
 0x1f5   :  { %v2470_v60 = vpop.f32.mrf.mxu1  ;;  %v2631_v19 = vpop.f32.mrf.mxu0 }
 0x1f6   :  { %v6648_v56 = vadd.f32 %v2470_v60, %v6506_v1  ;;  %v6651_v20 = vadd.f32 %v2631_v19, %v6397_v23  ;;  %v7921_v1 = vld [vmem:[#allocation44_spill] sm:$0xff] }
 0x1f7   :  { %v2472_v11 = vpop.f32.mrf.mxu1  ;;  %v2633_v38 = vpop.f32.mrf.mxu0 }
 0x1f8   :  { %v7922_v11 = vld [vmem:[#allocation86_spill] sm:$0xff] }
 0x1f9   :  { %v2475_v18 = vpop.f32.mrf.mxu1  ;;  %v2636_v63 = vpop.f32.mrf.mxu0  ;;  %2827 = vmatmul.mubr.bf16.gmra.mxu0 %v6645_v25  ;;  %2988 = vmatmul.mubr.bf16.gmra.mxu1 %v7920_v45 }
 0x1fa   :  { %v6656_v6 = vadd.f32 %v2475_v18, %v6511_v39  ;;  %v6659_v37 = vadd.f32 %v2636_v63, %v6404_v8  ;;  %2995 = vmatprep.mubr.bf16.mxu1 %v5948_v48  ;;  %4610 = vmatprep.mubr.bf16.mxu0 %v7921_v1  ;;  %v7923_v48 = vld [vmem:[#allocation46_spill] sm:$0xff]  ;;  %v7924_v18 = vld [vmem:[#allocation49_spill] sm:$0xff] }
 0x1fb   :  { %v2477_v23 = vpop.f32.mrf.mxu1  ;;  %v2638_v22 = vpop.f32.mrf.mxu0 }
 0x1fd   :  { %v2478_v62 = vpop.f32.mrf.mxu1  ;;  %v2639_v44 = vpop.f32.mrf.mxu0 }
 0x1fe   :  { %v6664_v43 = vadd.f32 %v2478_v62, %v6520_v49  ;;  %v6667_v41 = vadd.f32 %v2639_v44, %v6411_v28 }
 0x1ff   :  { %v2480_v60 = vpop.f32.mrf.mxu1  ;;  %v2641_v39 = vpop.f32.mrf.mxu0 }
 0x200   :  { %v7925_v39 = vld [vmem:[#allocation87_spill] sm:$0xff] }
 0x201   :  { %v6669_v19 = vpop.f32.mrf.mxu1  ;;  %v2644_v8 = vpop.f32.mrf.mxu0  ;;  %2996 = vmatmul.mubr.bf16.gmra.mxu1 %v7922_v11  ;;  %4611 = vmatmul.mubr.bf16.vlgmr.msra.gmra.mxu0 %v7923_v48 }
 0x202   :  { %v6674_v38 = vadd.f32 %v2644_v8, %v6418_v32  ;;  %3003 = vmatprep.mubr.bf16.mxu1 %v5970_v29  ;;  %4614 = vmatprep.mubr.bf16.mxu0 %v7924_v18  ;;  %v7926_v32 = vld [vmem:[#allocation53_spill] sm:$0xff]  ;;  %v7927_v8 = vld [vmem:[#allocation55_spill] sm:$0xff] }
 0x203   :  { %v2485_v49 = vpop.f32.mrf.mxu1  ;;  %v2646_v63 = vpop.f32.mrf.mxu0 }
 0x205   :  { %v6678_v28 = vpop.f32.mrf.mxu1  ;;  %v2647_v1 = vpop.f32.mrf.mxu0 }
 0x206   :  { %v6681_v23 = vadd.f32 %v2647_v1, %v6425_v24 }
 0x207   :  { %v2488_v22 = vpop.f32.mrf.mxu1  ;;  %v2649_v62 = vpop.f32.mrf.mxu0 }
 0x209   :  { %v6683_v44 = vpop.f32.mrf.mxu1  ;;  %v2652_v60 = vpop.f32.mrf.mxu0  ;;  %3004 = vmatmul.mubr.bf16.gmra.mxu1 %v7925_v39  ;;  %4615 = vmatmul.mubr.bf16.gmra.mxu0 %v7926_v32  ;;  %v7928_v39 = vld [vmem:[#allocation88_spill] sm:$0xff] }
 0x20a   :  { %v6688_v29 = vadd.f32 %v2652_v60, %v6432_v50  ;;  %3011 = vmatprep.mubr.bf16.mxu1 %v5992_v7  ;;  %4618 = vmatprep.mubr.bf16.mxu0 %v7927_v8  ;;  %v7929_v50 = vld [vmem:[#allocation59_spill] sm:$0xff]  ;;  %v7930_v60 = vld [vmem:[#allocation60_spill] sm:$0xff] }
 0x20b   :  { %v2493_v11 = vpop.f32.mrf.mxu1  ;;  %v2654_v48 = vpop.f32.mrf.mxu0 }
 0x20d   :  { %v6692_v24 = vpop.f32.mrf.mxu1  ;;  %v2655_v18 = vpop.f32.mrf.mxu0 }
 0x20e   :  { %v6695_v49 = vadd.f32 %v2655_v18, %v6439_v13 }
 0x20f   :  { %v2496_v63 = vpop.f32.mrf.mxu1  ;;  %v2657_v1 = vpop.f32.mrf.mxu0 }
 0x211   :  { %v6697_v22 = vpop.f32.mrf.mxu1  ;;  %v2660_v62 = vpop.f32.mrf.mxu0  ;;  %3012 = vmatmul.mubr.bf16.gmra.mxu1 %v7928_v39  ;;  %4619 = vmatmul.mubr.bf16.gmra.mxu0 %v7929_v50  ;;  %v7932_v50 = vld [vmem:[#allocation89_spill] sm:$0xff] }
 0x212   :  { %v6702_v7 = vadd.f32 %v2660_v62, %v6446_v52  ;;  %3019 = vmatprep.mubr.bf16.mxu1 %v6010_v3  ;;  %4622 = vmatprep.mubr.bf16.mxu0 %v7930_v60  ;;  %v7933_v52 = vld [vmem:[#allocation62_spill] sm:$0xff]  ;;  %v7934_v62 = vld [vmem:[#allocation65_spill] sm:$0xff] }
 0x213   :  { %v2501_v32 = vpop.f32.mrf.mxu1  ;;  %v2662_v8 = vpop.f32.mrf.mxu0 }
 0x215   :  { %v6706_v13 = vpop.f32.mrf.mxu1  ;;  %v2663_v11 = vpop.f32.mrf.mxu0 }
 0x216   :  { %v6709_v48 = vadd.f32 %v2663_v11, %v6453_v57 }
 0x217   :  { %v2504_v18 = vpop.f32.mrf.mxu1  ;;  %v2665_v63 = vpop.f32.mrf.mxu0 }
 0x219   :  { %v6711_v1 = vpop.f32.mrf.mxu1  ;;  %v2668_v39 = vpop.f32.mrf.mxu0  ;;  %3020 = vmatmul.mubr.bf16.gmra.mxu1 %v7932_v50  ;;  %4623 = vmatmul.mubr.bf16.gmra.mxu0 %v7933_v52 }
 0x21a   :  { %7931 = vst [vmem:[#allocation64_spill] sm:$0xff] %v6711_v1  ;;  %v6716_v3 = vadd.f32 %v2668_v39, %v6460_v9  ;;  %3027 = vmatprep.mubr.bf16.mxu1 %v7859_v42  ;;  %4626 = vmatprep.mubr.bf16.mxu0 %v7934_v62  ;;  %v7936_v1 = vld [vmem:[#allocation91_spill] sm:$0xff]  ;;  %v7937_v9 = vld [vmem:[#allocation69_spill] sm:$0xff] }
 0x21b   :  { %v2509_v60 = vpop.f32.mrf.mxu1  ;;  %v2670_v32 = vpop.f32.mrf.mxu0  ;;  %v7938_v39 = vld [vmem:[#allocation73_spill] sm:$0xff] }
 0x21d   :  { %v6720_v57 = vpop.f32.mrf.mxu1  ;;  %v2671_v8 = vpop.f32.mrf.mxu0 }
 0x21e   :  { %v6723_v11 = vadd.f32 %v2671_v8, %v6467_v2 }
 0x21f   :  { %v2512_v18 = vpop.f32.mrf.mxu1  ;;  %v2673_v63 = vpop.f32.mrf.mxu0 }
 0x221   :  { %v6725_v50 = vpop.f32.mrf.mxu1  ;;  %v2676_v52 = vpop.f32.mrf.mxu0  ;;  %3028 = vmatmul.mubr.bf16.gmra.mxu1 %v7936_v1  ;;  %4627 = vmatmul.mubr.bf16.gmra.mxu0 %v7937_v9 }
 0x222   :  { %7935 = vst [vmem:[#allocation102_spill] sm:$0xff] %v6725_v50  ;;  %v6730_v42 = vadd.f32 %v2676_v52, %v6474_v40  ;;  %3035 = vmatprep.mubr.bf16.mxu1 %v7863_v54  ;;  %4630 = vmatprep.mubr.bf16.mxu0 %v7938_v39  ;;  %v7940_v50 = vld [vmem:[#allocation94_spill] sm:$0xff] }
 0x223   :  { %v2517_v62 = vpop.f32.mrf.mxu1  ;;  %v2678_v60 = vpop.f32.mrf.mxu0  ;;  %v7941_v40 = vld [vmem:[#allocation74_spill] sm:$0xff] }
 0x224   :  { %v7943_v52 = vld [vmem:[#allocation78_spill] sm:$0xff] }
 0x225   :  { %v6734_v2 = vpop.f32.mrf.mxu1  ;;  %v2679_v32 = vpop.f32.mrf.mxu0 }
 0x226   :  { %v6737_v8 = vadd.f32 %v2679_v32, %v6481_v14 }
 0x227   :  { %v2520_v18 = vpop.f32.mrf.mxu1  ;;  %v2681_v63 = vpop.f32.mrf.mxu0 }
 0x229   :  { %v6739_v1 = vpop.f32.mrf.mxu1  ;;  %v2684_v9 = vpop.f32.mrf.mxu0  ;;  %3036 = vmatmul.mubr.bf16.gmra.mxu1 %v7940_v50  ;;  %4631 = vmatmul.mubr.bf16.gmra.mxu0 %v7941_v40 }
 0x22a   :  { %7939 = vst [vmem:[#allocation21_spill] sm:$0xff] %v6739_v1  ;;  %v6744_v54 = vadd.f32 %v2684_v9, %v6488_v17  ;;  %3043 = vmatprep.mubr.bf16.mxu1 %v7869_v34  ;;  %4634 = vmatprep.mubr.bf16.mxu0 %v7943_v52  ;;  %v7947_v1 = vld [vmem:[#allocation12_spill] sm:$0xff]  ;;  %v7948_v17 = vld [vmem:[#allocation79_spill] sm:$0xff]  ;;  %v7951_v52 = vld [vmem:[#allocation18_spill] sm:$0xff] }
 0x22b   :  { %v2525_v39 = vpop.f32.mrf.mxu1  ;;  %v2686_v62 = vpop.f32.mrf.mxu0  ;;  %v7949_v34 = vld [vmem:[#allocation76_spill] sm:$0xff] }
 0x22c   :  { %7942 = vst [vmem:[#allocation66_spill] sm:$0xff] %v6744_v54  ;;  %v7952_v39 = vld [vmem:[#allocation107_spill] sm:$0xff] }
 0x22d   :  { %v6748_v14 = vpop.f32.mrf.mxu1  ;;  %v2687_v60 = vpop.f32.mrf.mxu0  ;;  %v7957_v54 = vld [vmem:[#allocation15_spill] sm:$0xff] }
 0x22e   :  { %7944 = vst [vmem:[#allocation13_spill] sm:$0xff] %v6748_v14  ;;  %v6751_v32 = vadd.f32 %v2687_v60, %v6495_v31 }
 0x22f   :  { %v2528_v18 = vpop.f32.mrf.mxu1  ;;  %v2689_v63 = vpop.f32.mrf.mxu0 }
 0x230   :  { %7945 = vst [vmem:[#allocation68_spill] sm:$0xff] %v6751_v32  ;;  %v7954_v18 = vld [vmem:[#allocation19_spill] sm:$0xff] }
 0x231   :  { %v6753_v50 = vpop.f32.mrf.mxu1  ;;  %v2692_v40 = vpop.f32.mrf.mxu0  ;;  %3044 = vmatmul.mubr.bf16.gmra.mxu1 %v7947_v1  ;;  %4635 = vmatmul.mubr.bf16.gmra.mxu0 %v7948_v17 }
 0x232   :  { %7946 = vst [vmem:[#allocation103_spill] sm:$0xff] %v6753_v50  ;;  %v6758_v9 = vadd.f32 %v2692_v40, %v7949_v34  ;;  %3051 = vmatprep.mubr.bf16.mxu1 %v7951_v52  ;;  %4638 = vmatprep.mubr.bf16.mxu0 %v7952_v39  ;;  %v7958_v40 = vld [vmem:[#allocation51_spill] sm:$0xff]  ;;  %v7959_v34 = vld [vmem:[#allocation26_spill] sm:$0xff] }
 0x233   :  { %v2533_v62 = vpop.f32.mrf.mxu1  ;;  %v2694_v14 = vpop.f32.mrf.mxu0 }
 0x234   :  { %7950 = vst [vmem:[#allocation28_spill] sm:$0xff] %v6758_v9  ;;  %v7960_v14 = vld [vmem:[#allocation80_spill] sm:$0xff]  ;;  %v7964_v9 = vld [vmem:[#allocation22_spill] sm:$0xff] }
 0x235   :  { %v6762_v31 = vpop.f32.mrf.mxu1  ;;  %v2695_v60 = vpop.f32.mrf.mxu0 }
 0x236   :  { %7953 = vst [vmem:[#allocation67_spill] sm:$0xff] %v6762_v31  ;;  %v6765_v63 = vadd.f32 %v2695_v60, %v7954_v18 }
 0x237   :  { %v2536_v50 = vpop.f32.mrf.mxu1  ;;  %v2697_v32 = vpop.f32.mrf.mxu0 }
 0x238   :  { %7955 = vst [vmem:[#allocation16_spill] sm:$0xff] %v6765_v63  ;;  %v7962_v32 = vld [vmem:[#allocation30_spill] sm:$0xff] }
 0x239   :  { %v6767_v1 = vpop.f32.mrf.mxu1  ;;  %v2700_v17 = vpop.f32.mrf.mxu0  ;;  %3052 = vmatmul.mubr.bf16.gmra.mxu1 %v7957_v54  ;;  %4639 = vmatmul.mubr.bf16.gmra.mxu0 %v7958_v40 }
 0x23a   :  { %7956 = vst [vmem:[#allocation70_spill] sm:$0xff] %v6767_v1  ;;  %v6772_v52 = vadd.f32 %v2700_v17, %v7959_v34  ;;  %3059 = vmatprep.mubr.bf16.mxu1 %v7884_v4  ;;  %4642 = vmatprep.mubr.bf16.mxu0 %v7960_v14  ;;  %v7965_v17 = vld [vmem:[#allocation81_spill] sm:$0xff]  ;;  %v7966_v34 = vld [vmem:[#allocation36_spill] sm:$0xff] }
 0x23b   :  { %v2541_v39 = vpop.f32.mrf.mxu1  ;;  %v2702_v62 = vpop.f32.mrf.mxu0 }
 0x23c   :  { %v7968_v39 = vld [vmem:[#allocation82_spill] sm:$0xff] }
 0x23d   :  { %v6776_v60 = vpop.f32.mrf.mxu1  ;;  %v2703_v50 = vpop.f32.mrf.mxu0 }
 0x23e   :  { %7961 = vst [vmem:[#allocation104_spill] sm:$0xff] %v6776_v60  ;;  %v6779_v18 = vadd.f32 %v2703_v50, %v7962_v32  ;;  %v7969_v32 = vld [vmem:[#allocation42_spill] sm:$0xff] }
 0x23f   :  { %v2544_v1 = vpop.f32.mrf.mxu1  ;;  %v2705_v63 = vpop.f32.mrf.mxu0 }
 0x240   :  { %7963 = vst [vmem:[#allocation33_spill] sm:$0xff] %v6779_v18 }
 0x241   :  { %v2708_v54 = vpop.f32.mrf.mxu0  ;;  %v2869_v31 = vpop.f32.mrf.mxu1  ;;  %3060 = vmatmul.mubr.bf16.gmra.mxu1 %v7964_v9  ;;  %4643 = vmatmul.mubr.bf16.gmra.mxu0 %v7965_v17  ;;  %v7970_v9 = vld [vmem:[#allocation90_spill] sm:$0xff] }
 0x242   :  { %v6784_v4 = vadd.f32 %v2708_v54, %v7966_v34  ;;  %v6787_v14 = vadd.f32 %v2869_v31, %v6531_v61  ;;  %3067 = vmatprep.mubr.bf16.mxu1 %v7893_v47  ;;  %4646 = vmatprep.mubr.bf16.mxu0 %v7968_v39  ;;  %v7972_v61 = vld [vmem:[#allocation27_spill] sm:$0xff]  ;;  %v7974_v47 = vld [vmem:[#allocation50_spill] sm:$0xff] }
 0x243   :  { %v2710_v62 = vpop.f32.mrf.mxu0  ;;  %v2871_v50 = vpop.f32.mrf.mxu1  ;;  %v7973_v31 = vld [vmem:[#allocation83_spill] sm:$0xff] }
 0x244   :  { %7967 = vst [vmem:[#allocation71_spill] sm:$0xff] %v6784_v4  ;;  %v7976_v50 = vld [vmem:[#allocation84_spill] sm:$0xff] }
 0x245   :  { %v2711_v1 = vpop.f32.mrf.mxu0  ;;  %v2872_v63 = vpop.f32.mrf.mxu1 }
 0x246   :  { %v6792_v18 = vadd.f32 %v2711_v1, %v7969_v32  ;;  %v6795_v60 = vadd.f32 %v2872_v63, %v7970_v9 }
 0x247   :  { %v2713_v17 = vpop.f32.mrf.mxu0  ;;  %v2874_v54 = vpop.f32.mrf.mxu1 }
 0x248   :  { %7971 = vst [vmem:[#allocation23_spill] sm:$0xff] %v6795_v60  ;;  %v7977_v17 = vld [vmem:[#allocation54_spill] sm:$0xff] }
 0x249   :  { %v2716_v34 = vpop.f32.mrf.mxu0  ;;  %v2877_v4 = vpop.f32.mrf.mxu1  ;;  %3068 = vmatmul.mubr.bf16.gmra.mxu1 %v7972_v61  ;;  %4647 = vmatmul.mubr.bf16.gmra.mxu0 %v7973_v31  ;;  %v7978_v61 = vld [vmem:[#allocation92_spill] sm:$0xff] }
 0x24a   :  { %v6800_v39 = vadd.f32 %v2716_v34, %v7974_v47  ;;  %v6803_v62 = vadd.f32 %v2877_v4, %v6547_v27  ;;  %3075 = vmatprep.mubr.bf16.mxu1 %v7901_v30  ;;  %4650 = vmatprep.mubr.bf16.mxu0 %v7976_v50  ;;  %v7979_v27 = vld [vmem:[#allocation31_spill] sm:$0xff]  ;;  %v7980_v4 = vld [vmem:[#allocation85_spill] sm:$0xff]  ;;  %v7981_v30 = vld [vmem:[#allocation56_spill] sm:$0xff] }
 0x24b   :  { %v2718_v1 = vpop.f32.mrf.mxu0  ;;  %v2879_v63 = vpop.f32.mrf.mxu1 }
 0x24c   :  { %7975 = vst [vmem:[#allocation29_spill] sm:$0xff] %v6800_v39  ;;  %v7983_v63 = vld [vmem:[#allocation8_spill] sm:$0xff] }
 0x24d   :  { %v2719_v32 = vpop.f32.mrf.mxu0  ;;  %v2880_v9 = vpop.f32.mrf.mxu1 }
 0x24e   :  { %v6808_v54 = vadd.f32 %v2719_v32, %v7977_v17  ;;  %v6811_v60 = vadd.f32 %v2880_v9, %v7978_v61 }
 0x24f   :  { %v2721_v31 = vpop.f32.mrf.mxu0  ;;  %v2882_v34 = vpop.f32.mrf.mxu1 }
 0x250   :  { %v7985_v34 = vld [vmem:[#allocation57_spill] sm:$0xff] }
 0x251   :  { %v2724_v47 = vpop.f32.mrf.mxu0  ;;  %v2885_v39 = vpop.f32.mrf.mxu1  ;;  %3076 = vmatmul.mubr.bf16.gmra.mxu1 %v7979_v27  ;;  %4651 = vmatmul.mubr.bf16.gmra.mxu0 %v7980_v4 }
 0x252   :  { %v6816_v50 = vadd.f32 %v2724_v47, %v7981_v30  ;;  %v6819_v1 = vadd.f32 %v2885_v39, %v6563_v0  ;;  %3083 = vmatprep.mubr.bf16.mxu1 %v7910_v59  ;;  %4654 = vmatprep.mubr.bf16.mxu0 %v7983_v63  ;;  %v7986_v0 = vld [vmem:[#allocation38_spill] sm:$0xff] }
 0x253   :  { %v2726_v32 = vpop.f32.mrf.mxu0  ;;  %v2887_v9 = vpop.f32.mrf.mxu1  ;;  %v7987_v39 = vld [vmem:[#allocation10_spill] sm:$0xff] }
 0x254   :  { %7982 = vst [vmem:[#allocation34_spill] sm:$0xff] %v6816_v50  ;;  %v7988_v59 = vld [vmem:[#allocation6_spill] sm:$0xff] }
 0x255   :  { %v2727_v17 = vpop.f32.mrf.mxu0  ;;  %v2888_v61 = vpop.f32.mrf.mxu1  ;;  %v7990_v32 = vld [vmem:[#allocation58_spill] sm:$0xff] }
 0x256   :  { %v6824_v31 = vadd.f32 %v2727_v17, %v6568_v46  ;;  %v6827_v27 = vadd.f32 %v2888_v61, %v7985_v34  ;;  %v7991_v46 = vld [vmem:[#allocation14_spill] sm:$0xff] }
 0x257   :  { %v2729_v4 = vpop.f32.mrf.mxu0  ;;  %v2890_v47 = vpop.f32.mrf.mxu1 }
 0x258   :  { %7984 = vst [vmem:[#allocation105_spill] sm:$0xff] %v6824_v31 }
 0x259   :  { %v2732_v30 = vpop.f32.mrf.mxu0  ;;  %v2893_v50 = vpop.f32.mrf.mxu1  ;;  %3084 = vmatmul.mubr.bf16.gmra.mxu1 %v7986_v0  ;;  %4655 = vmatmul.mubr.bf16.gmra.mxu0 %v7987_v39  ;;  %v7992_v0 = vld [vmem:[#allocation61_spill] sm:$0xff] }
 0x25a   :  { %v6832_v63 = vadd.f32 %v2732_v30, %v7988_v59  ;;  %v6835_v9 = vadd.f32 %v2893_v50, %v7990_v32  ;;  %3091 = vmatprep.mubr.bf16.mxu1 %v7915_v55  ;;  %4658 = vmatprep.mubr.bf16.mxu0 %v7991_v46  ;;  %v7993_v50 = vld [vmem:[#allocation43_spill] sm:$0xff]  ;;  %v7994_v32 = vld [vmem:[#allocation17_spill] sm:$0xff] }
 0x25b   :  { %v2734_v17 = vpop.f32.mrf.mxu0  ;;  %v2895_v61 = vpop.f32.mrf.mxu1  ;;  %v7995_v55 = vld [vmem:[#allocation63_spill] sm:$0xff] }
 0x25c   :  { %7989 = vst [vmem:[#allocation37_spill] sm:$0xff] %v6832_v63  ;;  %v7997_v17 = vld [vmem:[#allocation9_spill] sm:$0xff] }
 0x25d   :  { %v2735_v34 = vpop.f32.mrf.mxu0  ;;  %v2896_v4 = vpop.f32.mrf.mxu1 }
 0x25e   :  { %v6840_v47 = vadd.f32 %v2735_v34, %v6584_v26  ;;  %v6843_v31 = vadd.f32 %v2896_v4, %v7992_v0  ;;  %v7998_v26 = vld [vmem:[#allocation24_spill] sm:$0xff] }
 0x25f   :  { %v2737_v39 = vpop.f32.mrf.mxu0  ;;  %v2898_v30 = vpop.f32.mrf.mxu1 }
 0x261   :  { %v2740_v59 = vpop.f32.mrf.mxu0  ;;  %v2901_v63 = vpop.f32.mrf.mxu1  ;;  %3092 = vmatmul.mubr.bf16.gmra.mxu1 %v7993_v50  ;;  %4659 = vmatmul.mubr.bf16.gmra.mxu0 %v7994_v32 }
 0x262   :  { %v6848_v46 = vadd.f32 %v2740_v59, %v7995_v55  ;;  %v6851_v61 = vadd.f32 %v2901_v63, %v7997_v17  ;;  %3099 = vmatprep.mubr.bf16.mxu1 %v7917_v58  ;;  %4662 = vmatprep.mubr.bf16.mxu0 %v7998_v26  ;;  %v7999_v63 = vld [vmem:[#allocation52_spill] sm:$0xff]  ;;  %v8000_v17 = vld [vmem:[#allocation39_spill] sm:$0xff] }
 0x263   :  { %v2742_v34 = vpop.f32.mrf.mxu0  ;;  %v2903_v4 = vpop.f32.mrf.mxu1 }
 0x264   :  { %7996 = vst [vmem:[#allocation72_spill] sm:$0xff] %v6848_v46 }
 0x265   :  { %v2743_v0 = vpop.f32.mrf.mxu0  ;;  %v2904_v39 = vpop.f32.mrf.mxu1 }
 0x266   :  { %v6856_v30 = vadd.f32 %v2743_v0, %v6605_v33  ;;  %v6859_v50 = vadd.f32 %v2904_v39, %v6608_v36  ;;  %v8001_v33 = vld [vmem:[#allocation40_spill] sm:$0xff] }
 0x267   :  { %v2745_v32 = vpop.f32.mrf.mxu0  ;;  %v2906_v59 = vpop.f32.mrf.mxu1 }
 0x269   :  { %v2748_v55 = vpop.f32.mrf.mxu0  ;;  %v2909_v46 = vpop.f32.mrf.mxu1  ;;  %3100 = vmatmul.mubr.bf16.gmra.mxu1 %v7999_v63  ;;  %4663 = vmatmul.mubr.bf16.gmra.mxu0 %v8000_v17 }
 0x26a   :  { %v6864_v58 = vadd.f32 %v2748_v55, %v6615_v51  ;;  %v6867_v26 = vadd.f32 %v2909_v46, %v6618_v21  ;;  %3107 = vmatprep.mubr.bf16.mxu1 %v6645_v25  ;;  %4666 = vmatprep.mubr.bf16.mxu0 %v8001_v33  ;;  %v8002_v21 = vld [vmem:[#allocation75_spill] sm:$0xff] }
 0x26b   :  { %v2750_v36 = vpop.f32.mrf.mxu0  ;;  %v2911_v34 = vpop.f32.mrf.mxu1 }
 0x26d   :  { %v2751_v4 = vpop.f32.mrf.mxu0  ;;  %v2912_v0 = vpop.f32.mrf.mxu1 }
 0x26e   :  { %v6872_v39 = vadd.f32 %v2751_v4, %v6626_v5  ;;  %v6875_v32 = vadd.f32 %v2912_v0, %v6629_v16 }
 0x26f   :  { %v2753_v59 = vpop.f32.mrf.mxu0  ;;  %v2914_v51 = vpop.f32.mrf.mxu1 }
 0x271   :  { %v2756_v55 = vpop.f32.mrf.mxu0  ;;  %v2917_v63 = vpop.f32.mrf.mxu1  ;;  %3108 = vmatmul.mubr.bf16.gmra.mxu1 %v8002_v21  ;;  %4667 = vmatmul.mubr.bf16.gmra.mxu0 %v6392_v35  ;;  %v8003_v21 = vld [vmem:[#allocation95_spill] sm:$0xff] }
 0x272   :  { %v6880_v25 = vadd.f32 %v2756_v55, %v6637_v15  ;;  %v6883_v46 = vadd.f32 %v2917_v63, %v6640_v12  ;;  %3115 = vmatprep.mubr.bf16.mxu1 %v7919_v53  ;;  %4670 = vmatprep.mubr.bf16.mxu0 %v6631_v10 }
 0x273   :  { %v2758_v5 = vpop.f32.mrf.mxu0  ;;  %v2919_v16 = vpop.f32.mrf.mxu1 }
 0x275   :  { %v2759_v17 = vpop.f32.mrf.mxu0  ;;  %v2920_v33 = vpop.f32.mrf.mxu1 }
 0x276   :  { %v6888_v36 = vadd.f32 %v2759_v17, %v6648_v56  ;;  %v6891_v34 = vadd.f32 %v2920_v33, %v6651_v20 }
 0x277   :  { %v2761_v35 = vpop.f32.mrf.mxu0  ;;  %v2922_v15 = vpop.f32.mrf.mxu1 }
 0x278   :  { %v8004_v35 = vld [vmem:[#allocation96_spill] sm:$0xff] }
 0x279   :  { %v2764_v4 = vpop.f32.mrf.mxu0  ;;  %v2925_v0 = vpop.f32.mrf.mxu1  ;;  %3116 = vmatmul.mubr.bf16.gmra.mxu1 %v7920_v45  ;;  %4671 = vmatmul.mubr.bf16.gmra.mxu0 %v7958_v40  ;;  %v2484_v40 = vadd.f32 %v6669_v19, %v8003_v21 }
 0x27a   :  { %v6896_v10 = vadd.f32 %v2764_v4, %v6656_v6  ;;  %v6899_v12 = vadd.f32 %v2925_v0, %v6659_v37 }
 0x27b   :  { %v2766_v53 = vpop.f32.mrf.mxu0  ;;  %v2927_v56 = vpop.f32.mrf.mxu1 }
 0x27c   :  { %v8006_v56 = vld [vmem:[#allocation97_spill] sm:$0xff] }
 0x27d   :  { %v2767_v59 = vpop.f32.mrf.mxu0  ;;  %v2928_v51 = vpop.f32.mrf.mxu1 }
 0x27e   :  { %v6902_v20 = vadd.f32 %v2767_v59, %v6664_v43  ;;  %v6905_v55 = vadd.f32 %v2928_v51, %v6667_v41  ;;  %v2487_v43 = vadd.f32 %v6678_v28, %v8004_v35  ;;  %v2492_v59 = vadd.f32 %v6683_v44, %v8006_v56 }
 0x27f   :  { %v2769_v63 = vpop.f32.mrf.mxu0  ;;  %v2930_v45 = vpop.f32.mrf.mxu1 }
 0x281   :  { %v2772_v6 = vpop.f32.mrf.mxu0  ;;  %v2933_v5 = vpop.f32.mrf.mxu1 }
 0x282   :  { %v6909_v16 = vadd.f32 %v2772_v6, %v2484_v40  ;;  %v6912_v37 = vadd.f32 %v2933_v5, %v6674_v38  ;;  %v8007_v40 = vld [vmem:[#allocation20_spill] sm:$0xff] }
 0x283   :  { %v2774_v17 = vpop.f32.mrf.mxu0  ;;  %v2935_v33 = vpop.f32.mrf.mxu1  ;;  %v2495_v6 = vadd.f32 %v6692_v24, %v8007_v40 }
 0x285   :  { %v2775_v15 = vpop.f32.mrf.mxu0  ;;  %v2936_v41 = vpop.f32.mrf.mxu1 }
 0x286   :  { %v6916_v4 = vadd.f32 %v2775_v15, %v2487_v43  ;;  %v6919_v0 = vadd.f32 %v2936_v41, %v6681_v23  ;;  %v8008_v43 = vld [vmem:[#allocation98_spill] sm:$0xff] }
 0x287   :  { %v2777_v19 = vpop.f32.mrf.mxu0  ;;  %v2938_v53 = vpop.f32.mrf.mxu1  ;;  %v2500_v15 = vadd.f32 %v6697_v22, %v8008_v43 }
 0x288   :  { %8005 = vst [vmem:[#allocation106_spill] sm:$0xff] %v6916_v4 }
 0x289   :  { %v2780_v51 = vpop.f32.mrf.mxu0  ;;  %v2941_v38 = vpop.f32.mrf.mxu1 }
 0x28a   :  { %v6923_v63 = vadd.f32 %v2780_v51, %v2492_v59  ;;  %v6926_v45 = vadd.f32 %v2941_v38, %v6688_v29  ;;  %v8010_v59 = vld [vmem:[#allocation25_spill] sm:$0xff] }
 0x28b   :  { %v2782_v28 = vpop.f32.mrf.mxu0  ;;  %v2943_v21 = vpop.f32.mrf.mxu1  ;;  %v2503_v51 = vadd.f32 %v6706_v13, %v8010_v59 }
 0x28d   :  { %v2783_v5 = vpop.f32.mrf.mxu0  ;;  %v2944_v23 = vpop.f32.mrf.mxu1 }
 0x28e   :  { %v6930_v17 = vadd.f32 %v2783_v5, %v2495_v6  ;;  %v6933_v33 = vadd.f32 %v2944_v23, %v6695_v49  ;;  %v8012_v6 = vld [vmem:[#allocation99_spill] sm:$0xff]  ;;  %v8013_v5 = vld [vmem:[#allocation64_spill] sm:$0xff] }
 0x28f   :  { %v2785_v44 = vpop.f32.mrf.mxu0  ;;  %v2946_v35 = vpop.f32.mrf.mxu1  ;;  %v2508_v23 = vadd.f32 %v8013_v5, %v8012_v6 }
 0x291   :  { %v2788_v41 = vpop.f32.mrf.mxu0  ;;  %v2949_v29 = vpop.f32.mrf.mxu1 }
 0x292   :  { %v6937_v19 = vadd.f32 %v2788_v41, %v2500_v15  ;;  %v6940_v53 = vadd.f32 %v2949_v29, %v6702_v7  ;;  %v8015_v41 = vld [vmem:[#allocation32_spill] sm:$0xff] }
 0x293   :  { %v2790_v24 = vpop.f32.mrf.mxu0  ;;  %v2951_v56 = vpop.f32.mrf.mxu1  ;;  %v2511_v29 = vadd.f32 %v6720_v57, %v8015_v41 }
 0x294   :  { %8009 = vst [vmem:[#allocation45_spill] sm:$0xff] %v6937_v19 }
 0x295   :  { %v2791_v38 = vpop.f32.mrf.mxu0  ;;  %v2952_v49 = vpop.f32.mrf.mxu1 }
 0x296   :  { %v6944_v28 = vadd.f32 %v2791_v38, %v2503_v51  ;;  %v6947_v21 = vadd.f32 %v2952_v49, %v6709_v48  ;;  %v8017_v49 = vld [vmem:[#allocation100_spill] sm:$0xff] }
 0x297   :  { %v2793_v22 = vpop.f32.mrf.mxu0  ;;  %v2954_v40 = vpop.f32.mrf.mxu1 }
 0x298   :  { %8011 = vst [vmem:[#allocation77_spill] sm:$0xff] %v6944_v28  ;;  %v8018_v22 = vld [vmem:[#allocation102_spill] sm:$0xff]  ;;  %v8038_v28 = vld [vmem:[#allocation47_spill] sm:$0xff] }
 0x299   :  { %v2796_v44 = vpop.f32.mrf.mxu0  ;;  %v2957_v7 = vpop.f32.mrf.mxu1  ;;  %v2516_v40 = vadd.f32 %v8018_v22, %v8017_v49 }
 0x29a   :  { %v6951_v35 = vadd.f32 %v2796_v44, %v2508_v23  ;;  %v6954_v43 = vadd.f32 %v2957_v7, %v6716_v3  ;;  %v8020_v7 = vld [vmem:[#allocation35_spill] sm:$0xff] }
 0x29b   :  { %v2798_v13 = vpop.f32.mrf.mxu0  ;;  %v2959_v15 = vpop.f32.mrf.mxu1 }
 0x29c   :  { %8014 = vst [vmem:[#allocation48_spill] sm:$0xff] %v6951_v35  ;;  %v2519_v13 = vadd.f32 %v6734_v2, %v8020_v7  ;;  %v8027_v7 = vld [vmem:[#allocation13_spill] sm:$0xff] }
 0x29d   :  { %v2799_v24 = vpop.f32.mrf.mxu0  ;;  %v2960_v48 = vpop.f32.mrf.mxu1 }
 0x29e   :  { %v6958_v56 = vadd.f32 %v2799_v24, %v2511_v29  ;;  %v6961_v59 = vadd.f32 %v2960_v48, %v6723_v11 }
 0x29f   :  { %v2801_v51 = vpop.f32.mrf.mxu0  ;;  %v2962_v38 = vpop.f32.mrf.mxu1 }
 0x2a0   :  { %8016 = vst [vmem:[#allocation93_spill] sm:$0xff] %v6958_v56  ;;  %v8022_v51 = vld [vmem:[#allocation101_spill] sm:$0xff]  ;;  %v8044_v56 = vld [vmem:[#allocation71_spill] sm:$0xff] }
 0x2a1   :  { %v2804_v6 = vpop.f32.mrf.mxu0  ;;  %v2965_v3 = vpop.f32.mrf.mxu1  ;;  %v8023_v38 = vld [vmem:[#allocation21_spill] sm:$0xff] }
 0x2a2   :  { %v6965_v5 = vadd.f32 %v2804_v6, %v2516_v40  ;;  %v6968_v23 = vadd.f32 %v2965_v3, %v6730_v42  ;;  %v2524_v49 = vadd.f32 %v8023_v38, %v8022_v51  ;;  %v8025_v6 = vld [vmem:[#allocation66_spill] sm:$0xff] }
 0x2a3   :  { %v2806_v57 = vpop.f32.mrf.mxu0  ;;  %v2967_v44 = vpop.f32.mrf.mxu1 }
 0x2a4   :  { %8019 = vst [vmem:[#allocation3_spill] sm:$0xff] %v6965_v5  ;;  %v8026_v44 = vld [vmem:[#allocation41_spill] sm:$0xff] }
 0x2a5   :  { %v2807_v15 = vpop.f32.mrf.mxu0  ;;  %v2968_v11 = vpop.f32.mrf.mxu1 }
 0x2a6   :  { %v6972_v41 = vadd.f32 %v2807_v15, %v2519_v13  ;;  %v6975_v29 = vadd.f32 %v2968_v11, %v6737_v8  ;;  %v2527_v13 = vadd.f32 %v8027_v7, %v8026_v44 }
 0x2a7   :  { %v2809_v24 = vpop.f32.mrf.mxu0  ;;  %v2970_v48 = vpop.f32.mrf.mxu1 }
 0x2a8   :  { %8021 = vst [vmem:[#allocation11_spill] sm:$0xff] %v6972_v41  ;;  %v8029_v24 = vld [vmem:[#allocation68_spill] sm:$0xff] }
 0x2a9   :  { %v2812_v22 = vpop.f32.mrf.mxu0  ;;  %v2973_v42 = vpop.f32.mrf.mxu1  ;;  %v8030_v41 = vld [vmem:[#allocation4_spill] sm:$0xff] }
 0x2aa   :  { %v6979_v40 = vadd.f32 %v2812_v22, %v2524_v49  ;;  %v6982_v3 = vadd.f32 %v2973_v42, %v8025_v6  ;;  %v8031_v49 = vld [vmem:[#allocation103_spill] sm:$0xff] }
 0x2ab   :  { %v2814_v2 = vpop.f32.mrf.mxu0  ;;  %v2975_v57 = vpop.f32.mrf.mxu1  ;;  %v2532_v22 = vadd.f32 %v8031_v49, %v8030_v41 }
 0x2ac   :  { %8024 = vst [vmem:[#allocation44_spill] sm:$0xff] %v6979_v40  ;;  %v8033_v2 = vld [vmem:[#allocation28_spill] sm:$0xff]  ;;  %v8034_v40 = vld [vmem:[#allocation5_spill] sm:$0xff] }
 0x2ad   :  { %v2815_v15 = vpop.f32.mrf.mxu0  ;;  %v2976_v8 = vpop.f32.mrf.mxu1 }
 0x2ae   :  { %v6986_v11 = vadd.f32 %v2815_v15, %v2527_v13  ;;  %v6989_v48 = vadd.f32 %v2976_v8, %v8029_v24  ;;  %v8035_v13 = vld [vmem:[#allocation67_spill] sm:$0xff] }
 0x2af   :  { %v2817_v51 = vpop.f32.mrf.mxu0  ;;  %v2978_v38 = vpop.f32.mrf.mxu1  ;;  %v2535_v15 = vadd.f32 %v8035_v13, %v8034_v40  ;;  %v8041_v13 = vld [vmem:[#allocation7_spill] sm:$0xff] }
 0x2b0   :  { %8028 = vst [vmem:[#allocation86_spill] sm:$0xff] %v6986_v11  ;;  %v8037_v51 = vld [vmem:[#allocation16_spill] sm:$0xff] }
 0x2b1   :  { %v2820_v5 = vpop.f32.mrf.mxu0  ;;  %v2981_v42 = vpop.f32.mrf.mxu1 }
 0x2b2   :  { %v6993_v6 = vadd.f32 %v2820_v5, %v2532_v22  ;;  %v6996_v57 = vadd.f32 %v2981_v42, %v8033_v2  ;;  %v8039_v5 = vld [vmem:[#allocation70_spill] sm:$0xff] }
 0x2b3   :  { %v2822_v44 = vpop.f32.mrf.mxu0  ;;  %v2983_v7 = vpop.f32.mrf.mxu1  ;;  %v2540_v22 = vadd.f32 %v8039_v5, %v8038_v28 }
 0x2b4   :  { %8032 = vst [vmem:[#allocation46_spill] sm:$0xff] %v6993_v6 }
 0x2b5   :  { %v2823_v11 = vpop.f32.mrf.mxu0  ;;  %v2984_v8 = vpop.f32.mrf.mxu1 }
 0x2b6   :  { %v7000_v24 = vadd.f32 %v2823_v11, %v2535_v15  ;;  %v7003_v38 = vadd.f32 %v2984_v8, %v8037_v51  ;;  %v8042_v11 = vld [vmem:[#allocation104_spill] sm:$0xff] }
 0x2b7   :  { %v2825_v41 = vpop.f32.mrf.mxu0  ;;  %v2986_v49 = vpop.f32.mrf.mxu1  ;;  %v2543_v15 = vadd.f32 %v8042_v11, %v8041_v13 }
 0x2b8   :  { %8036 = vst [vmem:[#allocation49_spill] sm:$0xff] %v7000_v24 }
 0x2b9   :  { %v2828_v6 = vpop.f32.mrf.mxu0  ;;  %v2989_v42 = vpop.f32.mrf.mxu1 }
 0x2ba   :  { %v7007_v2 = vadd.f32 %v2828_v6, %v2540_v22  ;;  %v7010_v44 = vadd.f32 %v2989_v42, %v6772_v52  ;;  %v24_v22 = vld [vmem:[%s7514_s3 + $0x10] sm:$0xff] }
 0x2bb   :  { %v2830_v40 = vpop.f32.mrf.mxu0  ;;  %v2991_v7 = vpop.f32.mrf.mxu1 }
 0x2bc   :  { %8040 = vst [vmem:[#allocation87_spill] sm:$0xff] %v7007_v2 }
 0x2bd   :  { %v2831_v24 = vpop.f32.mrf.mxu0  ;;  %v7014_v8 = vpop.f32.mrf.mxu1 }
 0x2be   :  { %v7016_v51 = vadd.f32 %v2831_v24, %v2543_v15  ;;  %v22_v24 = vld [vmem:[%s7514_s3] sm:$0xff] }
 0x2bf   :  { %v2833_v41 = vpop.f32.mrf.mxu0  ;;  %v2994_v49 = vpop.f32.mrf.mxu1 }
 0x2c0   :  { %8043 = vst [vmem:[#allocation53_spill] sm:$0xff] %v7016_v51  ;;  %v8045_v51 = vld [vmem:[#allocation23_spill] sm:$0xff] }
 0x2c1   :  { %v2997_v28 = vpop.f32.mrf.mxu1  ;;  %v4612_v5 = vpop.f32.mrf.mxu0 }
 0x2c2   :  { %v7019_v6 = vadd.f32 %v2997_v28, %v8044_v56  ;;  %v3167_v52 = vadd.f32 %v4612_v5, %v6803_v62  ;;  %v25_v56 = vld [vmem:[%s7514_s3 + $0x18] sm:$0xff]  ;;  %v23_v28 = vld [vmem:[%s7514_s3 + $0x8] sm:$0xff] }
 0x2c3   :  { %v2999_v42 = vpop.f32.mrf.mxu1  ;;  %v3158_v40 = vpop.f32.mrf.mxu0 }
 0x2c4   :  { %v3159_v7 = vadd.f32 %v3158_v40, %v6787_v14  ;;  %v3415_v15 = vadd.f32 %v3167_v52, %v24_v22  ;;  %v7039_v14 = vld [vmem:[%s7515_s2] ss:$0 sm:$0xff] }
 0x2c5   :  { %v3000_v13 = vpop.f32.mrf.mxu1  ;;  %v4613_v11 = vpop.f32.mrf.mxu0 }
 0x2c6   :  { %v7033_v62 = vadd.f32 %v3000_v13, %v6792_v18  ;;  %v3170_v41 = vadd.f32 %v4613_v11, %v6811_v60  ;;  %v3413_v42 = vadd.f32 %v3159_v7, %v22_v24  ;;  %v3617_v60 = vadd.f32 %v7039_v14, %v3415_v15 }
 0x2c7   :  { %v3002_v49 = vpop.f32.mrf.mxu1  ;;  %v3161_v5 = vpop.f32.mrf.mxu0 }
 0x2c8   :  { %v3416_v40 = vadd.f32 %v3170_v41, %v25_v56  ;;  %v3162_v52 = vadd.f32 %v3161_v5, %v8045_v51  ;;  %v3615_v35 = vadd.f32 %v7039_v14, %v3413_v42  ;;  %v28_v51 = vld [vmem:[%s7514_s3 + $0x30] sm:$0xff]  ;;  %v26_v56 = vld [vmem:[%s7514_s3 + $0x20] sm:$0xff] }
 0x2c9   :  { %v7045_v22 = vpop.f32.mrf.mxu1  ;;  %v4616_v18 = vpop.f32.mrf.mxu0 }
 0x2ca   :  { %v3618_v13 = vadd.f32 %v7039_v14, %v3416_v40  ;;  %v3414_v11 = vadd.f32 %v3162_v52, %v23_v28  ;;  %v3183_v2 = vadd.f32 %v4616_v18, %v6835_v9  ;;  %v29_v28 = vld [vmem:[%s7514_s3 + $0x38] sm:$0xff] }
 0x2cb   :  { %v3007_v49 = vpop.f32.mrf.mxu1  ;;  %v3174_v19 = vpop.f32.mrf.mxu0 }
 0x2cc   :  { %v4340_v4 = vpack.c.bf16 %v3618_v13, %v3617_v60  ;;  %v3616_v7 = vadd.f32 %v7039_v14, %v3414_v11  ;;  %v3175_v24 = vadd.f32 %v3174_v19, %v6819_v1  ;;  %v3419_v5 = vadd.f32 %v3183_v2, %v28_v51  ;;  %v27_v19 = vld [vmem:[%s7514_s3 + $0x28] sm:$0xff] }
 0x2cd   :  { %v7059_v15 = vpop.f32.mrf.mxu1  ;;  %v4617_v9 = vpop.f32.mrf.mxu0 }
 0x2ce   :  { %4523 = vst [vmem:[%s7516_s4 + $0x8] sm:$0xff] %v4340_v4   ;;  %v4335_v41 = vpack.c.bf16 %v3616_v7, %v3615_v35  ;;  %v3186_v42 = vadd.f32 %v4617_v9, %v6843_v31  ;;  %v3417_v52 = vadd.f32 %v3175_v24, %v26_v56  ;;  %v3621_v31 = vadd.f32 %v7039_v14, %v3419_v5 }
 0x2cf   :  { %v3010_v1 = vpop.f32.mrf.mxu1  ;;  %v3177_v40 = vpop.f32.mrf.mxu0 }
 0x2d0   :  { %4336 = vst [vmem:[%s7516_s4] sm:$0xff] %v4335_v41   ;;  %v3178_v4 = vadd.f32 %v3177_v40, %v6827_v27  ;;  %v3420_v35 = vadd.f32 %v3186_v42, %v29_v28  ;;  %v3619_v51 = vadd.f32 %v7039_v14, %v3417_v52  ;;  %v32_v27 = vld [vmem:[%s7514_s3 + $0x50] sm:$0xff]  ;;  %v30_v41 = vld [vmem:[%s7514_s3 + $0x40] sm:$0xff]  ;;  %v33_v42 = vld [vmem:[%s7514_s3 + $0x58] sm:$0xff] }
 0x2d1   :  { %v7075_v18 = vpop.f32.mrf.mxu1  ;;  %v4620_v60 = vpop.f32.mrf.mxu0  ;;  %v31_v40 = vld [vmem:[%s7514_s3 + $0x48] sm:$0xff] }
 0x2d2   :  { %v3418_v2 = vadd.f32 %v3178_v4, %v27_v19  ;;  %v3622_v13 = vadd.f32 %v7039_v14, %v3420_v35  ;;  %v3199_v11 = vadd.f32 %v4620_v60, %v6867_v26 }
 0x2d3   :  { %v3015_v49 = vpop.f32.mrf.mxu1  ;;  %v3190_v7 = vpop.f32.mrf.mxu0 }
 0x2d4   :  { %v3620_v9 = vadd.f32 %v7039_v14, %v3418_v2  ;;  %v3191_v24 = vadd.f32 %v3190_v7, %v6851_v61  ;;  %v4350_v56 = vpack.c.bf16 %v3622_v13, %v3621_v31  ;;  %v3423_v1 = vadd.f32 %v3199_v11, %v32_v27 }
 0x2d5   :  { %v7089_v28 = vpop.f32.mrf.mxu1  ;;  %v4621_v26 = vpop.f32.mrf.mxu0 }
 0x2d6   :  { %v4345_v5 = vpack.c.bf16 %v3620_v9, %v3619_v51  ;;  %4525 = vst [vmem:[%s7516_s4 + $0x18] sm:$0xff] %v4350_v56   ;;  %v3202_v61 = vadd.f32 %v4621_v26, %v6875_v32  ;;  %v3421_v4 = vadd.f32 %v3191_v24, %v30_v41  ;;  %v3625_v32 = vadd.f32 %v7039_v14, %v3423_v1  ;;  %v34_v41 = vld [vmem:[%s7514_s3 + $0x60] sm:$0xff] }
 0x2d7   :  { %v3018_v19 = vpop.f32.mrf.mxu1  ;;  %v3193_v52 = vpop.f32.mrf.mxu0 }
 0x2d8   :  { %4524 = vst [vmem:[%s7516_s4 + $0x10] sm:$0xff] %v4345_v5   ;;  %v3194_v35 = vadd.f32 %v3193_v52, %v6859_v50  ;;  %v3424_v60 = vadd.f32 %v3202_v61, %v33_v42  ;;  %v3623_v9 = vadd.f32 %v7039_v14, %v3421_v4  ;;  %v36_v50 = vld [vmem:[%s7514_s3 + $0x70] sm:$0xff]  ;;  %v37_v42 = vld [vmem:[%s7514_s3 + $0x78] sm:$0xff]  ;;  %v35_v19 = vld [vmem:[%s7514_s3 + $0x68] sm:$0xff] }
 0x2d9   :  { %v7105_v2 = vpop.f32.mrf.mxu1  ;;  %v4624_v31 = vpop.f32.mrf.mxu0 }
 0x2da   :  { %v3422_v13 = vadd.f32 %v3194_v35, %v31_v40  ;;  %v3626_v11 = vadd.f32 %v7039_v14, %v3424_v60  ;;  %v3215_v49 = vadd.f32 %v4624_v31, %v6899_v12 }
 0x2db   :  { %v3023_v7 = vpop.f32.mrf.mxu1  ;;  %v3206_v51 = vpop.f32.mrf.mxu0 }
 0x2dc   :  { %v3624_v27 = vadd.f32 %v7039_v14, %v3422_v13  ;;  %v3207_v24 = vadd.f32 %v3206_v51, %v6883_v46  ;;  %v4360_v56 = vpack.c.bf16 %v3626_v11, %v3625_v32  ;;  %v3427_v1 = vadd.f32 %v3215_v49, %v36_v50 }
 0x2dd   :  { %v7119_v26 = vpop.f32.mrf.mxu1  ;;  %v4625_v12 = vpop.f32.mrf.mxu0 }
 0x2de   :  { %v4355_v5 = vpack.c.bf16 %v3624_v27, %v3623_v9  ;;  %4527 = vst [vmem:[%s7516_s4 + $0x28] sm:$0xff] %v4360_v56   ;;  %v3218_v46 = vadd.f32 %v4625_v12, %v6905_v55  ;;  %v3425_v52 = vadd.f32 %v3207_v24, %v34_v41  ;;  %v3629_v55 = vadd.f32 %v7039_v14, %v3427_v1  ;;  %v38_v24 = vld [vmem:[%s7514_s3 + $0x80] sm:$0xff]  ;;  %v41_v12 = vld [vmem:[%s7514_s3 + $0x98] sm:$0xff]  ;;  %v39_v1 = vld [vmem:[%s7514_s3 + $0x88] sm:$0xff] }
 0x2df   :  { %v3026_v61 = vpop.f32.mrf.mxu1  ;;  %v3209_v40 = vpop.f32.mrf.mxu0 }
 0x2e0   :  { %4526 = vst [vmem:[%s7516_s4 + $0x20] sm:$0xff] %v4355_v5   ;;  %v3210_v4 = vadd.f32 %v3209_v40, %v6891_v34  ;;  %v3428_v35 = vadd.f32 %v3218_v46, %v37_v42  ;;  %v3627_v51 = vadd.f32 %v7039_v14, %v3425_v52  ;;  %v40_v34 = vld [vmem:[%s7514_s3 + $0x90] sm:$0xff] }
 0x2e1   :  { %v7135_v60 = vpop.f32.mrf.mxu1  ;;  %v4628_v31 = vpop.f32.mrf.mxu0 }
 0x2e2   :  { %v3426_v13 = vadd.f32 %v3210_v4, %v35_v19  ;;  %v3630_v32 = vadd.f32 %v7039_v14, %v3428_v35  ;;  %v3231_v11 = vadd.f32 %v4628_v31, %v6926_v45 }
 0x2e3   :  { %v3031_v49 = vpop.f32.mrf.mxu1  ;;  %v3222_v7 = vpop.f32.mrf.mxu0 }
 0x2e4   :  { %v3628_v9 = vadd.f32 %v7039_v14, %v3426_v13  ;;  %v3223_v27 = vadd.f32 %v3222_v7, %v6912_v37  ;;  %v4370_v50 = vpack.c.bf16 %v3630_v32, %v3629_v55  ;;  %v3431_v5 = vadd.f32 %v3231_v11, %v40_v34 }
 0x2e5   :  { %v7149_v56 = vpop.f32.mrf.mxu1  ;;  %v4629_v45 = vpop.f32.mrf.mxu0 }
 0x2e6   :  { %v4365_v41 = vpack.c.bf16 %v3628_v9, %v3627_v51  ;;  %4529 = vst [vmem:[%s7516_s4 + $0x38] sm:$0xff] %v4370_v50   ;;  %v3234_v37 = vadd.f32 %v4629_v45, %v6933_v33  ;;  %v3429_v61 = vadd.f32 %v3223_v27, %v38_v24  ;;  %v3633_v33 = vadd.f32 %v7039_v14, %v3431_v5  ;;  %v42_v9 = vld [vmem:[%s7514_s3 + $0xa0] sm:$0xff]  ;;  %v45_v50 = vld [vmem:[%s7514_s3 + $0xb8] sm:$0xff] }
 0x2e7   :  { %v3034_v42 = vpop.f32.mrf.mxu1  ;;  %v3225_v46 = vpop.f32.mrf.mxu0 }
 0x2e8   :  { %4528 = vst [vmem:[%s7516_s4 + $0x30] sm:$0xff] %v4365_v41   ;;  %v3226_v19 = vadd.f32 %v3225_v46, %v6919_v0  ;;  %v3432_v40 = vadd.f32 %v3234_v37, %v41_v12  ;;  %v3631_v11 = vadd.f32 %v7039_v14, %v3429_v61  ;;  %v44_v0 = vld [vmem:[%s7514_s3 + $0xb0] sm:$0xff]  ;;  %v43_v41 = vld [vmem:[%s7514_s3 + $0xa8] sm:$0xff] }
 0x2e9   :  { %v7165_v52 = vpop.f32.mrf.mxu1  ;;  %v4632_v4 = vpop.f32.mrf.mxu0 }
 0x2ea   :  { %v3430_v35 = vadd.f32 %v3226_v19, %v39_v1  ;;  %v3634_v31 = vadd.f32 %v7039_v14, %v3432_v40  ;;  %v3247_v13 = vadd.f32 %v4632_v4, %v6954_v43 }
 0x2eb   :  { %v3039_v55 = vpop.f32.mrf.mxu1  ;;  %v3238_v32 = vpop.f32.mrf.mxu0 }
 0x2ec   :  { %v3632_v49 = vadd.f32 %v7039_v14, %v3430_v35  ;;  %v3239_v7 = vadd.f32 %v3238_v32, %v6940_v53  ;;  %v4380_v51 = vpack.c.bf16 %v3634_v31, %v3633_v33  ;;  %v3435_v24 = vadd.f32 %v3247_v13, %v44_v0  ;;  %v46_v32 = vld [vmem:[%s7514_s3 + $0xc0] sm:$0xff]  ;;  %v49_v0 = vld [vmem:[%s7514_s3 + $0xd8] sm:$0xff] }
 0x2ed   :  { %v7179_v34 = vpop.f32.mrf.mxu1  ;;  %v4633_v43 = vpop.f32.mrf.mxu0 }
 0x2ee   :  { %v4375_v27 = vpack.c.bf16 %v3632_v49, %v3631_v11  ;;  %4531 = vst [vmem:[%s7516_s4 + $0x48] sm:$0xff] %v4380_v51   ;;  %v3250_v53 = vadd.f32 %v4633_v43, %v6961_v59  ;;  %v3433_v5 = vadd.f32 %v3239_v7, %v42_v9  ;;  %v3637_v59 = vadd.f32 %v7039_v14, %v3435_v24  ;;  %v47_v9 = vld [vmem:[%s7514_s3 + $0xc8] sm:$0xff] }
 0x2ef   :  { %v3042_v45 = vpop.f32.mrf.mxu1  ;;  %v3241_v12 = vpop.f32.mrf.mxu0 }
 0x2f0   :  { %4530 = vst [vmem:[%s7516_s4 + $0x40] sm:$0xff] %v4375_v27   ;;  %v3242_v37 = vadd.f32 %v3241_v12, %v6947_v21  ;;  %v3436_v42 = vadd.f32 %v3250_v53, %v45_v50  ;;  %v3635_v33 = vadd.f32 %v7039_v14, %v3433_v5  ;;  %v48_v21 = vld [vmem:[%s7514_s3 + $0xd0] sm:$0xff] }
 0x2f1   :  { %v7195_v1 = vpop.f32.mrf.mxu1  ;;  %v4636_v46 = vpop.f32.mrf.mxu0 }
 0x2f2   :  { %v3434_v61 = vadd.f32 %v3242_v37, %v43_v41  ;;  %v3638_v19 = vadd.f32 %v7039_v14, %v3436_v42  ;;  %v3263_v40 = vadd.f32 %v4636_v46, %v6982_v3 }
 0x2f3   :  { %v3047_v4 = vpop.f32.mrf.mxu1  ;;  %v3254_v35 = vpop.f32.mrf.mxu0 }
 0x2f4   :  { %v3636_v31 = vadd.f32 %v7039_v14, %v3434_v61  ;;  %v3255_v13 = vadd.f32 %v3254_v35, %v6968_v23  ;;  %v4390_v55 = vpack.c.bf16 %v3638_v19, %v3637_v59  ;;  %v3439_v7 = vadd.f32 %v3263_v40, %v48_v21  ;;  %v8046_v19 = vld [vmem:[#allocation33_spill] sm:$0xff]  ;;  %v53_v21 = vld [vmem:[%s7514_s3 + $0xf8] sm:$0xff] }
 0x2f5   :  { %v7209_v11 = vpop.f32.mrf.mxu1  ;;  %v4637_v3 = vpop.f32.mrf.mxu0  ;;  %v2993_v40 = vadd.f32 %v7014_v8, %v8046_v19 }
 0x2f6   :  { %v4385_v49 = vpack.c.bf16 %v3636_v31, %v3635_v33  ;;  %4533 = vst [vmem:[%s7516_s4 + $0x58] sm:$0xff] %v4390_v55   ;;  %v3266_v23 = vadd.f32 %v4637_v3, %v6989_v48  ;;  %v3437_v27 = vadd.f32 %v3255_v13, %v46_v32  ;;  %v3641_v48 = vadd.f32 %v7039_v14, %v3439_v7  ;;  %v51_v55 = vld [vmem:[%s7514_s3 + $0xe8] sm:$0xff] }
 0x2f7   :  { %v3050_v51 = vpop.f32.mrf.mxu1  ;;  %v3257_v43 = vpop.f32.mrf.mxu0 }
 0x2f8   :  { %4532 = vst [vmem:[%s7516_s4 + $0x50] sm:$0xff] %v4385_v49   ;;  %v3258_v50 = vadd.f32 %v3257_v43, %v6975_v29  ;;  %v3440_v24 = vadd.f32 %v3266_v23, %v49_v0  ;;  %v3639_v46 = vadd.f32 %v7039_v14, %v3437_v27  ;;  %v52_v29 = vld [vmem:[%s7514_s3 + $0xf0] sm:$0xff] }
 0x2f9   :  { %v7225_v53 = vpop.f32.mrf.mxu1  ;;  %v4640_v45 = vpop.f32.mrf.mxu0  ;;  %v8047_v0 = vld [vmem:[#allocation29_spill] sm:$0xff] }
 0x2fa   :  { %v3438_v41 = vadd.f32 %v3258_v50, %v47_v9  ;;  %v3642_v12 = vadd.f32 %v7039_v14, %v3440_v24  ;;  %v3279_v5 = vadd.f32 %v4640_v45, %v7010_v44  ;;  %v50_v44 = vld [vmem:[%s7514_s3 + $0xe0] sm:$0xff]  ;;  %v3006_v7 = vadd.f32 %v7045_v22, %v8047_v0 }
 0x2fb   :  { %v3055_v37 = vpop.f32.mrf.mxu1  ;;  %v3270_v42 = vpop.f32.mrf.mxu0 }
 0x2fc   :  { %v3640_v61 = vadd.f32 %v7039_v14, %v3438_v41  ;;  %v3271_v59 = vadd.f32 %v3270_v42, %v6996_v57  ;;  %v4400_v4 = vpack.c.bf16 %v3642_v12, %v3641_v48  ;;  %v3443_v57 = vadd.f32 %v3279_v5, %v52_v29  ;;  %v54_v42 = vld [vmem:[%s7514_s3 + $0x100] sm:$0xff] }
 0x2fd   :  { %v7241_v35 = vpop.f32.mrf.mxu1  ;;  %v4641_v33 = vpop.f32.mrf.mxu0  ;;  %v3009_v5 = vadd.f32 %v7059_v15, %v6808_v54  ;;  %v55_v15 = vld [vmem:[%s7514_s3 + $0x108] sm:$0xff] }
 0x2fe   :  { %v4395_v31 = vpack.c.bf16 %v3640_v61, %v3639_v46  ;;  %4535 = vst [vmem:[%s7516_s4 + $0x68] sm:$0xff] %v4400_v4   ;;  %v3282_v13 = vadd.f32 %v4641_v33, %v2993_v40  ;;  %v3441_v3 = vadd.f32 %v3271_v59, %v50_v44  ;;  %v3645_v27 = vadd.f32 %v7039_v14, %v3443_v57  ;;  %v57_v59 = vld [vmem:[%s7514_s3 + $0x118] sm:$0xff]  ;;  %v8048_v33 = vld [vmem:[#allocation37_spill] sm:$0xff] }
 0x2ff   :  { %v3058_v8 = vpop.f32.mrf.mxu1  ;;  %v3273_v32 = vpop.f32.mrf.mxu0 }
 0x300   :  { %4534 = vst [vmem:[%s7516_s4 + $0x60] sm:$0xff] %v4395_v31   ;;  %v3274_v49 = vadd.f32 %v3273_v32, %v7003_v38  ;;  %v3444_v23 = vadd.f32 %v3282_v13, %v53_v21  ;;  %v3643_v48 = vadd.f32 %v7039_v14, %v3441_v3  ;;  %v56_v38 = vld [vmem:[%s7514_s3 + $0x110] sm:$0xff]  ;;  %v3022_v31 = vadd.f32 %v7105_v2, %v8048_v33  ;;  %v8049_v8 = vld [vmem:[#allocation34_spill] sm:$0xff] }
 0x301   :  { %v7258_v51 = vpop.f32.mrf.mxu1  ;;  %v4644_v9 = vpop.f32.mrf.mxu0  ;;  %v60_v2 = vld [vmem:[%s7514_s3 + $0x130] sm:$0xff] }
 0x302   :  { %v3442_v43 = vadd.f32 %v3274_v49, %v51_v55  ;;  %v3646_v50 = vadd.f32 %v7039_v14, %v3444_v23  ;;  %v3295_v24 = vadd.f32 %v4644_v9, %v3006_v7  ;;  %v3014_v55 = vadd.f32 %v7075_v18, %v8049_v8 }
 0x303   :  { %v3063_v45 = vpop.f32.mrf.mxu1  ;;  %v3286_v41 = vpop.f32.mrf.mxu0  ;;  %v3025_v18 = vadd.f32 %v7119_v26, %v6840_v47 }
 0x304   :  { %v3644_v12 = vadd.f32 %v7039_v14, %v3442_v43  ;;  %v3287_v22 = vadd.f32 %v3286_v41, %v7019_v6  ;;  %v4410_v37 = vpack.c.bf16 %v3646_v50, %v3645_v27  ;;  %v3447_v6 = vadd.f32 %v3295_v24, %v56_v38  ;;  %v58_v50 = vld [vmem:[%s7514_s3 + $0x120] sm:$0xff]  ;;  %v8050_v41 = vld [vmem:[#allocation105_spill] sm:$0xff]  ;;  %v61_v38 = vld [vmem:[%s7514_s3 + $0x138] sm:$0xff] }
 0x305   :  { %v7273_v46 = vpop.f32.mrf.mxu1  ;;  %v4645_v61 = vpop.f32.mrf.mxu0 }
 0x306   :  { %v4405_v29 = vpack.c.bf16 %v3644_v12, %v3643_v48  ;;  %4537 = vst [vmem:[%s7516_s4 + $0x78] sm:$0xff] %v4410_v37   ;;  %v3298_v19 = vadd.f32 %v4645_v61, %v3009_v5  ;;  %v3445_v4 = vadd.f32 %v3287_v22, %v54_v42  ;;  %v3649_v3 = vadd.f32 %v7039_v14, %v3447_v6  ;;  %v59_v5 = vld [vmem:[%s7514_s3 + $0x128] sm:$0xff] }
 0x307   :  { %v3066_v54 = vpop.f32.mrf.mxu1  ;;  %v3289_v40 = vpop.f32.mrf.mxu0  ;;  %v3017_v48 = vadd.f32 %v7089_v28, %v8050_v41  ;;  %v3038_v61 = vadd.f32 %v7165_v52, %v6864_v58  ;;  %v64_v58 = vld [vmem:[%s7514_s3 + $0x150] sm:$0xff] }
 0x308   :  { %4536 = vst [vmem:[%s7516_s4 + $0x70] sm:$0xff] %v4405_v29   ;;  %v3290_v44 = vadd.f32 %v3289_v40, %v7033_v62  ;;  %v3448_v21 = vadd.f32 %v3298_v19, %v57_v59  ;;  %v3647_v62 = vadd.f32 %v7039_v14, %v3445_v4  ;;  %v8051_v19 = vld [vmem:[#allocation72_spill] sm:$0xff] }
 0x309   :  { %v7290_v57 = vpop.f32.mrf.mxu1  ;;  %v4648_v13 = vpop.f32.mrf.mxu0  ;;  %v3030_v54 = vadd.f32 %v7135_v60, %v8051_v19  ;;  %v3041_v60 = vadd.f32 %v7179_v34, %v6872_v39  ;;  %v67_v19 = vld [vmem:[%s7514_s3 + $0x168] sm:$0xff] }
 0x30a   :  { %v3446_v32 = vadd.f32 %v3290_v44, %v55_v15  ;;  %v3650_v49 = vadd.f32 %v7039_v14, %v3448_v21  ;;  %v3311_v0 = vadd.f32 %v4648_v13, %v3022_v31 }
 0x30b   :  { %v3071_v7 = vpop.f32.mrf.mxu1  ;;  %v3302_v23 = vpop.f32.mrf.mxu0 }
 0x30c   :  { %v3648_v9 = vadd.f32 %v7039_v14, %v3446_v32  ;;  %v3303_v43 = vadd.f32 %v3302_v23, %v3014_v55  ;;  %v4420_v27 = vpack.c.bf16 %v3650_v49, %v3649_v3  ;;  %v3451_v47 = vadd.f32 %v3311_v0, %v60_v2  ;;  %v62_v55 = vld [vmem:[%s7514_s3 + $0x140] sm:$0xff]  ;;  %v65_v7 = vld [vmem:[%s7514_s3 + $0x158] sm:$0xff] }
 0x30d   :  { %v7306_v24 = vpop.f32.mrf.mxu1  ;;  %v4649_v45 = vpop.f32.mrf.mxu0  ;;  %v3033_v49 = vadd.f32 %v7149_v56, %v6856_v30  ;;  %v3054_v2 = vadd.f32 %v7225_v53, %v6896_v10  ;;  %v68_v10 = vld [vmem:[%s7514_s3 + $0x170] sm:$0xff] }
 0x30e   :  { %v4415_v12 = vpack.c.bf16 %v3648_v9, %v3647_v62  ;;  %4539 = vst [vmem:[%s7516_s4 + $0x88] sm:$0xff] %v4420_v27   ;;  %v3314_v26 = vadd.f32 %v4649_v45, %v3025_v18  ;;  %v3449_v28 = vadd.f32 %v3303_v43, %v58_v50  ;;  %v3653_v40 = vadd.f32 %v7039_v14, %v3451_v47  ;;  %v63_v62 = vld [vmem:[%s7514_s3 + $0x148] sm:$0xff] }
 0x30f   :  { %v3074_v22 = vpop.f32.mrf.mxu1  ;;  %v3305_v37 = vpop.f32.mrf.mxu0  ;;  %v3046_v50 = vadd.f32 %v7195_v1, %v6880_v25  ;;  %v3057_v25 = vadd.f32 %v7241_v35, %v6902_v20 }
 0x310   :  { %4538 = vst [vmem:[%s7516_s4 + $0x80] sm:$0xff] %v4415_v12   ;;  %v3306_v42 = vadd.f32 %v3305_v37, %v3017_v48  ;;  %v3452_v29 = vadd.f32 %v3314_v26, %v61_v38  ;;  %v3651_v21 = vadd.f32 %v7039_v14, %v3449_v28 }
 0x311   :  { %v7324_v59 = vpop.f32.mrf.mxu1  ;;  %v4652_v6 = vpop.f32.mrf.mxu0 }
 0x312   :  { %v3450_v15 = vadd.f32 %v3306_v42, %v59_v5  ;;  %v3654_v4 = vadd.f32 %v7039_v14, %v3452_v29  ;;  %v3327_v44 = vadd.f32 %v4652_v6, %v3038_v61  ;;  %v66_v5 = vld [vmem:[%s7514_s3 + $0x160] sm:$0xff]  ;;  %v3049_v42 = vadd.f32 %v7209_v11, %v6888_v36  ;;  %v69_v29 = vld [vmem:[%s7514_s3 + $0x178] sm:$0xff] }
 0x313   :  { %v3079_v33 = vpop.f32.mrf.mxu1  ;;  %v3318_v31 = vpop.f32.mrf.mxu0 }
 0x314   :  { %v3652_v13 = vadd.f32 %v7039_v14, %v3450_v15  ;;  %v3319_v52 = vadd.f32 %v3318_v31, %v3030_v54  ;;  %v4430_v8 = vpack.c.bf16 %v3654_v4, %v3653_v40  ;;  %v3455_v39 = vadd.f32 %v3327_v44, %v64_v58 }
 0x315   :  { %v7340_v32 = vpop.f32.mrf.mxu1  ;;  %v4653_v3 = vpop.f32.mrf.mxu0  ;;  %v3070_v15 = vadd.f32 %v7290_v57, %v6923_v63  ;;  %v3062_v33 = vadd.f32 %v7258_v51, %v6909_v16  ;;  %v72_v63 = vld [vmem:[%s7514_s3 + $0x190] sm:$0xff]  ;;  %v3073_v16 = vadd.f32 %v7306_v24, %v6930_v17 }
 0x316   :  { %v4425_v0 = vpack.c.bf16 %v3652_v13, %v3651_v21  ;;  %4541 = vst [vmem:[%s7516_s4 + $0x98] sm:$0xff] %v4430_v8   ;;  %v3330_v34 = vadd.f32 %v4653_v3, %v3041_v60  ;;  %v3453_v30 = vadd.f32 %v3319_v52, %v62_v55  ;;  %v3657_v41 = vadd.f32 %v7039_v14, %v3455_v39  ;;  %v70_v3 = vld [vmem:[%s7514_s3 + $0x180] sm:$0xff] }
 0x317   :  { %v3082_v23 = vpop.f32.mrf.mxu1  ;;  %v3321_v9 = vpop.f32.mrf.mxu0 }
 0x318   :  { %4540 = vst [vmem:[%s7516_s4 + $0x90] sm:$0xff] %v4425_v0   ;;  %v3322_v56 = vadd.f32 %v3321_v9, %v3033_v49  ;;  %v3456_v43 = vadd.f32 %v3330_v34, %v65_v7  ;;  %v3655_v26 = vadd.f32 %v7039_v14, %v3453_v30  ;;  %v8052_v7 = vld [vmem:[#allocation106_spill] sm:$0xff]  ;;  %v71_v9 = vld [vmem:[%s7514_s3 + $0x188] sm:$0xff] }
 0x319   :  { %v3085_v18 = vpop.f32.mrf.mxu1  ;;  %v4656_v27 = vpop.f32.mrf.mxu0  ;;  %v3065_v39 = vadd.f32 %v7273_v46, %v8052_v7  ;;  %v73_v23 = vld [vmem:[%s7514_s3 + $0x198] sm:$0xff] }
 0x31a   :  { %v3454_v45 = vadd.f32 %v3322_v56, %v63_v62  ;;  %v3658_v48 = vadd.f32 %v7039_v14, %v3456_v43  ;;  %v3343_v12 = vadd.f32 %v4656_v27, %v3054_v2  ;;  %v8053_v2 = vld [vmem:[#allocation48_spill] sm:$0xff] }
 0x31b   :  { %v3087_v38 = vpop.f32.mrf.mxu1  ;;  %v3334_v47 = vpop.f32.mrf.mxu0  ;;  %v3086_v43 = vadd.f32 %v3085_v18, %v8053_v2  ;;  %v76_v18 = vld [vmem:[%s7514_s3 + $0x1b0] sm:$0xff] }
 0x31c   :  { %v3656_v22 = vadd.f32 %v7039_v14, %v3454_v45  ;;  %v3335_v53 = vadd.f32 %v3334_v47, %v3046_v50  ;;  %v4440_v1 = vpack.c.bf16 %v3658_v48, %v3657_v41  ;;  %v3459_v20 = vadd.f32 %v3343_v12, %v68_v10  ;;  %v8054_v41 = vld [vmem:[#allocation45_spill] sm:$0xff] }
 0x31d   :  { %v3088_v37 = vpop.f32.mrf.mxu1  ;;  %v4657_v28 = vpop.f32.mrf.mxu0  ;;  %v3078_v48 = vadd.f32 %v7324_v59, %v8054_v41 }
 0x31e   :  { %v4435_v61 = vpack.c.bf16 %v3656_v22, %v3655_v26  ;;  %4543 = vst [vmem:[%s7516_s4 + $0xa8] sm:$0xff] %v4440_v1   ;;  %v3346_v35 = vadd.f32 %v4657_v28, %v3057_v25  ;;  %v3457_v36 = vadd.f32 %v3335_v53, %v66_v5  ;;  %v3661_v21 = vadd.f32 %v7039_v14, %v3459_v20  ;;  %v8055_v5 = vld [vmem:[#allocation93_spill] sm:$0xff] }
 0x31f   :  { %v3090_v6 = vpop.f32.mrf.mxu1  ;;  %v3337_v54 = vpop.f32.mrf.mxu0  ;;  %v3089_v28 = vadd.f32 %v3088_v37, %v8055_v5  ;;  %v8056_v20 = vld [vmem:[#allocation77_spill] sm:$0xff] }
 0x320   :  { %4542 = vst [vmem:[%s7516_s4 + $0xa0] sm:$0xff] %v4435_v61   ;;  %v3338_v11 = vadd.f32 %v3337_v54, %v3049_v42  ;;  %v3460_v40 = vadd.f32 %v3346_v35, %v69_v29  ;;  %v3659_v8 = vadd.f32 %v7039_v14, %v3457_v36  ;;  %v74_v42 = vld [vmem:[%s7514_s3 + $0x1a0] sm:$0xff]  ;;  %v3081_v35 = vadd.f32 %v7340_v32, %v8056_v20 }
 0x321   :  { %v7388_v4 = vpop.f32.mrf.mxu1  ;;  %v4660_v44 = vpop.f32.mrf.mxu0  ;;  %v82_v20 = vld [vmem:[%s7514_s3 + $0x1e0] sm:$0xff] }
 0x322   :  { %v3458_v31 = vadd.f32 %v3338_v11, %v67_v19  ;;  %v3662_v13 = vadd.f32 %v7039_v14, %v3460_v40  ;;  %v3359_v58 = vadd.f32 %v4660_v44, %v3070_v15  ;;  %v77_v19 = vld [vmem:[%s7514_s3 + $0x1b8] sm:$0xff]  ;;  %v75_v11 = vld [vmem:[%s7514_s3 + $0x1a8] sm:$0xff] }
 0x323   :  { %v3095_v52 = vpop.f32.mrf.mxu1  ;;  %v3350_v60 = vpop.f32.mrf.mxu0  ;;  %v8057_v44 = vld [vmem:[#allocation44_spill] sm:$0xff] }
 0x324   :  { %v3660_v55 = vadd.f32 %v7039_v14, %v3458_v31  ;;  %v3351_v57 = vadd.f32 %v3350_v60, %v3062_v33  ;;  %v4450_v51 = vpack.c.bf16 %v3662_v13, %v3661_v21  ;;  %v3463_v17 = vadd.f32 %v3359_v58, %v72_v63  ;;  %v8058_v58 = vld [vmem:[#allocation3_spill] sm:$0xff] }
 0x325   :  { %v7404_v49 = vpop.f32.mrf.mxu1  ;;  %v4661_v0 = vpop.f32.mrf.mxu0  ;;  %v3094_v52 = vadd.f32 %v7388_v4, %v8058_v58 }
 0x326   :  { %v4445_v34 = vpack.c.bf16 %v3660_v55, %v3659_v8  ;;  %4545 = vst [vmem:[%s7516_s4 + $0xb8] sm:$0xff] %v4450_v51   ;;  %v3362_v24 = vadd.f32 %v4661_v0, %v3073_v16  ;;  %v3461_v46 = vadd.f32 %v3351_v57, %v70_v3  ;;  %v3665_v38 = vadd.f32 %v7039_v14, %v3463_v17  ;;  %v80_v0 = vld [vmem:[%s7514_s3 + $0x1d0] sm:$0xff] }
 0x327   :  { %v3098_v62 = vpop.f32.mrf.mxu1  ;;  %v3353_v30 = vpop.f32.mrf.mxu0 }
 0x328   :  { %4544 = vst [vmem:[%s7516_s4 + $0xb0] sm:$0xff] %v4445_v34   ;;  %v3354_v56 = vadd.f32 %v3353_v30, %v3065_v39  ;;  %v3464_v27 = vadd.f32 %v3362_v24, %v73_v23  ;;  %v3663_v53 = vadd.f32 %v7039_v14, %v3461_v46  ;;  %v8059_v39 = vld [vmem:[#allocation86_spill] sm:$0xff]  ;;  %v78_v23 = vld [vmem:[%s7514_s3 + $0x1c0] sm:$0xff] }
 0x329   :  { %v3101_v50 = vpop.f32.mrf.mxu1  ;;  %v4664_v45 = vpop.f32.mrf.mxu0  ;;  %v8060_v62 = vld [vmem:[#allocation11_spill] sm:$0xff]  ;;  %v81_v46 = vld [vmem:[%s7514_s3 + $0x1d8] sm:$0xff] }
 0x32a   :  { %v3462_v12 = vadd.f32 %v3354_v56, %v71_v9  ;;  %v3666_v47 = vadd.f32 %v7039_v14, %v3464_v27  ;;  %v3375_v26 = vadd.f32 %v4664_v45, %v3086_v43  ;;  %v3102_v33 = vadd.f32 %v3101_v50, %v8057_v44  ;;  %v79_v27 = vld [vmem:[%s7514_s3 + $0x1c8] sm:$0xff] }
 0x32b   :  { %v3103_v22 = vpop.f32.mrf.mxu1  ;;  %v3366_v10 = vpop.f32.mrf.mxu0  ;;  %v3097_v9 = vadd.f32 %v7404_v49, %v8060_v62 }
 0x32c   :  { %v3664_v25 = vadd.f32 %v7039_v14, %v3462_v12  ;;  %v3367_v1 = vadd.f32 %v3366_v10, %v3078_v48  ;;  %v4460_v59 = vpack.c.bf16 %v3666_v47, %v3665_v38  ;;  %v3467_v37 = vadd.f32 %v3375_v26, %v76_v18  ;;  %v8061_v38 = vld [vmem:[#allocation46_spill] sm:$0xff]  ;;  %v8062_v22 = vld [vmem:[#allocation87_spill] sm:$0xff] }
 0x32d   :  { %v3104_v61 = vpop.f32.mrf.mxu1  ;;  %v4665_v29 = vpop.f32.mrf.mxu0 }
 0x32e   :  { %v4455_v6 = vpack.c.bf16 %v3664_v25, %v3663_v53  ;;  %4547 = vst [vmem:[%s7516_s4 + $0xc8] sm:$0xff] %v4460_v59   ;;  %v3378_v54 = vadd.f32 %v4665_v29, %v3089_v28  ;;  %v3465_v32 = vadd.f32 %v3367_v1, %v74_v42  ;;  %v3669_v8 = vadd.f32 %v7039_v14, %v3467_v37  ;;  %v84_v29 = vld [vmem:[%s7514_s3 + $0x1f0] sm:$0xff] }
 0x32f   :  { %v3106_v36 = vpop.f32.mrf.mxu1  ;;  %v3369_v15 = vpop.f32.mrf.mxu0  ;;  %v3105_v34 = vadd.f32 %v3104_v61, %v8059_v39 }
 0x330   :  { %4546 = vst [vmem:[%s7516_s4 + $0xc0] sm:$0xff] %v4455_v6   ;;  %v3370_v40 = vadd.f32 %v3369_v15, %v3081_v35  ;;  %v3468_v31 = vadd.f32 %v3378_v54, %v77_v19  ;;  %v3667_v51 = vadd.f32 %v7039_v14, %v3465_v32  ;;  %v8063_v19 = vld [vmem:[#allocation49_spill] sm:$0xff]  ;;  %v85_v15 = vld [vmem:[%s7514_s3 + $0x1f8] sm:$0xff] }
 0x331   :  { %v3109_v21 = vpop.f32.mrf.mxu1  ;;  %v4668_v13 = vpop.f32.mrf.mxu0  ;;  %v8064_v36 = vld [vmem:[#allocation53_spill] sm:$0xff] }
 0x332   :  { %v3466_v60 = vadd.f32 %v3370_v40, %v75_v11  ;;  %v3670_v55 = vadd.f32 %v7039_v14, %v3468_v31  ;;  %v3391_v63 = vadd.f32 %v4668_v13, %v3102_v33  ;;  %v3110_v47 = vadd.f32 %v3109_v21, %v8061_v38  ;;  %v83_v40 = vld [vmem:[%s7514_s3 + $0x1e8] sm:$0xff] }
 0x333   :  { %v3111_v57 = vpop.f32.mrf.mxu1  ;;  %v3382_v16 = vpop.f32.mrf.mxu0 }
 0x334   :  { %v3668_v3 = vadd.f32 %v7039_v14, %v3466_v60  ;;  %v3383_v7 = vadd.f32 %v3382_v16, %v3094_v52  ;;  %v4470_v4 = vpack.c.bf16 %v3670_v55, %v3669_v8  ;;  %v3471_v56 = vadd.f32 %v3391_v63, %v80_v0 }
 0x335   :  { %v3112_v17 = vpop.f32.mrf.mxu1  ;;  %v4669_v24 = vpop.f32.mrf.mxu0 }
 0x336   :  { %v4465_v30 = vpack.c.bf16 %v3668_v3, %v3667_v51  ;;  %4549 = vst [vmem:[%s7516_s4 + $0xd8] sm:$0xff] %v4470_v4   ;;  %v3394_v2 = vadd.f32 %v4669_v24, %v3105_v34  ;;  %v3469_v49 = vadd.f32 %v3383_v7, %v78_v23  ;;  %v3673_v53 = vadd.f32 %v7039_v14, %v3471_v56 }
 0x337   :  { %v3114_v43 = vpop.f32.mrf.mxu1  ;;  %v3385_v50 = vpop.f32.mrf.mxu0  ;;  %v3113_v37 = vadd.f32 %v3112_v17, %v8063_v19 }
 0x338   :  { %4548 = vst [vmem:[%s7516_s4 + $0xd0] sm:$0xff] %v4465_v30   ;;  %v3386_v45 = vadd.f32 %v3385_v50, %v3097_v9  ;;  %v3472_v41 = vadd.f32 %v3394_v2, %v81_v46  ;;  %v3671_v5 = vadd.f32 %v7039_v14, %v3469_v49 }
 0x339   :  { %v3117_v48 = vpop.f32.mrf.mxu1  ;;  %v4672_v12 = vpop.f32.mrf.mxu0 }
 0x33a   :  { %v3470_v26 = vadd.f32 %v3386_v45, %v79_v27  ;;  %v3118_v10 = vadd.f32 %v3117_v48, %v8062_v22  ;;  %v3674_v25 = vadd.f32 %v7039_v14, %v3472_v41 }
 0x33b   :  { %v3119_v18 = vpop.f32.mrf.mxu1  ;;  %v3398_v1 = vpop.f32.mrf.mxu0 }
 0x33c   :  { %v3672_v28 = vadd.f32 %v7039_v14, %v3470_v26  ;;  %v3407_v59 = vadd.f32 %v4672_v12, %v3118_v10  ;;  %v3399_v42 = vadd.f32 %v3398_v1, %v3110_v47  ;;  %v4480_v61 = vpack.c.bf16 %v3674_v25, %v3673_v53 }
 0x33d   :  { %v3120_v35 = vpop.f32.mrf.mxu1  ;;  %v4673_v6 = vpop.f32.mrf.mxu0 }
 0x33e   :  { %v4475_v54 = vpack.c.bf16 %v3672_v28, %v3671_v5  ;;  %v3121_v11 = vadd.f32 %v3120_v35, %v8064_v36  ;;  %4551 = vst [vmem:[%s7516_s4 + $0xe8] sm:$0xff] %v4480_v61   ;;  %v3475_v33 = vadd.f32 %v3407_v59, %v84_v29  ;;  %v3473_v31 = vadd.f32 %v3399_v42, %v82_v20 }
 0x33f   :  { %v3122_v32 = vpop.f32.mrf.mxu1  ;;  %v3401_v44 = vpop.f32.mrf.mxu0 }
 0x340   :  { %4550 = vst [vmem:[%s7516_s4 + $0xe0] sm:$0xff] %v4475_v54   ;;  %v3410_v21 = vadd.f32 %v4673_v6, %v3121_v11  ;;  %v3402_v13 = vadd.f32 %v3401_v44, %v3113_v37  ;;  %v3677_v60 = vadd.f32 %v7039_v14, %v3475_v33  ;;  %v3675_v8 = vadd.f32 %v7039_v14, %v3473_v31 }
 0x342   :  { %v3476_v58 = vadd.f32 %v3410_v21, %v85_v15  ;;  %v3474_v52 = vadd.f32 %v3402_v13, %v83_v40 }
 0x344   :  { %v3678_v55 = vadd.f32 %v7039_v14, %v3476_v58  ;;  %v3676_v63 = vadd.f32 %v7039_v14, %v3474_v52 }
 0x346   :  { %v4490_v57 = vpack.c.bf16 %v3678_v55, %v3677_v60  ;;  %v4485_v16 = vpack.c.bf16 %v3676_v63, %v3675_v8 }
 0x348   :  { %4553 = vst [vmem:[%s7516_s4 + $0xf8] sm:$0xff] %v4490_v57   ;;  %4552 = vst [vmem:[%s7516_s4 + $0xf0] sm:$0xff] %v4485_v16  }

</bundles_post_ra>
